<compile_context>
chip_gen: v5e
topology: v5e:2x2
jax: 0.10.0
libtpu: 0.0.40
codegen_flags: <defaults>
</compile_context>

<pallas_src>
import functools

import jax
import jax.numpy as jnp
from jax.experimental import pallas as pl
from jax.experimental.pallas import tpu as pltpu


# ----------------------------------------------------------------------------
# Fused multi-head attention kernel (one batch BLOCK per grid step)
# ----------------------------------------------------------------------------
def _mha_kernel(x_ref, wqkv_ref, wo_ref, bo_ref, o_ref, *,
                block_b, n, heads, dim_head, scale, matmul_dtype):
    inner = heads * dim_head
    dim_out = o_ref.shape[-1]

    # (block_b, N, dim) -> (block_b*N, dim): fold the batch block into rows so
    # the QKV projection runs as one large MXU matmul.
    x = x_ref[...].reshape(block_b * n, x_ref.shape[-1])

    # Fused QKV projection; operands cast to matmul_dtype (bf16 for single-pass
    # MXU on v5e/v6e/v7x), accumulation in f32.
    qkv = jnp.dot(x.astype(matmul_dtype), wqkv_ref[...].astype(matmul_dtype),
                  preferred_element_type=jnp.float32)        # (block_b*N, 3*inner)

    rows = []
    for b in range(block_b):                 # short static loops, fully unrolled
        r0 = b * n
        head_outs = []
        for h in range(heads):
            off = h * dim_head
            q_h = qkv[r0:r0 + n, off:off + dim_head]                          # (N, dh)
            k_h = qkv[r0:r0 + n, inner + off:inner + off + dim_head]          # (N, dh)
            v_h = qkv[r0:r0 + n, 2 * inner + off:2 * inner + off + dim_head]  # (N, dh)

            # dots = q_h @ k_h^T (contract dim_head, no explicit transpose)
            dots = jax.lax.dot_general(
                q_h.astype(matmul_dtype), k_h.astype(matmul_dtype),
                (((1,), (1,)), ((), ())),
                preferred_element_type=jnp.float32) * scale                   # (N, N)

            # Numerically-stable softmax over keys, strictly f32 (VPU/EUP path).
            dots = dots - jnp.max(dots, axis=-1, keepdims=True)
            p = jnp.exp(dots)
            # EUP reciprocal on the (N,1) row sums + VPU multiply, not an (N,N) divide.
            inv = pl.reciprocal(jnp.sum(p, axis=-1, keepdims=True), approx=False)
            attn = p * inv

            head_outs.append(
                jnp.dot(attn.astype(matmul_dtype), v_h.astype(matmul_dtype),
                        preferred_element_type=jnp.float32))                  # (N, dh)
        rows.append(jnp.concatenate(head_outs, axis=-1))                      # (N, inner)
    o_heads = jnp.concatenate(rows, axis=0)                       # (block_b*N, inner)

    # Single output projection (K = inner) + bias, instead of per-head K=64 dots.
    out = jnp.dot(o_heads.astype(matmul_dtype), wo_ref[...].astype(matmul_dtype),
                  preferred_element_type=jnp.float32) + bo_ref[...]
    o_ref[...] = out.reshape(block_b, n, dim_out).astype(o_ref.dtype)


def _default_batch_block(batch):
    """Whole batch per step on single-TC chips; split across cores on v7x."""
    n_tc = 1
    try:
        kind = jax.devices()[0].device_kind.lower()
        if "v7" in kind or "7x" in kind:          # 2 TensorCores per chip
            n_tc = 2
    except Exception:
        pass
    if n_tc > 1 and batch >= n_tc and batch % n_tc == 0:
        return batch // n_tc
    return batch


def multi_head_attention(x, w_qkv, w_out, b_out, *, heads, dim_head,
                         block_b=None, matmul_dtype=jnp.float32):
    """x: (B, N, dim) f32.  w_qkv: (dim, 3*inner).  w_out: (inner, dim).  b_out: (dim,)."""
    B, N, dim = x.shape
    inner = heads * dim_head
    assert w_qkv.shape == (dim, 3 * inner)
    assert w_out.shape == (inner, dim)
    assert b_out.shape == (dim,)
    scale = float(dim_head) ** -0.5

    if block_b is None:
        block_b = _default_batch_block(B)
    assert B % block_b == 0, (B, block_b)
    grid_b = B // block_b

    # No 128-lane output padding for small dim: padding would 4x the HBM write
    # bytes and add a separate XLA slice pass (perf review). Re-introduce only
    # for large, non-128-multiple dim.
    bo_row = b_out[None, :]                                   # (1, dim)

    kernel = functools.partial(
        _mha_kernel, block_b=block_b, n=N, heads=heads, dim_head=dim_head,
        scale=scale, matmul_dtype=matmul_dtype)

    return pl.pallas_call(
        kernel,
        out_shape=jax.ShapeDtypeStruct((B, N, dim), x.dtype),
        grid_spec=pltpu.PrefetchScalarGridSpec(
            num_scalar_prefetch=0,
            grid=(grid_b,),
            in_specs=[
                pl.BlockSpec((block_b, N, dim), lambda g: (g, 0, 0)),
                pl.BlockSpec((dim, 3 * inner), lambda g: (0, 0)),
                pl.BlockSpec((inner, dim), lambda g: (0, 0)),
                pl.BlockSpec((1, dim), lambda g: (0, 0)),
            ],
            out_specs=pl.BlockSpec((block_b, N, dim), lambda g: (g, 0, 0)),
        ),
        compiler_params=pltpu.CompilerParams(
            dimension_semantics=("parallel",),
            vmem_limit_bytes=32 * 1024 * 1024),
    )(x, w_qkv, w_out, bo_row)


# ----------------------------------------------------------------------------
# Plain-JAX reference with identical math (for the correctness check)
# ----------------------------------------------------------------------------
def _reference_forward(x, w_qkv, w_out, b_out, *, heads, dim_head):
    B, N, dim = x.shape
    inner = heads * dim_head
    scale = float(dim_head) ** -0.5
    hp = jax.lax.Precision.HIGHEST

    qkv = jnp.einsum('bnd,df->bnf', x, w_qkv, precision=hp)
    q, k, v = jnp.split(qkv, 3, axis=-1)

    def split_heads(t):
        return t.reshape(B, N, heads, dim_head).transpose(0, 2, 1, 3)

    q, k, v = map(split_heads, (q, k, v))
    dots = jnp.einsum('bhnd,bhmd->bhnm', q, k, precision=hp) * scale
    attn = jax.nn.softmax(dots, axis=-1)
    out = jnp.einsum('bhnm,bhmd->bhnd', attn, v, precision=hp)
    out = out.transpose(0, 2, 1, 3).reshape(B, N, inner)
    return jnp.einsum('bnf,fd->bnd', out, w_out, precision=hp) + b_out


if __name__ == "__main__":
    key = jax.random.PRNGKey(0)
    k_x, k_qkv, k_o, k_b = jax.random.split(key, 4)

    # Shapes implied by the module: x is (batch, seq, dim); defaults heads=8, dim_head=64.
    B, N, dim = 2, 16, 32
    heads, dim_head = 8, 64
    inner = heads * dim_head
    # project_out = not (heads == 1 and dim_head == dim) -> True, so to_out is
    # Linear(inner, dim) + Dropout(p=0.0) (identity at p=0).

    x = jax.random.normal(k_x, (B, N, dim), dtype=jnp.float32)
    w_qkv = jax.random.normal(k_qkv, (dim, 3 * inner), dtype=jnp.float32) * (dim ** -0.5)
    w_out = jax.random.normal(k_o, (inner, dim), dtype=jnp.float32) * (inner ** -0.5)
    b_out = jax.random.normal(k_b, (dim,), dtype=jnp.float32) * 0.01

    ref = jax.block_until_ready(
        _reference_forward(x, w_qkv, w_out, b_out, heads=heads, dim_head=dim_head))

    # f32 MXU operands: exact agreement with the reference.
    out = jax.block_until_ready(
        multi_head_attention(x, w_qkv, w_out, b_out, heads=heads, dim_head=dim_head))
    assert out.shape == (B, N, dim), out.shape
    err32 = float(jnp.max(jnp.abs(out - ref)))
    assert jnp.allclose(out, ref, atol=2e-4, rtol=2e-4), f"f32 mismatch: {err32}"

    # bf16 MXU operands (perf path on v5e/v6e/v7x), f32 accumulation + f32 softmax:
    # checked against the f32 reference with a correspondingly relaxed tolerance.
    out_bf16 = jax.block_until_ready(
        multi_head_attention(x, w_qkv, w_out, b_out, heads=heads, dim_head=dim_head,
                             matmul_dtype=jnp.bfloat16))
    err16 = float(jnp.max(jnp.abs(out_bf16 - ref)))
    assert jnp.allclose(out_bf16, ref, atol=1.5e-1, rtol=1e-1), f"bf16 mismatch: {err16}"

    print("KERNEL_OK")
</pallas_src>

<mosaic_0001>
module attributes {stable_mosaic.version = 11 : i64} {
  func.func @_mha_kernel(%arg0: i32, %arg1: memref<2x16x32xf32, #tpu.memory_space<vmem>>, %arg2: memref<32x1536xf32, #tpu.memory_space<vmem>>, %arg3: memref<512x32xf32, #tpu.memory_space<vmem>>, %arg4: memref<1x32xf32, #tpu.memory_space<vmem>>, %arg5: memref<2x16x32xf32, #tpu.memory_space<vmem>>) attributes {dimension_semantics = [#tpu.dimension_semantics<parallel>], iteration_bounds = array<i64: 1>, scalar_prefetch = 0 : i64, scratch_operands = 0 : i64, tpu.core_type = #tpu.core_type<tc>, window_params = [{transform_indices = @transform_0, window_bounds = array<i64: 2, 16, 32>}, {pipeline_mode = #tpu.pipeline_mode<synchronous>, transform_indices = @transform_1, window_bounds = array<i64: 32, 1536>}, {pipeline_mode = #tpu.pipeline_mode<synchronous>, transform_indices = @transform_2, window_bounds = array<i64: 512, 32>}, {pipeline_mode = #tpu.pipeline_mode<synchronous>, transform_indices = @transform_3, window_bounds = array<i64: 1, 32>}, {transform_indices = @transform_4, window_bounds = array<i64: 2, 16, 32>}]} {
    %c0 = arith.constant 0 : index
    %c0_0 = arith.constant 0 : index
    %c0_1 = arith.constant 0 : index
    %0 = vector.load %arg1[%c0, %c0_0, %c0_1] : memref<2x16x32xf32, #tpu.memory_space<vmem>>, vector<2x16x32xf32>
    %1 = vector.shape_cast %0 : vector<2x16x32xf32> to vector<32x32xf32>
    %c0_2 = arith.constant 0 : index
    %c0_3 = arith.constant 0 : index
    %2 = vector.load %arg2[%c0_2, %c0_3] : memref<32x1536xf32, #tpu.memory_space<vmem>>, vector<32x1536xf32>
    %cst = arith.constant dense<0.000000e+00> : vector<32x1536xf32>
    %3 = tpu.matmul %1, %2, %cst {dimension_numbers = #tpu.dot_dimension_numbers<[1], [0], [0], [1], [0, 0, 1, 1], [], []>} : vector<32x32xf32>, vector<32x1536xf32>, vector<32x1536xf32> -> vector<32x1536xf32>
    %4 = vector.extract_strided_slice %3 {offsets = [0, 0], sizes = [16, 64], strides = [1, 1]} : vector<32x1536xf32> to vector<16x64xf32>
    %5 = vector.extract_strided_slice %3 {offsets = [0, 512], sizes = [16, 64], strides = [1, 1]} : vector<32x1536xf32> to vector<16x64xf32>
    %6 = vector.extract_strided_slice %3 {offsets = [0, 1024], sizes = [16, 64], strides = [1, 1]} : vector<32x1536xf32> to vector<16x64xf32>
    %cst_4 = arith.constant dense<0.000000e+00> : vector<16x16xf32>
    %7 = tpu.matmul %4, %5, %cst_4 {dimension_numbers = #tpu.dot_dimension_numbers<[1], [1], [0], [0], [0, 0, 1, 0], [], []>} : vector<16x64xf32>, vector<16x64xf32>, vector<16x16xf32> -> vector<16x16xf32>
    %cst_5 = arith.constant 1.250000e-01 : f32
    %8 = vector.broadcast %cst_5 : f32 to vector<16x16xf32>
    %9 = arith.mulf %7, %8 : vector<16x16xf32>
    %cst_6 = arith.constant dense<0xFF800000> : vector<16xf32>
    %10 = vector.multi_reduction <maximumf>, %9, %cst_6 [1] : vector<16x16xf32> to vector<16xf32>
    %11 = vector.shape_cast %10 : vector<16xf32> to vector<16x1xf32>
    %12 = vector.broadcast %11 : vector<16x1xf32> to vector<16x16xf32>
    %13 = arith.subf %9, %12 : vector<16x16xf32>
    %14 = math.exp %13 : vector<16x16xf32>
    %cst_7 = arith.constant dense<0.000000e+00> : vector<16xf32>
    %15 = vector.multi_reduction <add>, %14, %cst_7 [1] : vector<16x16xf32> to vector<16xf32>
    %16 = vector.shape_cast %15 : vector<16xf32> to vector<16x1xf32>
    %17 = tpu.reciprocal %16 : vector<16x1xf32> -> vector<16x1xf32>
    %18 = vector.broadcast %17 : vector<16x1xf32> to vector<16x16xf32>
    %19 = arith.mulf %14, %18 : vector<16x16xf32>
    %cst_8 = arith.constant dense<0.000000e+00> : vector<16x64xf32>
    %20 = tpu.matmul %19, %6, %cst_8 {dimension_numbers = #tpu.dot_dimension_numbers<[1], [0], [0], [1], [0, 0, 1, 1], [], []>} : vector<16x16xf32>, vector<16x64xf32>, vector<16x64xf32> -> vector<16x64xf32>
    %21 = vector.extract_strided_slice %3 {offsets = [0, 64], sizes = [16, 64], strides = [1, 1]} : vector<32x1536xf32> to vector<16x64xf32>
    %22 = vector.extract_strided_slice %3 {offsets = [0, 576], sizes = [16, 64], strides = [1, 1]} : vector<32x1536xf32> to vector<16x64xf32>
    %23 = vector.extract_strided_slice %3 {offsets = [0, 1088], sizes = [16, 64], strides = [1, 1]} : vector<32x1536xf32> to vector<16x64xf32>
    %cst_9 = arith.constant dense<0.000000e+00> : vector<16x16xf32>
    %24 = tpu.matmul %21, %22, %cst_9 {dimension_numbers = #tpu.dot_dimension_numbers<[1], [1], [0], [0], [0, 0, 1, 0], [], []>} : vector<16x64xf32>, vector<16x64xf32>, vector<16x16xf32> -> vector<16x16xf32>
    %cst_10 = arith.constant 1.250000e-01 : f32
    %25 = vector.broadcast %cst_10 : f32 to vector<16x16xf32>
    %26 = arith.mulf %24, %25 : vector<16x16xf32>
    %cst_11 = arith.constant dense<0xFF800000> : vector<16xf32>
    %27 = vector.multi_reduction <maximumf>, %26, %cst_11 [1] : vector<16x16xf32> to vector<16xf32>
    %28 = vector.shape_cast %27 : vector<16xf32> to vector<16x1xf32>
    %29 = vector.broadcast %28 : vector<16x1xf32> to vector<16x16xf32>
    %30 = arith.subf %26, %29 : vector<16x16xf32>
    %31 = math.exp %30 : vector<16x16xf32>
    %cst_12 = arith.constant dense<0.000000e+00> : vector<16xf32>
    %32 = vector.multi_reduction <add>, %31, %cst_12 [1] : vector<16x16xf32> to vector<16xf32>
    %33 = vector.shape_cast %32 : vector<16xf32> to vector<16x1xf32>
    %34 = tpu.reciprocal %33 : vector<16x1xf32> -> vector<16x1xf32>
    %35 = vector.broadcast %34 : vector<16x1xf32> to vector<16x16xf32>
    %36 = arith.mulf %31, %35 : vector<16x16xf32>
    %cst_13 = arith.constant dense<0.000000e+00> : vector<16x64xf32>
    %37 = tpu.matmul %36, %23, %cst_13 {dimension_numbers = #tpu.dot_dimension_numbers<[1], [0], [0], [1], [0, 0, 1, 1], [], []>} : vector<16x16xf32>, vector<16x64xf32>, vector<16x64xf32> -> vector<16x64xf32>
    %38 = vector.extract_strided_slice %3 {offsets = [0, 128], sizes = [16, 64], strides = [1, 1]} : vector<32x1536xf32> to vector<16x64xf32>
    %39 = vector.extract_strided_slice %3 {offsets = [0, 640], sizes = [16, 64], strides = [1, 1]} : vector<32x1536xf32> to vector<16x64xf32>
    %40 = vector.extract_strided_slice %3 {offsets = [0, 1152], sizes = [16, 64], strides = [1, 1]} : vector<32x1536xf32> to vector<16x64xf32>
    %cst_14 = arith.constant dense<0.000000e+00> : vector<16x16xf32>
    %41 = tpu.matmul %38, %39, %cst_14 {dimension_numbers = #tpu.dot_dimension_numbers<[1], [1], [0], [0], [0, 0, 1, 0], [], []>} : vector<16x64xf32>, vector<16x64xf32>, vector<16x16xf32> -> vector<16x16xf32>
    %cst_15 = arith.constant 1.250000e-01 : f32
    %42 = vector.broadcast %cst_15 : f32 to vector<16x16xf32>
    %43 = arith.mulf %41, %42 : vector<16x16xf32>
    %cst_16 = arith.constant dense<0xFF800000> : vector<16xf32>
    %44 = vector.multi_reduction <maximumf>, %43, %cst_16 [1] : vector<16x16xf32> to vector<16xf32>
    %45 = vector.shape_cast %44 : vector<16xf32> to vector<16x1xf32>
    %46 = vector.broadcast %45 : vector<16x1xf32> to vector<16x16xf32>
    %47 = arith.subf %43, %46 : vector<16x16xf32>
    %48 = math.exp %47 : vector<16x16xf32>
    %cst_17 = arith.constant dense<0.000000e+00> : vector<16xf32>
    %49 = vector.multi_reduction <add>, %48, %cst_17 [1] : vector<16x16xf32> to vector<16xf32>
    %50 = vector.shape_cast %49 : vector<16xf32> to vector<16x1xf32>
    %51 = tpu.reciprocal %50 : vector<16x1xf32> -> vector<16x1xf32>
    %52 = vector.broadcast %51 : vector<16x1xf32> to vector<16x16xf32>
    %53 = arith.mulf %48, %52 : vector<16x16xf32>
    %cst_18 = arith.constant dense<0.000000e+00> : vector<16x64xf32>
    %54 = tpu.matmul %53, %40, %cst_18 {dimension_numbers = #tpu.dot_dimension_numbers<[1], [0], [0], [1], [0, 0, 1, 1], [], []>} : vector<16x16xf32>, vector<16x64xf32>, vector<16x64xf32> -> vector<16x64xf32>
    %55 = vector.extract_strided_slice %3 {offsets = [0, 192], sizes = [16, 64], strides = [1, 1]} : vector<32x1536xf32> to vector<16x64xf32>
    %56 = vector.extract_strided_slice %3 {offsets = [0, 704], sizes = [16, 64], strides = [1, 1]} : vector<32x1536xf32> to vector<16x64xf32>
    %57 = vector.extract_strided_slice %3 {offsets = [0, 1216], sizes = [16, 64], strides = [1, 1]} : vector<32x1536xf32> to vector<16x64xf32>
    %cst_19 = arith.constant dense<0.000000e+00> : vector<16x16xf32>
    %58 = tpu.matmul %55, %56, %cst_19 {dimension_numbers = #tpu.dot_dimension_numbers<[1], [1], [0], [0], [0, 0, 1, 0], [], []>} : vector<16x64xf32>, vector<16x64xf32>, vector<16x16xf32> -> vector<16x16xf32>
    %cst_20 = arith.constant 1.250000e-01 : f32
    %59 = vector.broadcast %cst_20 : f32 to vector<16x16xf32>
    %60 = arith.mulf %58, %59 : vector<16x16xf32>
    %cst_21 = arith.constant dense<0xFF800000> : vector<16xf32>
    %61 = vector.multi_reduction <maximumf>, %60, %cst_21 [1] : vector<16x16xf32> to vector<16xf32>
    %62 = vector.shape_cast %61 : vector<16xf32> to vector<16x1xf32>
    %63 = vector.broadcast %62 : vector<16x1xf32> to vector<16x16xf32>
    %64 = arith.subf %60, %63 : vector<16x16xf32>
    %65 = math.exp %64 : vector<16x16xf32>
    %cst_22 = arith.constant dense<0.000000e+00> : vector<16xf32>
    %66 = vector.multi_reduction <add>, %65, %cst_22 [1] : vector<16x16xf32> to vector<16xf32>
    %67 = vector.shape_cast %66 : vector<16xf32> to vector<16x1xf32>
    %68 = tpu.reciprocal %67 : vector<16x1xf32> -> vector<16x1xf32>
    %69 = vector.broadcast %68 : vector<16x1xf32> to vector<16x16xf32>
    %70 = arith.mulf %65, %69 : vector<16x16xf32>
    %cst_23 = arith.constant dense<0.000000e+00> : vector<16x64xf32>
    %71 = tpu.matmul %70, %57, %cst_23 {dimension_numbers = #tpu.dot_dimension_numbers<[1], [0], [0], [1], [0, 0, 1, 1], [], []>} : vector<16x16xf32>, vector<16x64xf32>, vector<16x64xf32> -> vector<16x64xf32>
    %72 = vector.extract_strided_slice %3 {offsets = [0, 256], sizes = [16, 64], strides = [1, 1]} : vector<32x1536xf32> to vector<16x64xf32>
    %73 = vector.extract_strided_slice %3 {offsets = [0, 768], sizes = [16, 64], strides = [1, 1]} : vector<32x1536xf32> to vector<16x64xf32>
    %74 = vector.extract_strided_slice %3 {offsets = [0, 1280], sizes = [16, 64], strides = [1, 1]} : vector<32x1536xf32> to vector<16x64xf32>
    %cst_24 = arith.constant dense<0.000000e+00> : vector<16x16xf32>
    %75 = tpu.matmul %72, %73, %cst_24 {dimension_numbers = #tpu.dot_dimension_numbers<[1], [1], [0], [0], [0, 0, 1, 0], [], []>} : vector<16x64xf32>, vector<16x64xf32>, vector<16x16xf32> -> vector<16x16xf32>
    %cst_25 = arith.constant 1.250000e-01 : f32
    %76 = vector.broadcast %cst_25 : f32 to vector<16x16xf32>
    %77 = arith.mulf %75, %76 : vector<16x16xf32>
    %cst_26 = arith.constant dense<0xFF800000> : vector<16xf32>
    %78 = vector.multi_reduction <maximumf>, %77, %cst_26 [1] : vector<16x16xf32> to vector<16xf32>
    %79 = vector.shape_cast %78 : vector<16xf32> to vector<16x1xf32>
    %80 = vector.broadcast %79 : vector<16x1xf32> to vector<16x16xf32>
    %81 = arith.subf %77, %80 : vector<16x16xf32>
    %82 = math.exp %81 : vector<16x16xf32>
    %cst_27 = arith.constant dense<0.000000e+00> : vector<16xf32>
    %83 = vector.multi_reduction <add>, %82, %cst_27 [1] : vector<16x16xf32> to vector<16xf32>
    %84 = vector.shape_cast %83 : vector<16xf32> to vector<16x1xf32>
    %85 = tpu.reciprocal %84 : vector<16x1xf32> -> vector<16x1xf32>
    %86 = vector.broadcast %85 : vector<16x1xf32> to vector<16x16xf32>
    %87 = arith.mulf %82, %86 : vector<16x16xf32>
    %cst_28 = arith.constant dense<0.000000e+00> : vector<16x64xf32>
    %88 = tpu.matmul %87, %74, %cst_28 {dimension_numbers = #tpu.dot_dimension_numbers<[1], [0], [0], [1], [0, 0, 1, 1], [], []>} : vector<16x16xf32>, vector<16x64xf32>, vector<16x64xf32> -> vector<16x64xf32>
    %89 = vector.extract_strided_slice %3 {offsets = [0, 320], sizes = [16, 64], strides = [1, 1]} : vector<32x1536xf32> to vector<16x64xf32>
    %90 = vector.extract_strided_slice %3 {offsets = [0, 832], sizes = [16, 64], strides = [1, 1]} : vector<32x1536xf32> to vector<16x64xf32>
    %91 = vector.extract_strided_slice %3 {offsets = [0, 1344], sizes = [16, 64], strides = [1, 1]} : vector<32x1536xf32> to vector<16x64xf32>
    %cst_29 = arith.constant dense<0.000000e+00> : vector<16x16xf32>
    %92 = tpu.matmul %89, %90, %cst_29 {dimension_numbers = #tpu.dot_dimension_numbers<[1], [1], [0], [0], [0, 0, 1, 0], [], []>} : vector<16x64xf32>, vector<16x64xf32>, vector<16x16xf32> -> vector<16x16xf32>
    %cst_30 = arith.constant 1.250000e-01 : f32
    %93 = vector.broadcast %cst_30 : f32 to vector<16x16xf32>
    %94 = arith.mulf %92, %93 : vector<16x16xf32>
    %cst_31 = arith.constant dense<0xFF800000> : vector<16xf32>
    %95 = vector.multi_reduction <maximumf>, %94, %cst_31 [1] : vector<16x16xf32> to vector<16xf32>
    %96 = vector.shape_cast %95 : vector<16xf32> to vector<16x1xf32>
    %97 = vector.broadcast %96 : vector<16x1xf32> to vector<16x16xf32>
    %98 = arith.subf %94, %97 : vector<16x16xf32>
    %99 = math.exp %98 : vector<16x16xf32>
    %cst_32 = arith.constant dense<0.000000e+00> : vector<16xf32>
    %100 = vector.multi_reduction <add>, %99, %cst_32 [1] : vector<16x16xf32> to vector<16xf32>
    %101 = vector.shape_cast %100 : vector<16xf32> to vector<16x1xf32>
    %102 = tpu.reciprocal %101 : vector<16x1xf32> -> vector<16x1xf32>
    %103 = vector.broadcast %102 : vector<16x1xf32> to vector<16x16xf32>
    %104 = arith.mulf %99, %103 : vector<16x16xf32>
    %cst_33 = arith.constant dense<0.000000e+00> : vector<16x64xf32>
    %105 = tpu.matmul %104, %91, %cst_33 {dimension_numbers = #tpu.dot_dimension_numbers<[1], [0], [0], [1], [0, 0, 1, 1], [], []>} : vector<16x16xf32>, vector<16x64xf32>, vector<16x64xf32> -> vector<16x64xf32>
    %106 = vector.extract_strided_slice %3 {offsets = [0, 384], sizes = [16, 64], strides = [1, 1]} : vector<32x1536xf32> to vector<16x64xf32>
    %107 = vector.extract_strided_slice %3 {offsets = [0, 896], sizes = [16, 64], strides = [1, 1]} : vector<32x1536xf32> to vector<16x64xf32>
    %108 = vector.extract_strided_slice %3 {offsets = [0, 1408], sizes = [16, 64], strides = [1, 1]} : vector<32x1536xf32> to vector<16x64xf32>
    %cst_34 = arith.constant dense<0.000000e+00> : vector<16x16xf32>
    %109 = tpu.matmul %106, %107, %cst_34 {dimension_numbers = #tpu.dot_dimension_numbers<[1], [1], [0], [0], [0, 0, 1, 0], [], []>} : vector<16x64xf32>, vector<16x64xf32>, vector<16x16xf32> -> vector<16x16xf32>
    %cst_35 = arith.constant 1.250000e-01 : f32
    %110 = vector.broadcast %cst_35 : f32 to vector<16x16xf32>
    %111 = arith.mulf %109, %110 : vector<16x16xf32>
    %cst_36 = arith.constant dense<0xFF800000> : vector<16xf32>
    %112 = vector.multi_reduction <maximumf>, %111, %cst_36 [1] : vector<16x16xf32> to vector<16xf32>
    %113 = vector.shape_cast %112 : vector<16xf32> to vector<16x1xf32>
    %114 = vector.broadcast %113 : vector<16x1xf32> to vector<16x16xf32>
    %115 = arith.subf %111, %114 : vector<16x16xf32>
    %116 = math.exp %115 : vector<16x16xf32>
    %cst_37 = arith.constant dense<0.000000e+00> : vector<16xf32>
    %117 = vector.multi_reduction <add>, %116, %cst_37 [1] : vector<16x16xf32> to vector<16xf32>
    %118 = vector.shape_cast %117 : vector<16xf32> to vector<16x1xf32>
    %119 = tpu.reciprocal %118 : vector<16x1xf32> -> vector<16x1xf32>
    %120 = vector.broadcast %119 : vector<16x1xf32> to vector<16x16xf32>
    %121 = arith.mulf %116, %120 : vector<16x16xf32>
    %cst_38 = arith.constant dense<0.000000e+00> : vector<16x64xf32>
    %122 = tpu.matmul %121, %108, %cst_38 {dimension_numbers = #tpu.dot_dimension_numbers<[1], [0], [0], [1], [0, 0, 1, 1], [], []>} : vector<16x16xf32>, vector<16x64xf32>, vector<16x64xf32> -> vector<16x64xf32>
    %123 = vector.extract_strided_slice %3 {offsets = [0, 448], sizes = [16, 64], strides = [1, 1]} : vector<32x1536xf32> to vector<16x64xf32>
    %124 = vector.extract_strided_slice %3 {offsets = [0, 960], sizes = [16, 64], strides = [1, 1]} : vector<32x1536xf32> to vector<16x64xf32>
    %125 = vector.extract_strided_slice %3 {offsets = [0, 1472], sizes = [16, 64], strides = [1, 1]} : vector<32x1536xf32> to vector<16x64xf32>
    %cst_39 = arith.constant dense<0.000000e+00> : vector<16x16xf32>
    %126 = tpu.matmul %123, %124, %cst_39 {dimension_numbers = #tpu.dot_dimension_numbers<[1], [1], [0], [0], [0, 0, 1, 0], [], []>} : vector<16x64xf32>, vector<16x64xf32>, vector<16x16xf32> -> vector<16x16xf32>
    %cst_40 = arith.constant 1.250000e-01 : f32
    %127 = vector.broadcast %cst_40 : f32 to vector<16x16xf32>
    %128 = arith.mulf %126, %127 : vector<16x16xf32>
    %cst_41 = arith.constant dense<0xFF800000> : vector<16xf32>
    %129 = vector.multi_reduction <maximumf>, %128, %cst_41 [1] : vector<16x16xf32> to vector<16xf32>
    %130 = vector.shape_cast %129 : vector<16xf32> to vector<16x1xf32>
    %131 = vector.broadcast %130 : vector<16x1xf32> to vector<16x16xf32>
    %132 = arith.subf %128, %131 : vector<16x16xf32>
    %133 = math.exp %132 : vector<16x16xf32>
    %cst_42 = arith.constant dense<0.000000e+00> : vector<16xf32>
    %134 = vector.multi_reduction <add>, %133, %cst_42 [1] : vector<16x16xf32> to vector<16xf32>
    %135 = vector.shape_cast %134 : vector<16xf32> to vector<16x1xf32>
    %136 = tpu.reciprocal %135 : vector<16x1xf32> -> vector<16x1xf32>
    %137 = vector.broadcast %136 : vector<16x1xf32> to vector<16x16xf32>
    %138 = arith.mulf %133, %137 : vector<16x16xf32>
    %cst_43 = arith.constant dense<0.000000e+00> : vector<16x64xf32>
    %139 = tpu.matmul %138, %125, %cst_43 {dimension_numbers = #tpu.dot_dimension_numbers<[1], [0], [0], [1], [0, 0, 1, 1], [], []>} : vector<16x16xf32>, vector<16x64xf32>, vector<16x64xf32> -> vector<16x64xf32>
    %140 = tpu.concatenate %20, %37, %54, %71, %88, %105, %122, %139 in 1 : vector<16x64xf32>, vector<16x64xf32>, vector<16x64xf32>, vector<16x64xf32>, vector<16x64xf32>, vector<16x64xf32>, vector<16x64xf32>, vector<16x64xf32> -> vector<16x512xf32>
    %141 = vector.extract_strided_slice %3 {offsets = [16, 0], sizes = [16, 64], strides = [1, 1]} : vector<32x1536xf32> to vector<16x64xf32>
    %142 = vector.extract_strided_slice %3 {offsets = [16, 512], sizes = [16, 64], strides = [1, 1]} : vector<32x1536xf32> to vector<16x64xf32>
    %143 = vector.extract_strided_slice %3 {offsets = [16, 1024], sizes = [16, 64], strides = [1, 1]} : vector<32x1536xf32> to vector<16x64xf32>
    %cst_44 = arith.constant dense<0.000000e+00> : vector<16x16xf32>
    %144 = tpu.matmul %141, %142, %cst_44 {dimension_numbers = #tpu.dot_dimension_numbers<[1], [1], [0], [0], [0, 0, 1, 0], [], []>} : vector<16x64xf32>, vector<16x64xf32>, vector<16x16xf32> -> vector<16x16xf32>
    %cst_45 = arith.constant 1.250000e-01 : f32
    %145 = vector.broadcast %cst_45 : f32 to vector<16x16xf32>
    %146 = arith.mulf %144, %145 : vector<16x16xf32>
    %cst_46 = arith.constant dense<0xFF800000> : vector<16xf32>
    %147 = vector.multi_reduction <maximumf>, %146, %cst_46 [1] : vector<16x16xf32> to vector<16xf32>
    %148 = vector.shape_cast %147 : vector<16xf32> to vector<16x1xf32>
    %149 = vector.broadcast %148 : vector<16x1xf32> to vector<16x16xf32>
    %150 = arith.subf %146, %149 : vector<16x16xf32>
    %151 = math.exp %150 : vector<16x16xf32>
    %cst_47 = arith.constant dense<0.000000e+00> : vector<16xf32>
    %152 = vector.multi_reduction <add>, %151, %cst_47 [1] : vector<16x16xf32> to vector<16xf32>
    %153 = vector.shape_cast %152 : vector<16xf32> to vector<16x1xf32>
    %154 = tpu.reciprocal %153 : vector<16x1xf32> -> vector<16x1xf32>
    %155 = vector.broadcast %154 : vector<16x1xf32> to vector<16x16xf32>
    %156 = arith.mulf %151, %155 : vector<16x16xf32>
    %cst_48 = arith.constant dense<0.000000e+00> : vector<16x64xf32>
    %157 = tpu.matmul %156, %143, %cst_48 {dimension_numbers = #tpu.dot_dimension_numbers<[1], [0], [0], [1], [0, 0, 1, 1], [], []>} : vector<16x16xf32>, vector<16x64xf32>, vector<16x64xf32> -> vector<16x64xf32>
    %158 = vector.extract_strided_slice %3 {offsets = [16, 64], sizes = [16, 64], strides = [1, 1]} : vector<32x1536xf32> to vector<16x64xf32>
    %159 = vector.extract_strided_slice %3 {offsets = [16, 576], sizes = [16, 64], strides = [1, 1]} : vector<32x1536xf32> to vector<16x64xf32>
    %160 = vector.extract_strided_slice %3 {offsets = [16, 1088], sizes = [16, 64], strides = [1, 1]} : vector<32x1536xf32> to vector<16x64xf32>
    %cst_49 = arith.constant dense<0.000000e+00> : vector<16x16xf32>
    %161 = tpu.matmul %158, %159, %cst_49 {dimension_numbers = #tpu.dot_dimension_numbers<[1], [1], [0], [0], [0, 0, 1, 0], [], []>} : vector<16x64xf32>, vector<16x64xf32>, vector<16x16xf32> -> vector<16x16xf32>
    %cst_50 = arith.constant 1.250000e-01 : f32
    %162 = vector.broadcast %cst_50 : f32 to vector<16x16xf32>
    %163 = arith.mulf %161, %162 : vector<16x16xf32>
    %cst_51 = arith.constant dense<0xFF800000> : vector<16xf32>
    %164 = vector.multi_reduction <maximumf>, %163, %cst_51 [1] : vector<16x16xf32> to vector<16xf32>
    %165 = vector.shape_cast %164 : vector<16xf32> to vector<16x1xf32>
    %166 = vector.broadcast %165 : vector<16x1xf32> to vector<16x16xf32>
    %167 = arith.subf %163, %166 : vector<16x16xf32>
    %168 = math.exp %167 : vector<16x16xf32>
    %cst_52 = arith.constant dense<0.000000e+00> : vector<16xf32>
    %169 = vector.multi_reduction <add>, %168, %cst_52 [1] : vector<16x16xf32> to vector<16xf32>
    %170 = vector.shape_cast %169 : vector<16xf32> to vector<16x1xf32>
    %171 = tpu.reciprocal %170 : vector<16x1xf32> -> vector<16x1xf32>
    %172 = vector.broadcast %171 : vector<16x1xf32> to vector<16x16xf32>
    %173 = arith.mulf %168, %172 : vector<16x16xf32>
    %cst_53 = arith.constant dense<0.000000e+00> : vector<16x64xf32>
    %174 = tpu.matmul %173, %160, %cst_53 {dimension_numbers = #tpu.dot_dimension_numbers<[1], [0], [0], [1], [0, 0, 1, 1], [], []>} : vector<16x16xf32>, vector<16x64xf32>, vector<16x64xf32> -> vector<16x64xf32>
    %175 = vector.extract_strided_slice %3 {offsets = [16, 128], sizes = [16, 64], strides = [1, 1]} : vector<32x1536xf32> to vector<16x64xf32>
    %176 = vector.extract_strided_slice %3 {offsets = [16, 640], sizes = [16, 64], strides = [1, 1]} : vector<32x1536xf32> to vector<16x64xf32>
    %177 = vector.extract_strided_slice %3 {offsets = [16, 1152], sizes = [16, 64], strides = [1, 1]} : vector<32x1536xf32> to vector<16x64xf32>
    %cst_54 = arith.constant dense<0.000000e+00> : vector<16x16xf32>
    %178 = tpu.matmul %175, %176, %cst_54 {dimension_numbers = #tpu.dot_dimension_numbers<[1], [1], [0], [0], [0, 0, 1, 0], [], []>} : vector<16x64xf32>, vector<16x64xf32>, vector<16x16xf32> -> vector<16x16xf32>
    %cst_55 = arith.constant 1.250000e-01 : f32
    %179 = vector.broadcast %cst_55 : f32 to vector<16x16xf32>
    %180 = arith.mulf %178, %179 : vector<16x16xf32>
    %cst_56 = arith.constant dense<0xFF800000> : vector<16xf32>
    %181 = vector.multi_reduction <maximumf>, %180, %cst_56 [1] : vector<16x16xf32> to vector<16xf32>
    %182 = vector.shape_cast %181 : vector<16xf32> to vector<16x1xf32>
    %183 = vector.broadcast %182 : vector<16x1xf32> to vector<16x16xf32>
    %184 = arith.subf %180, %183 : vector<16x16xf32>
    %185 = math.exp %184 : vector<16x16xf32>
    %cst_57 = arith.constant dense<0.000000e+00> : vector<16xf32>
    %186 = vector.multi_reduction <add>, %185, %cst_57 [1] : vector<16x16xf32> to vector<16xf32>
    %187 = vector.shape_cast %186 : vector<16xf32> to vector<16x1xf32>
    %188 = tpu.reciprocal %187 : vector<16x1xf32> -> vector<16x1xf32>
    %189 = vector.broadcast %188 : vector<16x1xf32> to vector<16x16xf32>
    %190 = arith.mulf %185, %189 : vector<16x16xf32>
    %cst_58 = arith.constant dense<0.000000e+00> : vector<16x64xf32>
    %191 = tpu.matmul %190, %177, %cst_58 {dimension_numbers = #tpu.dot_dimension_numbers<[1], [0], [0], [1], [0, 0, 1, 1], [], []>} : vector<16x16xf32>, vector<16x64xf32>, vector<16x64xf32> -> vector<16x64xf32>
    %192 = vector.extract_strided_slice %3 {offsets = [16, 192], sizes = [16, 64], strides = [1, 1]} : vector<32x1536xf32> to vector<16x64xf32>
    %193 = vector.extract_strided_slice %3 {offsets = [16, 704], sizes = [16, 64], strides = [1, 1]} : vector<32x1536xf32> to vector<16x64xf32>
    %194 = vector.extract_strided_slice %3 {offsets = [16, 1216], sizes = [16, 64], strides = [1, 1]} : vector<32x1536xf32> to vector<16x64xf32>
    %cst_59 = arith.constant dense<0.000000e+00> : vector<16x16xf32>
    %195 = tpu.matmul %192, %193, %cst_59 {dimension_numbers = #tpu.dot_dimension_numbers<[1], [1], [0], [0], [0, 0, 1, 0], [], []>} : vector<16x64xf32>, vector<16x64xf32>, vector<16x16xf32> -> vector<16x16xf32>
    %cst_60 = arith.constant 1.250000e-01 : f32
    %196 = vector.broadcast %cst_60 : f32 to vector<16x16xf32>
    %197 = arith.mulf %195, %196 : vector<16x16xf32>
    %cst_61 = arith.constant dense<0xFF800000> : vector<16xf32>
    %198 = vector.multi_reduction <maximumf>, %197, %cst_61 [1] : vector<16x16xf32> to vector<16xf32>
    %199 = vector.shape_cast %198 : vector<16xf32> to vector<16x1xf32>
    %200 = vector.broadcast %199 : vector<16x1xf32> to vector<16x16xf32>
    %201 = arith.subf %197, %200 : vector<16x16xf32>
    %202 = math.exp %201 : vector<16x16xf32>
    %cst_62 = arith.constant dense<0.000000e+00> : vector<16xf32>
    %203 = vector.multi_reduction <add>, %202, %cst_62 [1] : vector<16x16xf32> to vector<16xf32>
    %204 = vector.shape_cast %203 : vector<16xf32> to vector<16x1xf32>
    %205 = tpu.reciprocal %204 : vector<16x1xf32> -> vector<16x1xf32>
    %206 = vector.broadcast %205 : vector<16x1xf32> to vector<16x16xf32>
    %207 = arith.mulf %202, %206 : vector<16x16xf32>
    %cst_63 = arith.constant dense<0.000000e+00> : vector<16x64xf32>
    %208 = tpu.matmul %207, %194, %cst_63 {dimension_numbers = #tpu.dot_dimension_numbers<[1], [0], [0], [1], [0, 0, 1, 1], [], []>} : vector<16x16xf32>, vector<16x64xf32>, vector<16x64xf32> -> vector<16x64xf32>
    %209 = vector.extract_strided_slice %3 {offsets = [16, 256], sizes = [16, 64], strides = [1, 1]} : vector<32x1536xf32> to vector<16x64xf32>
    %210 = vector.extract_strided_slice %3 {offsets = [16, 768], sizes = [16, 64], strides = [1, 1]} : vector<32x1536xf32> to vector<16x64xf32>
    %211 = vector.extract_strided_slice %3 {offsets = [16, 1280], sizes = [16, 64], strides = [1, 1]} : vector<32x1536xf32> to vector<16x64xf32>
    %cst_64 = arith.constant dense<0.000000e+00> : vector<16x16xf32>
    %212 = tpu.matmul %209, %210, %cst_64 {dimension_numbers = #tpu.dot_dimension_numbers<[1], [1], [0], [0], [0, 0, 1, 0], [], []>} : vector<16x64xf32>, vector<16x64xf32>, vector<16x16xf32> -> vector<16x16xf32>
    %cst_65 = arith.constant 1.250000e-01 : f32
    %213 = vector.broadcast %cst_65 : f32 to vector<16x16xf32>
    %214 = arith.mulf %212, %213 : vector<16x16xf32>
    %cst_66 = arith.constant dense<0xFF800000> : vector<16xf32>
    %215 = vector.multi_reduction <maximumf>, %214, %cst_66 [1] : vector<16x16xf32> to vector<16xf32>
    %216 = vector.shape_cast %215 : vector<16xf32> to vector<16x1xf32>
    %217 = vector.broadcast %216 : vector<16x1xf32> to vector<16x16xf32>
    %218 = arith.subf %214, %217 : vector<16x16xf32>
    %219 = math.exp %218 : vector<16x16xf32>
    %cst_67 = arith.constant dense<0.000000e+00> : vector<16xf32>
    %220 = vector.multi_reduction <add>, %219, %cst_67 [1] : vector<16x16xf32> to vector<16xf32>
    %221 = vector.shape_cast %220 : vector<16xf32> to vector<16x1xf32>
    %222 = tpu.reciprocal %221 : vector<16x1xf32> -> vector<16x1xf32>
    %223 = vector.broadcast %222 : vector<16x1xf32> to vector<16x16xf32>
    %224 = arith.mulf %219, %223 : vector<16x16xf32>
    %cst_68 = arith.constant dense<0.000000e+00> : vector<16x64xf32>
    %225 = tpu.matmul %224, %211, %cst_68 {dimension_numbers = #tpu.dot_dimension_numbers<[1], [0], [0], [1], [0, 0, 1, 1], [], []>} : vector<16x16xf32>, vector<16x64xf32>, vector<16x64xf32> -> vector<16x64xf32>
    %226 = vector.extract_strided_slice %3 {offsets = [16, 320], sizes = [16, 64], strides = [1, 1]} : vector<32x1536xf32> to vector<16x64xf32>
    %227 = vector.extract_strided_slice %3 {offsets = [16, 832], sizes = [16, 64], strides = [1, 1]} : vector<32x1536xf32> to vector<16x64xf32>
    %228 = vector.extract_strided_slice %3 {offsets = [16, 1344], sizes = [16, 64], strides = [1, 1]} : vector<32x1536xf32> to vector<16x64xf32>
    %cst_69 = arith.constant dense<0.000000e+00> : vector<16x16xf32>
    %229 = tpu.matmul %226, %227, %cst_69 {dimension_numbers = #tpu.dot_dimension_numbers<[1], [1], [0], [0], [0, 0, 1, 0], [], []>} : vector<16x64xf32>, vector<16x64xf32>, vector<16x16xf32> -> vector<16x16xf32>
    %cst_70 = arith.constant 1.250000e-01 : f32
    %230 = vector.broadcast %cst_70 : f32 to vector<16x16xf32>
    %231 = arith.mulf %229, %230 : vector<16x16xf32>
    %cst_71 = arith.constant dense<0xFF800000> : vector<16xf32>
    %232 = vector.multi_reduction <maximumf>, %231, %cst_71 [1] : vector<16x16xf32> to vector<16xf32>
    %233 = vector.shape_cast %232 : vector<16xf32> to vector<16x1xf32>
    %234 = vector.broadcast %233 : vector<16x1xf32> to vector<16x16xf32>
    %235 = arith.subf %231, %234 : vector<16x16xf32>
    %236 = math.exp %235 : vector<16x16xf32>
    %cst_72 = arith.constant dense<0.000000e+00> : vector<16xf32>
    %237 = vector.multi_reduction <add>, %236, %cst_72 [1] : vector<16x16xf32> to vector<16xf32>
    %238 = vector.shape_cast %237 : vector<16xf32> to vector<16x1xf32>
    %239 = tpu.reciprocal %238 : vector<16x1xf32> -> vector<16x1xf32>
    %240 = vector.broadcast %239 : vector<16x1xf32> to vector<16x16xf32>
    %241 = arith.mulf %236, %240 : vector<16x16xf32>
    %cst_73 = arith.constant dense<0.000000e+00> : vector<16x64xf32>
    %242 = tpu.matmul %241, %228, %cst_73 {dimension_numbers = #tpu.dot_dimension_numbers<[1], [0], [0], [1], [0, 0, 1, 1], [], []>} : vector<16x16xf32>, vector<16x64xf32>, vector<16x64xf32> -> vector<16x64xf32>
    %243 = vector.extract_strided_slice %3 {offsets = [16, 384], sizes = [16, 64], strides = [1, 1]} : vector<32x1536xf32> to vector<16x64xf32>
    %244 = vector.extract_strided_slice %3 {offsets = [16, 896], sizes = [16, 64], strides = [1, 1]} : vector<32x1536xf32> to vector<16x64xf32>
    %245 = vector.extract_strided_slice %3 {offsets = [16, 1408], sizes = [16, 64], strides = [1, 1]} : vector<32x1536xf32> to vector<16x64xf32>
    %cst_74 = arith.constant dense<0.000000e+00> : vector<16x16xf32>
    %246 = tpu.matmul %243, %244, %cst_74 {dimension_numbers = #tpu.dot_dimension_numbers<[1], [1], [0], [0], [0, 0, 1, 0], [], []>} : vector<16x64xf32>, vector<16x64xf32>, vector<16x16xf32> -> vector<16x16xf32>
    %cst_75 = arith.constant 1.250000e-01 : f32
    %247 = vector.broadcast %cst_75 : f32 to vector<16x16xf32>
    %248 = arith.mulf %246, %247 : vector<16x16xf32>
    %cst_76 = arith.constant dense<0xFF800000> : vector<16xf32>
    %249 = vector.multi_reduction <maximumf>, %248, %cst_76 [1] : vector<16x16xf32> to vector<16xf32>
    %250 = vector.shape_cast %249 : vector<16xf32> to vector<16x1xf32>
    %251 = vector.broadcast %250 : vector<16x1xf32> to vector<16x16xf32>
    %252 = arith.subf %248, %251 : vector<16x16xf32>
    %253 = math.exp %252 : vector<16x16xf32>
    %cst_77 = arith.constant dense<0.000000e+00> : vector<16xf32>
    %254 = vector.multi_reduction <add>, %253, %cst_77 [1] : vector<16x16xf32> to vector<16xf32>
    %255 = vector.shape_cast %254 : vector<16xf32> to vector<16x1xf32>
    %256 = tpu.reciprocal %255 : vector<16x1xf32> -> vector<16x1xf32>
    %257 = vector.broadcast %256 : vector<16x1xf32> to vector<16x16xf32>
    %258 = arith.mulf %253, %257 : vector<16x16xf32>
    %cst_78 = arith.constant dense<0.000000e+00> : vector<16x64xf32>
    %259 = tpu.matmul %258, %245, %cst_78 {dimension_numbers = #tpu.dot_dimension_numbers<[1], [0], [0], [1], [0, 0, 1, 1], [], []>} : vector<16x16xf32>, vector<16x64xf32>, vector<16x64xf32> -> vector<16x64xf32>
    %260 = vector.extract_strided_slice %3 {offsets = [16, 448], sizes = [16, 64], strides = [1, 1]} : vector<32x1536xf32> to vector<16x64xf32>
    %261 = vector.extract_strided_slice %3 {offsets = [16, 960], sizes = [16, 64], strides = [1, 1]} : vector<32x1536xf32> to vector<16x64xf32>
    %262 = vector.extract_strided_slice %3 {offsets = [16, 1472], sizes = [16, 64], strides = [1, 1]} : vector<32x1536xf32> to vector<16x64xf32>
    %cst_79 = arith.constant dense<0.000000e+00> : vector<16x16xf32>
    %263 = tpu.matmul %260, %261, %cst_79 {dimension_numbers = #tpu.dot_dimension_numbers<[1], [1], [0], [0], [0, 0, 1, 0], [], []>} : vector<16x64xf32>, vector<16x64xf32>, vector<16x16xf32> -> vector<16x16xf32>
    %cst_80 = arith.constant 1.250000e-01 : f32
    %264 = vector.broadcast %cst_80 : f32 to vector<16x16xf32>
    %265 = arith.mulf %263, %264 : vector<16x16xf32>
    %cst_81 = arith.constant dense<0xFF800000> : vector<16xf32>
    %266 = vector.multi_reduction <maximumf>, %265, %cst_81 [1] : vector<16x16xf32> to vector<16xf32>
    %267 = vector.shape_cast %266 : vector<16xf32> to vector<16x1xf32>
    %268 = vector.broadcast %267 : vector<16x1xf32> to vector<16x16xf32>
    %269 = arith.subf %265, %268 : vector<16x16xf32>
    %270 = math.exp %269 : vector<16x16xf32>
    %cst_82 = arith.constant dense<0.000000e+00> : vector<16xf32>
    %271 = vector.multi_reduction <add>, %270, %cst_82 [1] : vector<16x16xf32> to vector<16xf32>
    %272 = vector.shape_cast %271 : vector<16xf32> to vector<16x1xf32>
    %273 = tpu.reciprocal %272 : vector<16x1xf32> -> vector<16x1xf32>
    %274 = vector.broadcast %273 : vector<16x1xf32> to vector<16x16xf32>
    %275 = arith.mulf %270, %274 : vector<16x16xf32>
    %cst_83 = arith.constant dense<0.000000e+00> : vector<16x64xf32>
    %276 = tpu.matmul %275, %262, %cst_83 {dimension_numbers = #tpu.dot_dimension_numbers<[1], [0], [0], [1], [0, 0, 1, 1], [], []>} : vector<16x16xf32>, vector<16x64xf32>, vector<16x64xf32> -> vector<16x64xf32>
    %277 = tpu.concatenate %157, %174, %191, %208, %225, %242, %259, %276 in 1 : vector<16x64xf32>, vector<16x64xf32>, vector<16x64xf32>, vector<16x64xf32>, vector<16x64xf32>, vector<16x64xf32>, vector<16x64xf32>, vector<16x64xf32> -> vector<16x512xf32>
    %278 = tpu.concatenate %140, %277 in 0 : vector<16x512xf32>, vector<16x512xf32> -> vector<32x512xf32>
    %c0_84 = arith.constant 0 : index
    %c0_85 = arith.constant 0 : index
    %279 = vector.load %arg3[%c0_84, %c0_85] : memref<512x32xf32, #tpu.memory_space<vmem>>, vector<512x32xf32>
    %cst_86 = arith.constant dense<0.000000e+00> : vector<32x32xf32>
    %280 = tpu.matmul %278, %279, %cst_86 {dimension_numbers = #tpu.dot_dimension_numbers<[1], [0], [0], [1], [0, 0, 1, 1], [], []>} : vector<32x512xf32>, vector<512x32xf32>, vector<32x32xf32> -> vector<32x32xf32>
    %c0_87 = arith.constant 0 : index
    %c0_88 = arith.constant 0 : index
    %281 = vector.load %arg4[%c0_87, %c0_88] : memref<1x32xf32, #tpu.memory_space<vmem>>, vector<1x32xf32>
    %282 = vector.broadcast %281 : vector<1x32xf32> to vector<32x32xf32>
    %283 = arith.addf %280, %282 : vector<32x32xf32>
    %284 = vector.shape_cast %283 : vector<32x32xf32> to vector<2x16x32xf32>
    %c0_89 = arith.constant 0 : index
    %c0_90 = arith.constant 0 : index
    %c0_91 = arith.constant 0 : index
    %285 = vector.load %arg5[%c0_89, %c0_90, %c0_91] : memref<2x16x32xf32, #tpu.memory_space<vmem>>, vector<2x16x32xf32>
    tpu.vector_store %arg5[%c0_89, %c0_90, %c0_91], %284 {strides = array<i32>} : memref<2x16x32xf32, #tpu.memory_space<vmem>>, vector<2x16x32xf32>,
    return
  }
  func.func @transform_0(%arg0: i32) -> (i32, i32, i32) {
    %c0_i32 = arith.constant 0 : i32
    %c0_i32_0 = arith.constant 0 : i32
    %c0_i32_1 = arith.constant 0 : i32
    return %arg0, %c0_i32, %c0_i32_0 : i32, i32, i32
  }
  func.func @transform_1(%arg0: i32) -> (i32, i32) {
    %c0_i32 = arith.constant 0 : i32
    %c0_i32_0 = arith.constant 0 : i32
    %c0_i32_1 = arith.constant 0 : i32
    return %c0_i32, %c0_i32_0 : i32, i32
  }
  func.func @transform_2(%arg0: i32) -> (i32, i32) {
    %c0_i32 = arith.constant 0 : i32
    %c0_i32_0 = arith.constant 0 : i32
    %c0_i32_1 = arith.constant 0 : i32
    return %c0_i32, %c0_i32_0 : i32, i32
  }
  func.func @transform_3(%arg0: i32) -> (i32, i32) {
    %c0_i32 = arith.constant 0 : i32
    %c0_i32_0 = arith.constant 0 : i32
    %c0_i32_1 = arith.constant 0 : i32
    return %c0_i32, %c0_i32_0 : i32, i32
  }
  func.func @transform_4(%arg0: i32) -> (i32, i32, i32) {
    %c0_i32 = arith.constant 0 : i32
    %c0_i32_0 = arith.constant 0 : i32
    %c0_i32_1 = arith.constant 0 : i32
    return %arg0, %c0_i32, %c0_i32_0 : i32, i32, i32
  }
}

</mosaic_0001>

<bundles_post_ra>
// kernel: tpu_custom_call.1
= control target key start
LH: loop header
LB: loop body
LE: loop exit
PB: predicated region body
PF: predicated region fallthrough
CT: control target
= control target key end

     0   :  { %vm70_vm0 = vcmask 261120   ;;  %s4299_s0 = inlined_call_operand.vmem [shape: f32[2,16,32], index: 0, kind: input, shape index: {}]   ;;  %s4300_s1 = inlined_call_operand.vmem [shape: f32[32,1536], index: 1, kind: input, shape index: {}]   ;;  %s4301_s2 = inlined_call_operand.vmem [shape: f32[512,32], index: 2, kind: input, shape index: {}]   ;;  %s4302_s3 = inlined_call_operand.vmem [shape: f32[1,32], index: 3, kind: input, shape index: {}]   ;;  %s4303_s4 = inlined_call_operand.hbm [shape: f32[2,16,32], index: 4, kind: output, shape index: {}]  }
   0x1   :  { %v58_v0 = vld [vmem:[%s4300_s1 + $0x120] sm:$0xff]  ;;  %v59_v1 = vld [vmem:[%s4300_s1 + $0x128] sm:$0xff]  ;;  %v60_v6 = vld [vmem:[%s4300_s1 + $0x130] sm:$0xff] }
   0x2   :  { %v46_v2 = vld [vmem:[%s4300_s1 + $0xc0] sm:$0xff]  ;;  %95 = vmatpush.msra.mxu0 %v58_v0  ;;  %124 = vmatpush.msra.mxu1 %v59_v1  ;;  %v47_v3 = vld [vmem:[%s4300_s1 + $0xc8] sm:$0xff]  ;;  %v61_v7 = vld [vmem:[%s4300_s1 + $0x138] sm:$0xff] }
   0x3   :  { %v34_v4 = vld [vmem:[%s4300_s1 + $0x60] sm:$0xff]  ;;  %v35_v5 = vld [vmem:[%s4300_s1 + $0x68] sm:$0xff]  ;;  %v48_v8 = vld [vmem:[%s4300_s1 + $0xd0] sm:$0xff]  ;;  %153 = vmatpush.msra.mxu2 %v60_v6  ;;  %182 = vmatpush.msra.mxu3 %v61_v7 }
   0x4   :  { %96 = vmatpush.msra.mxu0 %v46_v2  ;;  %125 = vmatpush.msra.mxu1 %v47_v3  ;;  %v22_v9 = vld [vmem:[%s4300_s1] sm:$0xff]  ;;  %v23_v10 = vld [vmem:[%s4300_s1 + $0x8] sm:$0xff]  ;;  %v49_v11 = vld [vmem:[%s4300_s1 + $0xd8] sm:$0xff] }
   0x5   :  { %v3090_v12 = vld [vmem:[%s4299_s0] sm:$0xff]  ;;  %154 = vmatpush.msra.mxu2 %v48_v8  ;;  %183 = vmatpush.msra.mxu3 %v49_v11  ;;  %v36_v13 = vld [vmem:[%s4300_s1 + $0x70] sm:$0xff]  ;;  %v37_v14 = vld [vmem:[%s4300_s1 + $0x78] sm:$0xff] }
   0x6   :  { %97 = vmatpush.msra.mxu0 %v34_v4  ;;  %126 = vmatpush.msra.mxu1 %v35_v5  ;;  %v62_v15 = vld [vmem:[%s4300_s1 + $0x140] sm:$0xff]  ;;  %v63_v16 = vld [vmem:[%s4300_s1 + $0x148] sm:$0xff]  ;;  %v24_v17 = vld [vmem:[%s4300_s1 + $0x10] sm:$0xff] }
   0x7   :  { %v25_v18 = vld [vmem:[%s4300_s1 + $0x18] sm:$0xff]  ;;  %155 = vmatpush.msra.mxu2 %v36_v13  ;;  %184 = vmatpush.msra.mxu3 %v37_v14  ;;  %v50_v19 = vld [vmem:[%s4300_s1 + $0xe0] sm:$0xff]  ;;  %v51_v20 = vld [vmem:[%s4300_s1 + $0xe8] sm:$0xff] }
   0x8   :  { %98 = vmatpush.msra.mxu0 %v22_v9  ;;  %127 = vmatpush.msra.mxu1 %v23_v10  ;;  %v64_v21 = vld [vmem:[%s4300_s1 + $0x150] sm:$0xff]  ;;  %v65_v22 = vld [vmem:[%s4300_s1 + $0x158] sm:$0xff] }
   0x9   :  { %2639 = vmatmul.msk.f32.vlgmr.msra.gmra.mxu0 %vm70_vm0, %v3090_v12  ;;  %2643 = vmatmul.msk.f32.vlgmr.msra.gmra.mxu1 %vm70_vm0, %v3090_v12 }
   0xa   :  { %211 = vmatpush.msrb.mxu0 %v62_v15  ;;  %240 = vmatpush.msrb.mxu1 %v63_v16 }
   0xb   :  { %156 = vmatpush.msra.mxu2 %v24_v17  ;;  %185 = vmatpush.msra.mxu3 %v25_v18 }
   0xc   :  { %9 = vsyncpa [#allocation3], 0  ;;  %2647 = vmatmul.msk.f32.vlgmr.msra.gmra.mxu2 %vm70_vm0, %v3090_v12  ;;  %2651 = vmatmul.msk.f32.vlgmr.msra.gmra.mxu3 %vm70_vm0, %v3090_v12  ;;  %v38_v23 = vld [vmem:[%s4300_s1 + $0x80] sm:$0xff]  ;;  %v39_v24 = vld [vmem:[%s4300_s1 + $0x88] sm:$0xff]  ;;  %s3022_s6 = smov 64   ;;  %vm431_vm1 = vcmask 523264  }
   0xd   :  { %v3139_v25 = vld [vmem:[%s4299_s0 + $0x8] sm:$0xff]  ;;  %212 = vmatpush.msrb.mxu0 %v50_v19  ;;  %241 = vmatpush.msrb.mxu1 %v51_v20  ;;  %v26_v26 = vld [vmem:[%s4300_s1 + $0x20] sm:$0xff]  ;;  %v52_v28 = vld [vmem:[%s4300_s1 + $0xf0] sm:$0xff]  ;;  %vm469_vm2 = vcmask 130048   ;;  %s2627_s11 = sshll.u32 %s4303_s4, 4  ;;  %s3024_s12 = smov 128   ;;  %s2628_s11 = int_to_ptr.hbm [resolvable:$true] %s2627_s11 }
   0xe   :  { %v27_v27 = vld [vmem:[%s4300_s1 + $0x28] sm:$0xff]  ;;  %269 = vmatpush.msrb.mxu2 %v64_v21  ;;  %298 = vmatpush.msrb.mxu3 %v65_v22  ;;  %v53_v29 = vld [vmem:[%s4300_s1 + $0xf8] sm:$0xff]  ;;  %v40_v30 = vld [vmem:[%s4300_s1 + $0x90] sm:$0xff] }
   0xf   :  { %213 = vmatpush.msrb.mxu0 %v38_v23  ;;  %242 = vmatpush.msrb.mxu1 %v39_v24  ;;  %v41_v31 = vld [vmem:[%s4300_s1 + $0x98] sm:$0xff]  ;;  %v28_v32 = vld [vmem:[%s4300_s1 + $0x30] sm:$0xff]  ;;  %v66_v36 = vld [vmem:[%s4300_s1 + $0x160] sm:$0xff] }
  0x10   :  { %270 = vmatpush.msrb.mxu2 %v52_v28  ;;  %299 = vmatpush.msrb.mxu3 %v53_v29  ;;  %v29_v33 = vld [vmem:[%s4300_s1 + $0x38] sm:$0xff]  ;;  %v3176_v34 = vld [vmem:[%s4299_s0 + $0x10] sm:$0xff]  ;;  %v54_v37 = vld [vmem:[%s4300_s1 + $0x100] sm:$0xff] }
  0x11   :  { %2640 = vmatmul.msk.f32.gmra.mxu0 %vm70_vm0, %v3139_v25  ;;  %2644 = vmatmul.msk.f32.gmra.mxu1 %vm70_vm0, %v3139_v25  ;;  %v3189_v35 = vld [vmem:[%s4299_s0 + $0x18] sm:$0xff]  ;;  %v42_v38 = vld [vmem:[%s4300_s1 + $0xa0] sm:$0xff]  ;;  %v67_v40 = vld [vmem:[%s4300_s1 + $0x168] sm:$0xff]  ;;  %s3025_s0 = smov 8  }
  0x12   :  { %214 = vmatpush.msrb.mxu0 %v26_v26  ;;  %243 = vmatpush.msrb.mxu1 %v27_v27  ;;  %v30_v39 = vld [vmem:[%s4300_s1 + $0x40] sm:$0xff]  ;;  %v55_v41 = vld [vmem:[%s4300_s1 + $0x108] sm:$0xff]  ;;  %v68_v44 = vld [vmem:[%s4300_s1 + $0x170] sm:$0xff] }
  0x13   :  { %271 = vmatpush.msrb.mxu2 %v40_v30  ;;  %300 = vmatpush.msrb.mxu3 %v41_v31  ;;  %v43_v42 = vld [vmem:[%s4300_s1 + $0xa8] sm:$0xff]  ;;  %v56_v45 = vld [vmem:[%s4300_s1 + $0x110] sm:$0xff] }
  0x14   :  { %2648 = vmatmul.msk.f32.gmra.mxu2 %vm70_vm0, %v3139_v25  ;;  %2652 = vmatmul.msk.f32.gmra.mxu3 %vm70_vm0, %v3139_v25  ;;  %v31_v43 = vld [vmem:[%s4300_s1 + $0x48] sm:$0xff]  ;;  %v44_v46 = vld [vmem:[%s4300_s1 + $0xb0] sm:$0xff] }
  0x15   :  { %272 = vmatpush.msrb.mxu2 %v28_v32  ;;  %301 = vmatpush.msrb.mxu3 %v29_v33  ;;  %v32_v47 = vld [vmem:[%s4300_s1 + $0x50] sm:$0xff] }
  0x16   :  { %327 = vmatpush.msra.mxu0 %v66_v36  ;;  %356 = vmatpush.msra.mxu1 %v67_v40  ;;  %v57_v40 = vld [vmem:[%s4300_s1 + $0x118] sm:$0xff] }
  0x17   :  { %385 = vmatpush.msra.mxu2 %v68_v44 }
  0x18   :  { %328 = vmatpush.msra.mxu0 %v54_v37  ;;  %357 = vmatpush.msra.mxu1 %v55_v41 }
  0x19   :  { %2641 = vmatmul.msk.f32.gmra.mxu0 %vm70_vm0, %v3176_v34  ;;  %2645 = vmatmul.msk.f32.gmra.mxu1 %vm70_vm0, %v3176_v34 }
  0x1a   :  { %329 = vmatpush.msra.mxu0 %v42_v38  ;;  %358 = vmatpush.msra.mxu1 %v43_v42  ;;  %v45_v42 = vld [vmem:[%s4300_s1 + $0xb8] sm:$0xff] }
  0x1b   :  { %386 = vmatpush.msra.mxu2 %v56_v45  ;;  %v33_v45 = vld [vmem:[%s4300_s1 + $0x58] sm:$0xff] }
  0x1c   :  { %2649 = vmatmul.msk.f32.gmra.mxu2 %vm70_vm0, %v3176_v34  ;;  %2653 = vmatmul.msk.f32.gmra.mxu3 %vm70_vm0, %v3176_v34 }
  0x1d   :  { %330 = vmatpush.msra.mxu0 %v30_v39  ;;  %359 = vmatpush.msra.mxu1 %v31_v43  ;;  %v69_v39 = vld [vmem:[%s4300_s1 + $0x178] sm:$0xff] }
  0x1e   :  { %387 = vmatpush.msra.mxu2 %v44_v46  ;;  %414 = vmatpush.msra.mxu3 %v69_v39 }
  0x20   :  { %388 = vmatpush.msra.mxu2 %v32_v47  ;;  %415 = vmatpush.msra.mxu3 %v57_v40 }
  0x21   :  { %2642 = vmatmul.msk.f32.gmra.mxu0 %vm70_vm0, %v3189_v35  ;;  %2646 = vmatmul.msk.f32.gmra.mxu1 %vm70_vm0, %v3189_v35 }
  0x22   :  { %416 = vmatpush.msra.mxu3 %v45_v42 }
  0x24   :  { %2650 = vmatmul.msk.f32.gmra.mxu2 %vm70_vm0, %v3189_v35  ;;  %2654 = vmatmul.msk.f32.gmra.mxu3 %vm70_vm0, %v3189_v35 }
  0x25   :  { %417 = vmatpush.msra.mxu3 %v33_v45 }
  0x29   :  { %2655 = vmatmul.msk.f32.vlgmr.msrb.gmra.mxu0 %vm70_vm0, %v3090_v12  ;;  %2659 = vmatmul.msk.f32.vlgmr.msrb.gmra.mxu1 %vm70_vm0, %v3090_v12 }
  0x2c   :  { %2663 = vmatmul.msk.f32.vlgmr.msrb.gmra.mxu2 %vm70_vm0, %v3090_v12  ;;  %2667 = vmatmul.msk.f32.vlgmr.msrb.gmra.mxu3 %vm70_vm0, %v3090_v12 }
  0x31   :  { %2656 = vmatmul.msk.f32.gmra.mxu0 %vm70_vm0, %v3139_v25  ;;  %2660 = vmatmul.msk.f32.gmra.mxu1 %vm70_vm0, %v3139_v25 }
  0x34   :  { %2664 = vmatmul.msk.f32.gmra.mxu2 %vm70_vm0, %v3139_v25  ;;  %2668 = vmatmul.msk.f32.gmra.mxu3 %vm70_vm0, %v3139_v25 }
  0x39   :  { %2657 = vmatmul.msk.f32.gmra.mxu0 %vm70_vm0, %v3176_v34  ;;  %2661 = vmatmul.msk.f32.gmra.mxu1 %vm70_vm0, %v3176_v34 }
  0x3c   :  { %2665 = vmatmul.msk.f32.gmra.mxu2 %vm70_vm0, %v3176_v34  ;;  %2669 = vmatmul.msk.f32.gmra.mxu3 %vm70_vm0, %v3176_v34 }
  0x41   :  { %2658 = vmatmul.msk.f32.gmra.mxu0 %vm70_vm0, %v3189_v35  ;;  %2662 = vmatmul.msk.f32.gmra.mxu1 %vm70_vm0, %v3189_v35 }
  0x44   :  { %2670 = vmatmul.msk.f32.gmra.mxu3 %vm70_vm0, %v3189_v35  ;;  %2666 = vmatmul.msk.f32.gmra.mxu2 %vm70_vm0, %v3189_v35 }
  0x49   :  { %2671 = vmatmul.msk.f32.vlgmr.msra.gmra.mxu0 %vm70_vm0, %v3090_v12  ;;  %2675 = vmatmul.msk.f32.vlgmr.msra.gmra.mxu1 %vm70_vm0, %v3090_v12 }
  0x4c   :  { %2679 = vmatmul.msk.f32.vlgmr.msra.gmra.mxu2 %vm70_vm0, %v3090_v12  ;;  %2683 = vmatmul.msk.f32.vlgmr.msra.gmra.mxu3 %vm70_vm0, %v3090_v12 }
  0x51   :  { %2672 = vmatmul.msk.f32.gmra.mxu0 %vm70_vm0, %v3139_v25  ;;  %2676 = vmatmul.msk.f32.gmra.mxu1 %vm70_vm0, %v3139_v25 }
  0x54   :  { %2680 = vmatmul.msk.f32.gmra.mxu2 %vm70_vm0, %v3139_v25  ;;  %2684 = vmatmul.msk.f32.gmra.mxu3 %vm70_vm0, %v3139_v25 }
  0x59   :  { %2673 = vmatmul.msk.f32.gmra.mxu0 %vm70_vm0, %v3176_v34  ;;  %2677 = vmatmul.msk.f32.gmra.mxu1 %vm70_vm0, %v3176_v34 }
  0x5c   :  { %2681 = vmatmul.msk.f32.gmra.mxu2 %vm70_vm0, %v3176_v34  ;;  %2685 = vmatmul.msk.f32.gmra.mxu3 %vm70_vm0, %v3176_v34 }
  0x61   :  { %2674 = vmatmul.msk.f32.gmra.mxu0 %vm70_vm0, %v3189_v35  ;;  %2678 = vmatmul.msk.f32.gmra.mxu1 %vm70_vm0, %v3189_v35 }
  0x64   :  { %2682 = vmatmul.msk.f32.gmra.mxu2 %vm70_vm0, %v3189_v35  ;;  %2686 = vmatmul.msk.f32.gmra.mxu3 %vm70_vm0, %v3189_v35 }
  0x86   :  { %v100_v48 = vpop.f32.mrf.mxu0  ;;  %v129_v49 = vpop.f32.mrf.mxu1 }
  0x87   :  { %547 = vrot.lane.b32.xlu1 %v100_v48, %s3022_s6 }
  0x8e   :  { %v103_v50 = vpop.f32.mrf.mxu0  ;;  %v132_v51 = vpop.f32.mrf.mxu1 }
  0x8f   :  { %549 = vrot.lane.b32.xlu1 %v103_v50, %s3022_s6  ;;  %v158_v52 = vpop.f32.mrf.mxu2  ;;  %v3291_v53 = vpop.f32.mrf.mxu3 }
  0x96   :  { %v3295_v54 = vpop.f32.mrf.mxu0  ;;  %v3297_v55 = vpop.f32.mrf.mxu1 }
  0x97   :  { %789 = vrot.lane.b32.xlu1 %v132_v51, %s3022_s6  ;;  %v161_v56 = vpop.f32.mrf.mxu2  ;;  %v3300_v57 = vpop.f32.mrf.mxu3 }
  0x9e   :  { %v3302_v58 = vpop.f32.mrf.mxu0  ;;  %v3304_v59 = vpop.f32.mrf.mxu1 }
  0x9f   :  { %1027 = vrot.lane.b32.xlu1 %v158_v52, %s3022_s6  ;;  %v3307_v60 = vpop.f32.mrf.mxu2  ;;  %v3309_v61 = vpop.f32.mrf.mxu3 }
  0xa6   :  { %v216_v62 = vpop.f32.mrf.mxu0  ;;  %v245_v63 = vpop.f32.mrf.mxu1 }
  0xa7   :  { %551 = vrot.lane.b32.xlu0 %v216_v62, %s3022_s6  ;;  %v3312_v0 = vpop.f32.mrf.mxu2  ;;  %v3314_v1 = vpop.f32.mrf.mxu3 }
  0xae   :  { %v219_v2 = vpop.f32.mrf.mxu0  ;;  %v248_v3 = vpop.f32.mrf.mxu1 }
  0xaf   :  { %793 = vrot.lane.b32.xlu2 %v248_v3, %s3022_s6  ;;  %553 = vrot.lane.b32.xlu0 %v219_v2, %s3022_s6  ;;  %v274_v4 = vpop.f32.mrf.mxu2  ;;  %v303_v5 = vpop.f32.mrf.mxu3 }
  0xb0   :  { %2687 = vmatpush.xpose.msk.msrb.mxu0 %vm431_vm1, %v219_v2  ;;  %1271 = vrot.lane.b32.xlu1 %v303_v5, %s3022_s6 }
  0xb4   :  { %2688 = vmatpush.xpose.msk.msrb.mxu0 %vm431_vm1, %v216_v62 }
  0xb6   :  { %v222_v6 = vpop.f32.mrf.mxu0  ;;  %v251_v10 = vpop.f32.mrf.mxu1 }
  0xb7   :  { %2689 = vmatmul.msk.f32.vlgmr.msrb.gmra.mxu0 %vm431_vm1, %v100_v48  ;;  %791 = vrot.lane.b32.xlu2 %v245_v63, %s3022_s6  ;;  %v277_v7 = vpop.f32.mrf.mxu2  ;;  %v306_v9 = vpop.f32.mrf.mxu3 }
  0xb8   :  { %2699 = vmatpush.xpose.msk.msra.mxu0 %vm431_vm1, %v248_v3  ;;  %787 = vrot.lane.b32.xlu0 %v129_v49, %s3022_s6 }
  0xbc   :  { %2700 = vmatpush.xpose.msk.msra.mxu0 %vm431_vm1, %v245_v63 }
  0xbe   :  { %v225_v8 = vpop.f32.mrf.mxu0  ;;  %v254_v13 = vpop.f32.mrf.mxu1 }
  0xbf   :  { %2690 = vmatmul.msk.f32.gmra.mxu0 %vm431_vm1, %v103_v50  ;;  %1033 = vrot.lane.b32.xlu2 %v277_v7, %s3022_s6  ;;  %v280_v11 = vpop.f32.mrf.mxu2  ;;  %v309_v15 = vpop.f32.mrf.mxu3 }
  0xc0   :  { %2711 = vmatpush.xpose.msk.msrb.mxu0 %vm431_vm1, %v277_v7  ;;  %1031 = vrot.lane.b32.xlu0 %v274_v4, %s3022_s6 }
  0xc1   :  { %1553 = vrot.lane.b32.xlu1 %v225_v8, %s3022_s6 }
  0xc4   :  { %2712 = vmatpush.xpose.msk.msrb.mxu0 %vm431_vm1, %v274_v4 }
  0xc6   :  { %v332_v14 = vpop.f32.mrf.mxu0  ;;  %v361_v17 = vpop.f32.mrf.mxu1 }
  0xc7   :  { %2701 = vmatmul.msk.f32.vlgmr.msra.gmra.mxu0 %vm431_vm1, %v129_v49  ;;  %1029 = vrot.lane.b32.xlu2 %v161_v56, %s3022_s6  ;;  %v312_v18 = vpop.f32.mrf.mxu3  ;;  %v283_v21 = vpop.f32.mrf.mxu2 }
  0xc8   :  { %1269 = vrot.lane.b32.xlu0 %v3300_v57, %s3022_s6  ;;  %2723 = vmatpush.xpose.msk.msra.mxu0 %vm431_vm1, %v306_v9 }
  0xc9   :  { %1549 = vrot.lane.b32.xlu1 %v3302_v58, %s3022_s6 }
  0xcc   :  { %2724 = vmatpush.xpose.msk.msra.mxu0 %vm431_vm1, %v303_v5 }
  0xce   :  { %v335_v16 = vpop.f32.mrf.mxu0  ;;  %v364_v19 = vpop.f32.mrf.mxu1 }
  0xcf   :  { %2702 = vmatmul.msk.f32.gmra.mxu0 %vm431_vm1, %v132_v51  ;;  %1267 = vrot.lane.b32.xlu2 %v3291_v53, %s3022_s6  ;;  %v2787_v20 = vpack.i.bf16 %v332_v14, %v335_v16  ;;  %v2792_v22 = vpack.i.bf16 %v361_v17, %v364_v19  ;;  %v3380_v23 = vpop.f32.mrf.mxu2 }
  0xd0   :  { %1273 = vrot.lane.b32.xlu0 %v306_v9, %s3022_s6  ;;  %538 = vmatpush.msrb.mxu1 %v335_v16 }
  0xd1   :  { %1787 = vrot.lane.b32.xlu1 %v3297_v55, %s3022_s6 }
  0xd2   :  { %539 = vmatpush.msrb.mxu1 %v332_v14 }
  0xd4   :  { %778 = vmatpush.msra.mxu1 %v364_v19 }
  0xd6   :  { %779 = vmatpush.msra.mxu1 %v361_v17  ;;  %v3401_v38 = vpop.f32.mrf.mxu0 }
  0xd7   :  { %2713 = vmatmul.msk.f32.vlgmr.msrb.gmra.mxu0 %vm431_vm1, %v158_v52  ;;  %1551 = vrot.lane.b32.xlu2 %v222_v6, %s3022_s6  ;;  %v3385_v24 = vpop.f32.mrf.mxu2 }
  0xd8   :  { %1547 = vrot.lane.b32.xlu0 %v3295_v54, %s3022_s6  ;;  %2735 = vmatpush.xpose.msk.msrb.mxu0 %vm431_vm1, %v225_v8  ;;  %v2797_v27 = vpack.i.bf16 %v3380_v23, %v3385_v24 }
  0xd9   :  { %2031 = vrot.lane.b32.xlu1 %v280_v11, %s3022_s6 }
  0xdc   :  { %2736 = vmatpush.xpose.msk.msrb.mxu0 %vm431_vm1, %v222_v6 }
  0xde   :  { %v3421_v46 = vpop.f32.mrf.mxu0 }
  0xdf   :  { %2714 = vmatmul.msk.f32.gmra.mxu0 %vm431_vm1, %v161_v56  ;;  %1789 = vrot.lane.b32.xlu2 %v3304_v59, %s3022_s6  ;;  %v3504_v39 = vpop.f32.mrf.mxu2 }
  0xe0   :  { %1791 = vrot.lane.b32.xlu0 %v251_v10, %s3022_s6 }
  0xe1   :  { %2269 = vrot.lane.b32.xlu1 %v3314_v1, %s3022_s6 }
  0xe7   :  { %2725 = vmatmul.msk.f32.vlgmr.msra.gmra.mxu0 %vm431_vm1, %v3291_v53  ;;  %2027 = vrot.lane.b32.xlu2 %v3307_v60, %s3022_s6  ;;  %v3507_v40 = vpop.f32.mrf.mxu2 }
  0xe8   :  { %2029 = vrot.lane.b32.xlu0 %v3312_v0, %s3022_s6  ;;  %2747 = vmatpush.xpose.msk.msra.mxu0 %vm431_vm1, %v254_v13 }
  0xe9   :  { %2273 = vrot.lane.b32.xlu1 %v312_v18, %s3022_s6 }
  0xec   :  { %2748 = vmatpush.xpose.msk.msra.mxu0 %vm431_vm1, %v251_v10 }
  0xef   :  { %2726 = vmatmul.msk.f32.gmra.mxu0 %vm431_vm1, %v3300_v57  ;;  %1793 = vrot.lane.b32.xlu2 %v254_v13, %s3022_s6 }
  0xf0   :  { %2267 = vrot.lane.b32.xlu0 %v3309_v61, %s3022_s6 }
  0xf1   :  { %2788 = vrot.lane.b32.xlu1 %v2787_v20, %s3022_s6 }
  0xf7   :  { %2737 = vmatmul.msk.f32.vlgmr.msrb.gmra.mxu0 %vm431_vm1, %v3295_v54  ;;  %2271 = vrot.lane.b32.xlu2 %v309_v15, %s3022_s6 }
  0xf8   :  { %2033 = vrot.lane.b32.xlu0 %v283_v21, %s3022_s6  ;;  %2759 = vmatpush.xpose.msk.msrb.mxu0 %vm431_vm1, %v283_v21 }
  0xf9   :  { %2793 = vrot.lane.b32.xlu1 %v2792_v22, %s3022_s6  ;;  %v548_v26 = vpop.permute.xlu1 %547 }
  0xfc   :  { %2760 = vmatpush.xpose.msk.msrb.mxu0 %vm431_vm1, %v280_v11 }
  0xff   :  { %2738 = vmatmul.msk.f32.gmra.mxu0 %vm431_vm1, %v3302_v58  ;;  %2798 = vrot.lane.b32.xlu2 %v2797_v27, %s3022_s6 }
 0x101   :  { %v550_v29 = vpop.permute.xlu1 %549 }
 0x107   :  { %2749 = vmatmul.msk.f32.vlgmr.msra.gmra.mxu0 %vm431_vm1, %v3297_v55 }
 0x108   :  { %2771 = vmatpush.xpose.msk.msra.mxu0 %vm431_vm1, %v312_v18 }
 0x109   :  { %v794_v28 = vpop.permute.xlu2 %793  ;;  %v790_v31 = vpop.permute.xlu1 %789 }
 0x10c   :  { %2772 = vmatpush.xpose.msk.msra.mxu0 %vm431_vm1, %v309_v15 }
 0x10f   :  { %2750 = vmatmul.msk.f32.gmra.mxu0 %vm431_vm1, %v3304_v59 }
 0x111   :  { %v792_v30 = vpop.permute.xlu2 %791  ;;  %v1028_v36 = vpop.permute.xlu1 %1027 }
 0x117   :  { %2761 = vmatmul.msk.f32.vlgmr.msrb.gmra.mxu0 %vm431_vm1, %v3307_v60 }
 0x119   :  { %v552_v32 = vpop.permute.xlu0 %551  ;;  %v1034_v33 = vpop.permute.xlu2 %1033 }
 0x11f   :  { %2762 = vmatmul.msk.f32.gmra.mxu0 %vm431_vm1, %v3312_v0 }
 0x121   :  { %v554_v37 = vpop.permute.xlu0 %553  ;;  %v1030_v43 = vpop.permute.xlu2 %1029 }
 0x122   :  { %2693 = vmatpush.xpose.msk.msrb.mxu2 %vm431_vm1, %v554_v37  ;;  %v1272_v41 = vpop.permute.xlu1 %1271 }
 0x126   :  { %2694 = vmatpush.xpose.msk.msrb.mxu2 %vm431_vm1, %v552_v32 }
 0x127   :  { %2773 = vmatmul.msk.f32.vlgmr.msra.gmra.mxu0 %vm431_vm1, %v3309_v61 }
 0x129   :  { %2695 = vmatmul.msk.f32.vlgmr.msrb.gmra.mxu2 %vm431_vm1, %v548_v26  ;;  %v1268_v49 = vpop.permute.xlu2 %1267 }
 0x12a   :  { %2705 = vmatpush.xpose.msk.msra.mxu2 %vm431_vm1, %v794_v28  ;;  %v788_v44 = vpop.permute.xlu0 %787 }
 0x12e   :  { %2706 = vmatpush.xpose.msk.msra.mxu2 %vm431_vm1, %v792_v30 }
 0x12f   :  { %2774 = vmatmul.msk.f32.gmra.mxu0 %vm431_vm1, %v3314_v1 }
 0x131   :  { %2696 = vmatmul.msk.f32.gmra.mxu2 %vm431_vm1, %v550_v29  ;;  %v1552_v55 = vpop.permute.xlu2 %1551 }
 0x132   :  { %2717 = vmatpush.xpose.msk.msrb.mxu2 %vm431_vm1, %v1034_v33  ;;  %v1032_v47 = vpop.permute.xlu0 %1031 }
 0x133   :  { %v1554_v48 = vpop.permute.xlu1 %1553 }
 0x134   :  { %v461_v50 = vpop.f32.mrf.mxu0 }
 0x135   :  { %v3430_v51 = vmul.f32 0.125, %v461_v50 }
 0x136   :  { %2718 = vmatpush.xpose.msk.msrb.mxu2 %vm431_vm1, %v1032_v47 }
 0x137   :  { %v470_v12 = vsel %vm469_vm2, %v3430_v51, -inf }
 0x138   :  { %471 = vmax.xlane.f32.xlu1 %v470_v12 }
 0x139   :  { %2707 = vmatmul.msk.f32.vlgmr.msra.gmra.mxu2 %vm431_vm1, %v788_v44  ;;  %v3453_v61 = vpop.permute.xlu2 %1789 }
 0x13a   :  { %v1270_v52 = vpop.permute.xlu0 %1269 }
 0x13b   :  { %v3437_v53 = vpop.permute.xlu1 %1549 }
 0x13c   :  { %v464_v54 = vpop.f32.mrf.mxu0 }
 0x13d   :  { %v3439_v56 = vmul.f32 0.125, %v464_v54 }
 0x13f   :  { %v473_v57 = vsel %vm469_vm2, %v3439_v56, -inf }
 0x140   :  { %474 = vmax.xlane.f32.xlu1 %v473_v57 }
 0x141   :  { %2708 = vmatmul.msk.f32.gmra.mxu2 %vm431_vm1, %v790_v31  ;;  %v2028_v2 = vpop.permute.xlu2 %2027 }
 0x142   :  { %v1274_v25 = vpop.permute.xlu0 %1273 }
 0x143   :  { %v3446_v58 = vpop.permute.xlu1 %1787  ;;  %2729 = vmatpush.xpose.msk.msra.mxu2 %vm431_vm1, %v1274_v25 }
 0x144   :  { %v702_v59 = vpop.f32.mrf.mxu0 }
 0x145   :  { %v3449_v60 = vmul.f32 0.125, %v702_v59 }
 0x147   :  { %v710_v34 = vsel %vm469_vm2, %v3449_v60, -inf  ;;  %2730 = vmatpush.xpose.msk.msra.mxu2 %vm431_vm1, %v1272_v41 }
 0x148   :  { %711 = vmax.xlane.f32.xlu1 %v710_v34 }
 0x149   :  { %2719 = vmatmul.msk.f32.vlgmr.msrb.gmra.mxu2 %vm431_vm1, %v1028_v36  ;;  %v1794_v8 = vpop.permute.xlu2 %1793 }
 0x14a   :  { %v1548_v62 = vpop.permute.xlu0 %1547 }
 0x14b   :  { %2741 = vmatpush.xpose.msk.msrb.mxu2 %vm431_vm1, %v1554_v48  ;;  %v2032_v63 = vpop.permute.xlu1 %2031 }
 0x14c   :  { %v705_v0 = vpop.f32.mrf.mxu0 }
 0x14d   :  { %v3460_v1 = vmul.f32 0.125, %v705_v0 }
 0x14f   :  { %2742 = vmatpush.xpose.msk.msrb.mxu2 %vm431_vm1, %v1552_v55  ;;  %v713_v35 = vsel %vm469_vm2, %v3460_v1, -inf }
 0x150   :  { %714 = vmax.xlane.f32.xlu2 %v713_v35 }
 0x151   :  { %2720 = vmatmul.msk.f32.gmra.mxu2 %vm431_vm1, %v1030_v43  ;;  %v2272_v37 = vpop.permute.xlu2 %2271 }
 0x152   :  { %v1792_v3 = vpop.permute.xlu0 %1791 }
 0x153   :  { %v2270_v4 = vpop.permute.xlu1 %2269 }
 0x154   :  { %v942_v5 = vpop.f32.mrf.mxu0 }
 0x155   :  { %v3466_v6 = vmul.f32 0.125, %v942_v5  ;;  %v3542_v5 = vpop.f32.mrf.mxu3 }
 0x157   :  { %v950_v7 = vsel %vm469_vm2, %v3466_v6, -inf }
 0x158   :  { %951 = vmax.xlane.f32.xlu0 %v950_v7 }
 0x159   :  { %2731 = vmatmul.msk.f32.vlgmr.msra.gmra.mxu2 %vm431_vm1, %v1268_v49  ;;  %v3523_v55 = vpop.permute.xlu2 %2798 }
 0x15a   :  { %v2030_v9 = vpop.permute.xlu0 %2029  ;;  %2753 = vmatpush.xpose.msk.msra.mxu2 %vm431_vm1, %v1794_v8 }
 0x15b   :  { %v2274_v10 = vpop.permute.xlu1 %2273 }
 0x15c   :  { %v945_v11 = vpop.f32.mrf.mxu0 }
 0x15d   :  { %v3472_v13 = vmul.f32 0.125, %v945_v11 }
 0x15e   :  { %2754 = vmatpush.xpose.msk.msra.mxu2 %vm431_vm1, %v1792_v3 }
 0x15f   :  { %v953_v14 = vsel %vm469_vm2, %v3472_v13, -inf }
 0x160   :  { %954 = vmax.xlane.f32.xlu2 %v953_v14 }
 0x161   :  { %2732 = vmatmul.msk.f32.gmra.mxu2 %vm431_vm1, %v1270_v52 }
 0x162   :  { %v2268_v15 = vpop.permute.xlu0 %2267 }
 0x163   :  { %v2789_v16 = vpop.permute.xlu1 %2788 }
 0x164   :  { %v1182_v17 = vpop.f32.mrf.mxu0  ;;  %v2791_v18 = vunpack.i.h.bf16 %v2789_v16  ;;  %v2790_v19 = vunpack.i.l.bf16 %v2789_v16 }
 0x165   :  { %v3478_v20 = vmul.f32 0.125, %v1182_v17  ;;  %v3553_v17 = vpop.f32.mrf.mxu3 }
 0x166   :  { %664 = vmatpush.msrb.mxu3 %v2790_v19 }
 0x167   :  { %v1190_v21 = vsel %vm469_vm2, %v3478_v20, -inf }
 0x168   :  { %1191 = vmax.xlane.f32.xlu2 %v1190_v21  ;;  %665 = vmatpush.msrb.mxu3 %v2791_v18 }
 0x169   :  { %2743 = vmatmul.msk.f32.vlgmr.msrb.gmra.mxu2 %vm431_vm1, %v1548_v62 }
 0x16a   :  { %v2034_v22 = vpop.permute.xlu0 %2033 }
 0x16b   :  { %2765 = vmatpush.xpose.msk.msrb.mxu2 %vm431_vm1, %v2034_v22  ;;  %v2794_v26 = vpop.permute.xlu1 %2793 }
 0x16c   :  { %v1185_v27 = vpop.f32.mrf.mxu0  ;;  %v2796_v28 = vunpack.i.h.bf16 %v2794_v26  ;;  %v2795_v29 = vunpack.i.l.bf16 %v2794_v26 }
 0x16d   :  { %v3484_v30 = vmul.f32 0.125, %v1185_v27 }
 0x16e   :  { %904 = vmatpush.msra.mxu3 %v2795_v29 }
 0x16f   :  { %v1193_v31 = vsel %vm469_vm2, %v3484_v30, -inf  ;;  %2766 = vmatpush.xpose.msk.msrb.mxu2 %vm431_vm1, %v2032_v63 }
 0x170   :  { %1194 = vmax.xlane.f32.xlu0 %v1193_v31  ;;  %905 = vmatpush.msra.mxu3 %v2796_v28 }
 0x171   :  { %2744 = vmatmul.msk.f32.gmra.mxu2 %vm431_vm1, %v3437_v53 }
 0x174   :  { %v1462_v32 = vpop.f32.mrf.mxu0 }
 0x175   :  { %v3491_v33 = vmul.f32 0.125, %v1462_v32 }
 0x177   :  { %v1470_v36 = vsel %vm469_vm2, %v3491_v33, -inf }
 0x178   :  { %1471 = vmax.xlane.f32.xlu2 %v1470_v36 }
 0x179   :  { %2755 = vmatmul.msk.f32.vlgmr.msra.gmra.mxu2 %vm431_vm1, %v3446_v58 }
 0x17a   :  { %2777 = vmatpush.xpose.msk.msra.mxu2 %vm431_vm1, %v2274_v10 }
 0x17c   :  { %v1465_v58 = vpop.f32.mrf.mxu0 }
 0x17d   :  { %v3533_v34 = vmul.f32 0.125, %v1465_v58 }
 0x17e   :  { %2778 = vmatpush.xpose.msk.msra.mxu2 %vm431_vm1, %v2272_v37 }
 0x17f   :  { %v1473_v3 = vsel %vm469_vm2, %v3533_v34, -inf }
 0x181   :  { %2756 = vmatmul.msk.f32.gmra.mxu2 %vm431_vm1, %v3453_v61 }
 0x189   :  { %2767 = vmatmul.msk.f32.vlgmr.msrb.gmra.mxu2 %vm431_vm1, %v2028_v2 }
 0x191   :  { %2768 = vmatmul.msk.f32.gmra.mxu2 %vm431_vm1, %v2030_v9 }
 0x199   :  { %2779 = vmatmul.msk.f32.vlgmr.msra.gmra.mxu2 %vm431_vm1, %v2268_v15 }
 0x1a1   :  { %2780 = vmatmul.msk.f32.gmra.mxu2 %vm431_vm1, %v2270_v4  ;;  %v1702_v4 = vpop.f32.mrf.mxu0 }
 0x1a2   :  { %v3544_v8 = vmul.f32 0.125, %v1702_v4 }
 0x1a4   :  { %v1710_v16 = vsel %vm469_vm2, %v3544_v8, -inf }
 0x1ab   :  { %v472_v41 = vpop.xlane.xlu1 %471 }
 0x1ac   :  { %v476_v42 = vsub.f32 %v3430_v51, %v472_v41  ;;  %v580_v43 = vpop.f32.mrf.mxu2 }
 0x1ad   :  { %v3510_v44 = vmul.f32 0.125, %v580_v43 }
 0x1ae   :  { %v478_v45 = vmul.f32 1.442695, %v476_v42 }
 0x1af   :  { %v588_v47 = vsel %vm469_vm2, %v3510_v44, -inf }
 0x1b0   :  { %2868 = vpow2.f32 %v478_v45  ;;  %589 = vmax.xlane.f32.xlu2 %v588_v47 }
 0x1b3   :  { %v475_v48 = vpop.xlane.xlu1 %474 }
 0x1b4   :  { %v477_v49 = vsub.f32 %v3439_v56, %v475_v48  ;;  %v583_v50 = vpop.f32.mrf.mxu2 }
 0x1b5   :  { %v3515_v12 = vmul.f32 0.125, %v583_v50 }
 0x1b6   :  { %v3517_v52 = vpop.eup %2868  ;;  %v480_v53 = vmul.f32 1.442695, %v477_v49 }
 0x1b7   :  { %v591_v51 = vsel %vm469_vm2, %v3515_v12, -inf  ;;  %v482_v54 = vsel %vm469_vm2, %v3517_v52, 0.0 }
 0x1b8   :  { %2870 = vpow2.f32 %v480_v53  ;;  %592 = vmax.xlane.f32.xlu0 %v591_v51  ;;  %483 = vadd.xlane.f32.xlu2 %v482_v54 }
 0x1bb   :  { %v712_v47 = vpop.xlane.xlu1 %711 }
 0x1bc   :  { %v820_v57 = vpop.f32.mrf.mxu2  ;;  %v716_v49 = vsub.f32 %v3449_v60, %v712_v47 }
 0x1bd   :  { %v3525_v25 = vmul.f32 0.125, %v820_v57 }
 0x1be   :  { %v3527_v56 = vpop.eup %2870  ;;  %v718_v53 = vmul.f32 1.442695, %v716_v49 }
 0x1bf   :  { %v828_v59 = vsel %vm469_vm2, %v3525_v25, -inf  ;;  %v485_v61 = vsel %vm469_vm2, %v3527_v56, 0.0 }
 0x1c0   :  { %829 = vmax.xlane.f32.xlu1 %v828_v59  ;;  %486 = vadd.xlane.f32.xlu0 %v485_v61 }
 0x1c3   :  { %v715_v62 = vpop.xlane.xlu2 %714 }
 0x1c4   :  { %v823_v63 = vpop.f32.mrf.mxu2  ;;  %v717_v35 = vsub.f32 %v3460_v1, %v715_v62 }
 0x1c5   :  { %v3535_v0 = vmul.f32 0.125, %v823_v63 }
 0x1c6   :  { %v720_v7 = vmul.f32 1.442695, %v717_v35 }
 0x1c7   :  { %v831_v2 = vsel %vm469_vm2, %v3535_v0, -inf }
 0x1c8   :  { %832 = vmax.xlane.f32.xlu2 %v831_v2  ;;  %1474 = vmax.xlane.f32.xlu0 %v1473_v3  ;;  %2872 = vpow2.f32 %v720_v7 }
 0x1cb   :  { %v952_v9 = vpop.xlane.xlu0 %951 }
 0x1cc   :  { %v956_v10 = vsub.f32 %v3466_v6, %v952_v9  ;;  %v1060_v11 = vpop.f32.mrf.mxu2  ;;  %v2802_v6 = vpack.i.bf16 %v3542_v5, %v3553_v17 }
 0x1cd   :  { %v3547_v14 = vmul.f32 0.125, %v1060_v11 }
 0x1ce   :  { %v958_v1 = vmul.f32 1.442695, %v956_v10  ;;  %v3555_v18 = vpop.eup %2872 }
 0x1cf   :  { %v1068_v15 = vsel %vm469_vm2, %v3547_v14, -inf  ;;  %v725_v26 = vsel %vm469_vm2, %v3555_v18, 0.0 }
 0x1d0   :  { %2874 = vpow2.f32 %v958_v1  ;;  %1069 = vmax.xlane.f32.xlu2 %v1068_v15  ;;  %1711 = vmax.xlane.f32.xlu0 %v1710_v16 }
 0x1d1   :  { %2876 = vpow2.f32 %v718_v53 }
 0x1d3   :  { %v3578_v42 = vpop.xlane.xlu2 %954 }
 0x1d4   :  { %v1063_v19 = vpop.f32.mrf.mxu2 }
 0x1d5   :  { %v3566_v27 = vmul.f32 0.125, %v1063_v19 }
 0x1d6   :  { %v3559_v21 = vpop.eup %2874 }
 0x1d7   :  { %v962_v22 = vsel %vm469_vm2, %v3559_v21, 0.0  ;;  %v1071_v32 = vsel %vm469_vm2, %v3566_v27, -inf  ;;  %v3592_v63 = vpop.eup %2876 }
 0x1d8   :  { %963 = vadd.xlane.f32.xlu2 %v962_v22  ;;  %726 = vadd.xlane.f32.xlu0 %v725_v26  ;;  %v722_v35 = vsel %vm469_vm2, %v3592_v63, 0.0 }
 0x1d9   :  { %2803 = vrot.lane.b32.xlu1 %v2802_v6, %s3022_s6 }
 0x1db   :  { %v1192_v54 = vpop.xlane.xlu2 %1191 }
 0x1dc   :  { %v1300_v28 = vpop.f32.mrf.mxu2  ;;  %v1196_v58 = vsub.f32 %v3478_v20, %v1192_v54 }
 0x1dd   :  { %v3568_v29 = vmul.f32 0.125, %v1300_v28 }
 0x1de   :  { %v1198_v61 = vmul.f32 1.442695, %v1196_v58 }
 0x1df   :  { %v1308_v31 = vsel %vm469_vm2, %v3568_v29, -inf }
 0x1e0   :  { %1309 = vmax.xlane.f32.xlu2 %v1308_v31  ;;  %1072 = vmax.xlane.f32.xlu0 %v1071_v32  ;;  %2878 = vpow2.f32 %v1198_v61 }
 0x1e3   :  { %v3620_v28 = vpop.xlane.xlu0 %1194 }
 0x1e4   :  { %v1303_v36 = vpop.f32.mrf.mxu2 }
 0x1e5   :  { %v3574_v37 = vmul.f32 0.125, %v1303_v36 }
 0x1e6   :  { %v3600_v4 = vpop.eup %2878 }
 0x1e7   :  { %v1311_v41 = vsel %vm469_vm2, %v3574_v37, -inf  ;;  %v1202_v7 = vsel %vm469_vm2, %v3600_v4, 0.0 }
 0x1e8   :  { %1312 = vmax.xlane.f32.xlu2 %v1311_v41 }
 0x1eb   :  { %v3614_v19 = vpop.xlane.xlu2 %1471 }
 0x1ec   :  { %v1580_v43 = vpop.f32.mrf.mxu2 }
 0x1ed   :  { %v3580_v45 = vmul.f32 0.125, %v1580_v43 }
 0x1ef   :  { %v1588_v48 = vsel %vm469_vm2, %v3580_v45, -inf }
 0x1f0   :  { %1589 = vmax.xlane.f32.xlu2 %v1588_v48 }
 0x1f4   :  { %v1583_v50 = vpop.f32.mrf.mxu2 }
 0x1f5   :  { %v3585_v51 = vmul.f32 0.125, %v1583_v50 }
 0x1f7   :  { %v1591_v57 = vsel %vm469_vm2, %v3585_v51, -inf }
 0x1f8   :  { %1592 = vmax.xlane.f32.xlu0 %v1591_v57 }
 0x1fc   :  { %v1820_v59 = vpop.f32.mrf.mxu2 }
 0x1fd   :  { %v3590_v62 = vmul.f32 0.125, %v1820_v59 }
 0x1ff   :  { %v1828_v60 = vsel %vm469_vm2, %v3590_v62, -inf }
 0x200   :  { %1829 = vmax.xlane.f32.xlu2 %v1828_v60 }
 0x203   :  { %723 = vadd.xlane.f32.xlu1 %v722_v35 }
 0x204   :  { %v1823_v2 = vpop.f32.mrf.mxu2 }
 0x205   :  { %v3598_v3 = vmul.f32 0.125, %v1823_v2 }
 0x207   :  { %v1831_v20 = vsel %vm469_vm2, %v3598_v3, -inf }
 0x208   :  { %1832 = vmax.xlane.f32.xlu0 %v1831_v20 }
 0x20b   :  { %1203 = vadd.xlane.f32.xlu1 %v1202_v7 }
 0x20c   :  { %v2060_v9 = vpop.f32.mrf.mxu2 }
 0x20d   :  { %v3606_v10 = vmul.f32 0.125, %v2060_v9 }
 0x20f   :  { %v2068_v11 = vsel %vm469_vm2, %v3606_v10, -inf }
 0x210   :  { %2069 = vmax.xlane.f32.xlu0 %v2068_v11 }
 0x214   :  { %v2063_v1 = vpop.f32.mrf.mxu2 }
 0x215   :  { %v3610_v15 = vmul.f32 0.125, %v2063_v1 }
 0x217   :  { %v2071_v16 = vsel %vm469_vm2, %v3610_v15, -inf }
 0x218   :  { %2072 = vmax.xlane.f32.xlu0 %v2071_v16 }
 0x21c   :  { %v2300_v6 = vpop.f32.mrf.mxu2 }
 0x21d   :  { %v3616_v22 = vmul.f32 0.125, %v2300_v6 }
 0x21f   :  { %v2308_v26 = vsel %vm469_vm2, %v3616_v22, -inf }
 0x220   :  { %2309 = vmax.xlane.f32.xlu0 %v2308_v26 }
 0x223   :  { %v590_v31 = vpop.xlane.xlu2 %589 }
 0x224   :  { %v594_v32 = vsub.f32 %v3510_v44, %v590_v31  ;;  %v2303_v36 = vpop.f32.mrf.mxu2 }
 0x225   :  { %v3623_v41 = vmul.f32 0.125, %v2303_v36 }
 0x226   :  { %v596_v43 = vmul.f32 1.442695, %v594_v32 }
 0x227   :  { %v2311_v47 = vsel %vm469_vm2, %v3623_v41, -inf }
 0x228   :  { %2880 = vpow2.f32 %v596_v43  ;;  %2312 = vmax.xlane.f32.xlu0 %v2311_v47 }
 0x22b   :  { %v593_v48 = vpop.xlane.xlu0 %592  ;;  %v484_v49 = vpop.xlane.xlu2 %483 }
 0x22c   :  { %v595_v50 = vsub.f32 %v3515_v12, %v593_v48  ;;  %2882 = vrcp.f32 %v484_v49  ;;  %v499_v12 = vand.u32 2147483648, %v484_v49  ;;  %v497_v9 = vand.u32 2147483647, %v484_v49 }
 0x22d   :  { %vm493_vm4 = vweird.f32 %v484_v49 }
 0x22e   :  { %v3628_v53 = vpop.eup %2880  ;;  %v598_v54 = vmul.f32 1.442695, %v595_v50  ;;  %v500_v6 = vor.u32 1.1754944e-38, %v499_v12  ;;  %vm498_vm6 = vcmp.eq.f32.partialorder %v497_v9, 8.507059e+37 }
 0x22f   :  { %v600_v44 = vsel %vm469_vm2, %v3628_v53, 0.0 }
 0x230   :  { %2884 = vpow2.f32 %v598_v54  ;;  %601 = vadd.xlane.f32.xlu0 %v600_v44 }
 0x232   :  { %v2883_v57 = vpop.eup %2882 }
 0x233   :  { %v489_v58 = vmul.f32 %v2883_v57, %v484_v49  ;;  %v487_v59 = vpop.xlane.xlu0 %486  ;;  %v830_v61 = vpop.xlane.xlu1 %829  ;;  %vm494_vm3 = vweird.f32 %v2883_v57  ;;  %v957_v49 = vsub.f32 %v3472_v13, %v3578_v42 }
 0x234   :  { %2886 = vrcp.f32 %v487_v59  ;;  %v834_v60 = vsub.f32 %v3525_v25, %v830_v61  ;;  %vm495_vm5 = vmor %vm493_vm4, %vm494_vm3  ;;  %v513_v54 = vand.u32 2147483648, %v487_v59  ;;  %v511_v61 = vand.u32 2147483647, %v487_v59 }
 0x235   :  { %v490_v35 = vsub.f32 1.0, %v489_v58  ;;  %vm507_vm8 = vweird.f32 %v487_v59 }
 0x236   :  { %v3633_v2 = vpop.eup %2884  ;;  %v836_v20 = vmul.f32 1.442695, %v834_v60  ;;  %v1705_v60 = vpop.f32.mrf.mxu0  ;;  %vm512_vm10 = vcmp.eq.f32.partialorder %v511_v61, 8.507059e+37 }
 0x237   :  { %v491_v7 = vmul.f32 %v2883_v57, %v490_v35  ;;  %v603_v11 = vsel %vm469_vm2, %v3633_v2, 0.0  ;;  %v514_v35 = vor.u32 1.1754944e-38, %v513_v54  ;;  %v3650_v13 = vmul.f32 0.125, %v1705_v60 }
 0x238   :  { %2888 = vpow2.f32 %v836_v20  ;;  %604 = vadd.xlane.f32.xlu0 %v603_v11 }
 0x239   :  { %v492_v1 = vadd.f32 %v2883_v57, %v491_v7 }
 0x23a   :  { %v2887_v16 = vpop.eup %2886 }
 0x23b   :  { %v496_v26 = vsel %vm495_vm5, %v2883_v57, %v492_v1  ;;  %v503_v25 = vmul.f32 %v2887_v16, %v487_v59  ;;  %v833_v31 = vpop.xlane.xlu2 %832  ;;  %v3637_v32 = vpop.xlane.xlu0 %1474  ;;  %vm508_vm7 = vweird.f32 %v2887_v16  ;;  %v1713_v59 = vsel %vm469_vm2, %v3650_v13, -inf }
 0x23c   :  { %v501_v36 = vsel %vm498_vm6, %v500_v6, %v496_v26  ;;  %v835_v43 = vsub.f32 %v3535_v0, %v833_v31  ;;  %v960_v0 = vmul.f32 1.442695, %v957_v49  ;;  %vm509_vm9 = vmor %vm507_vm8, %vm508_vm7 }
 0x23d   :  { %v504_v47 = vsub.f32 1.0, %v503_v25  ;;  %v516_v48 = vmul.f32 %v3517_v52, %v501_v36 }
 0x23e   :  { %v3641_v50 = vpop.eup %2888  ;;  %v838_v44 = vmul.f32 1.442695, %v835_v43 }
 0x23f   :  { %v505_v58 = vmul.f32 %v2887_v16, %v504_v47  ;;  %2691 = vmatmul.msk.f32.vlgmr.msrb.gmra.mxu1 %vm469_vm2, %v516_v48  ;;  %v840_v57 = vsel %vm469_vm2, %v3641_v50, 0.0 }
 0x240   :  { %2890 = vpow2.f32 %v838_v44  ;;  %1018 = vmatpush.msrb.mxu1 %v3385_v24  ;;  %841 = vadd.xlane.f32.xlu0 %v840_v57  ;;  %v2807_v57 = vpack.i.bf16 %v3401_v38, %v3421_v46 }
 0x241   :  { %v506_v52 = vadd.f32 %v2887_v16, %v505_v58  ;;  %2892 = vpow2.f32 %v960_v0 }
 0x242   :  { %1019 = vmatpush.msrb.mxu1 %v3380_v23 }
 0x243   :  { %v1070_v42 = vpop.xlane.xlu2 %1069  ;;  %v3652_v12 = vpop.xlane.xlu0 %1711  ;;  %v510_v20 = vsel %vm509_vm9, %v2887_v16, %v506_v52 }
 0x244   :  { %v515_v7 = vsel %vm512_vm10, %v514_v35, %v510_v20  ;;  %v1074_v24 = vsub.f32 %v3547_v14, %v1070_v42  ;;  %v1942_v35 = vpop.f32.mrf.mxu0 }
 0x245   :  { %v517_v9 = vmul.f32 %v3527_v56, %v515_v7 }
 0x246   :  { %v3655_v11 = vpop.eup %2890  ;;  %v1076_v1 = vmul.f32 1.442695, %v1074_v24 }
 0x247   :  { %2692 = vmatmul.msk.f32.gmra.mxu1 %vm469_vm2, %v517_v9  ;;  %v843_v23 = vsel %vm469_vm2, %v3655_v11, 0.0  ;;  %v3667_v56 = vpop.eup %2892 }
 0x248   :  { %844 = vadd.xlane.f32.xlu2 %v843_v23  ;;  %1714 = vmax.xlane.f32.xlu0 %v1713_v59  ;;  %2894 = vpow2.f32 %v1076_v1  ;;  %v965_v14 = vsel %vm469_vm2, %v3667_v56, 0.0  ;;  %v1197_v59 = vsub.f32 %v3484_v30, %v3620_v28  ;;  %v1476_v30 = vsub.f32 %v3491_v33, %v3614_v19 }
 0x24b   :  { %v3663_v16 = vpop.xlane.xlu2 %963  ;;  %v3665_v6 = vpop.xlane.xlu0 %726 }
 0x24c   :  { %v3695_v24 = vpop.permute.xlu1 %2803  ;;  %vm747_vm3 = vweird.f32 %v3665_v6  ;;  %vm973_vm7 = vweird.f32 %v3663_v16 }
 0x24e   :  { %v3671_v31 = vpop.eup %2894 }
 0x24f   :  { %v1080_v49 = vsel %vm469_vm2, %v3671_v31, 0.0 }
 0x250   :  { %966 = vadd.xlane.f32.xlu0 %v965_v14  ;;  %v1945_v14 = vpop.f32.mrf.mxu0 }
 0x253   :  { %v1310_v26 = vpop.xlane.xlu2 %1309  ;;  %v1073_v25 = vpop.xlane.xlu0 %1072 }
 0x254   :  { %v1314_v36 = vsub.f32 %v3568_v29, %v1310_v26  ;;  %v1075_v43 = vsub.f32 %v3566_v27, %v1073_v25  ;;  %v1200_v26 = vmul.f32 1.442695, %v1197_v59  ;;  %v3704_v25 = vmul.f32 0.125, %v1945_v14 }
 0x256   :  { %v1316_v47 = vmul.f32 1.442695, %v1314_v36  ;;  %v1078_v48 = vmul.f32 1.442695, %v1075_v43  ;;  %v1953_v43 = vsel %vm469_vm2, %v3704_v25, -inf }
 0x258   :  { %2896 = vpow2.f32 %v1316_v47  ;;  %1081 = vadd.xlane.f32.xlu0 %v1080_v49  ;;  %v1478_v49 = vmul.f32 1.442695, %v1476_v30  ;;  %v3735_v30 = vmul.f32 0.125, %v1942_v35  ;;  %v753_v35 = vand.u32 2147483648, %v3665_v6 }
 0x259   :  { %2898 = vpow2.f32 %v1078_v48 }
 0x25b   :  { %v1313_v54 = vpop.xlane.xlu2 %1312 }
 0x25c   :  { %v1315_v44 = vsub.f32 %v3574_v37, %v1313_v54 }
 0x25e   :  { %v3678_v58 = vpop.eup %2896  ;;  %v1318_v61 = vmul.f32 1.442695, %v1315_v44 }
 0x25f   :  { %v3682_v29 = vpop.eup %2898  ;;  %v1320_v27 = vsel %vm469_vm2, %v3678_v58, 0.0 }
 0x260   :  { %2900 = vpow2.f32 %v1318_v61  ;;  %2808 = vrot.lane.b32.xlu2 %v2807_v57, %s3022_s6  ;;  %v1083_v60 = vsel %vm469_vm2, %v3682_v29, 0.0  ;;  %1321 = vadd.xlane.f32.xlu0 %v1320_v27  ;;  %v3723_v27 = vpop.f32.mrf.mxu0 }
 0x261   :  { %1084 = vadd.xlane.f32.xlu1 %v1083_v60 }
 0x263   :  { %v1590_v37 = vpop.xlane.xlu2 %1589 }
 0x264   :  { %v1594_v52 = vsub.f32 %v3580_v45, %v1590_v37 }
 0x266   :  { %v3690_v0 = vpop.eup %2900  ;;  %v1596_v42 = vmul.f32 1.442695, %v1594_v52 }
 0x267   :  { %v1323_v20 = vsel %vm469_vm2, %v3690_v0, 0.0 }
 0x268   :  { %2902 = vpow2.f32 %v1596_v42 }
 0x269   :  { %1324 = vadd.xlane.f32.xlu1 %v1323_v20  ;;  %2904 = vrcp.f32 %v3665_v6 }
 0x26b   :  { %v1593_v7 = vpop.xlane.xlu0 %1592 }
 0x26c   :  { %v1595_v9 = vsub.f32 %v3585_v51, %v1593_v7 }
 0x26e   :  { %v3697_v23 = vpop.eup %2902  ;;  %v1598_v45 = vmul.f32 1.442695, %v1595_v9 }
 0x26f   :  { %v1600_v1 = vsel %vm469_vm2, %v3697_v23, 0.0  ;;  %v3706_v51 = vpop.eup %2904 }
 0x270   :  { %2906 = vpow2.f32 %v1598_v45  ;;  %1601 = vadd.xlane.f32.xlu0 %v1600_v1  ;;  %v743_v48 = vmul.f32 %v3706_v51, %v3665_v6  ;;  %vm748_vm14 = vweird.f32 %v3706_v51 }
 0x271   :  { %2908 = vpow2.f32 %v1200_v26  ;;  %v3731_v26 = vpop.f32.mrf.mxu1  ;;  %vm749_vm4 = vmor %vm747_vm3, %vm748_vm14 }
 0x272   :  { %v744_v19 = vsub.f32 1.0, %v743_v48 }
 0x273   :  { %v1830_v54 = vpop.xlane.xlu2 %1829 }
 0x274   :  { %v1834_v60 = vsub.f32 %v3590_v62, %v1830_v54  ;;  %v745_v7 = vmul.f32 %v3706_v51, %v744_v19 }
 0x276   :  { %v3708_v36 = vpop.eup %2906  ;;  %v724_v28 = vpop.xlane.xlu1 %723  ;;  %v1836_v59 = vmul.f32 1.442695, %v1834_v60  ;;  %v1477_v60 = vsub.f32 %v3533_v34, %v3637_v32 }
 0x277   :  { %2910 = vrcp.f32 %v724_v28  ;;  %v1603_v47 = vsel %vm469_vm2, %v3708_v36, 0.0  ;;  %v3719_v57 = vpop.eup %2908  ;;  %v739_v9 = vand.u32 2147483648, %v724_v28  ;;  %v737_v1 = vand.u32 2147483647, %v724_v28 }
 0x278   :  { %2912 = vrcp.f32 %v3663_v16  ;;  %1954 = vmax.xlane.f32.xlu0 %v1953_v43  ;;  %1604 = vadd.xlane.f32.xlu1 %v1603_v47  ;;  %v1205_v52 = vsel %vm469_vm2, %v3719_v57, 0.0  ;;  %vm733_vm12 = vweird.f32 %v724_v28 }
 0x279   :  { %2914 = vpow2.f32 %v1478_v49  ;;  %v740_v48 = vor.u32 1.1754944e-38, %v739_v9  ;;  %v746_v49 = vadd.f32 %v3706_v51, %v745_v7  ;;  %vm738_vm15 = vcmp.eq.f32.partialorder %v737_v1, 8.507059e+37 }
 0x27a   :  { %2916 = vpow2.f32 %v1836_v59  ;;  %v1480_v7 = vmul.f32 1.442695, %v1477_v60  ;;  %v754_v9 = vor.u32 1.1754944e-38, %v753_v35 }
 0x27b   :  { %v1833_v44 = vpop.xlane.xlu0 %1832 }
 0x27c   :  { %v1835_v19 = vsub.f32 %v3598_v3, %v1833_v44  ;;  %v751_v3 = vand.u32 2147483647, %v3665_v6  ;;  %v750_v44 = vsel %vm749_vm4, %v3706_v51, %v746_v49  ;;  %v3761_v6 = vpop.f32.mrf.mxu1 }
 0x27d   :  { %v2911_v33 = vpop.eup %2910 }
 0x27e   :  { %v3721_v61 = vpop.eup %2912  ;;  %v729_v37 = vmul.f32 %v2911_v33, %v724_v28  ;;  %vm734_vm11 = vweird.f32 %v2911_v33  ;;  %v1838_v32 = vmul.f32 1.442695, %v1835_v19  ;;  %vm752_vm5 = vcmp.eq.f32.partialorder %v751_v3, 8.507059e+37 }
 0x27f   :  { %v969_v20 = vmul.f32 %v3721_v61, %v3663_v16  ;;  %v3733_v62 = vpop.eup %2914  ;;  %vm735_vm13 = vmor %vm733_vm12, %vm734_vm11  ;;  %vm974_vm6 = vweird.f32 %v3721_v61 }
 0x280   :  { %v730_v42 = vsub.f32 1.0, %v729_v37  ;;  %1206 = vadd.xlane.f32.xlu0 %v1205_v52  ;;  %v1482_v28 = vsel %vm469_vm2, %v3733_v62, 0.0  ;;  %v2185_v52 = vpop.f32.mrf.mxu0  ;;  %v3758_v59 = vpop.eup %2916  ;;  %2918 = vpow2.f32 %v1838_v32  ;;  %vm975_vm8 = vmor %vm973_vm7, %vm974_vm6 }
 0x281   :  { %v970_v47 = vsub.f32 1.0, %v969_v20  ;;  %v3755_v20 = vmul.f32 0.125, %v2185_v52  ;;  %2920 = vpow2.f32 %v1480_v7 }
 0x282   :  { %v731_v45 = vmul.f32 %v2911_v33, %v730_v42  ;;  %v1950_v42 = vsel %vm469_vm2, %v3735_v30, -inf }
 0x283   :  { %v2070_v14 = vpop.xlane.xlu0 %2069  ;;  %v971_v34 = vmul.f32 %v3721_v61, %v970_v47  ;;  %v2193_v47 = vsel %vm469_vm2, %v3755_v20, -inf }
 0x284   :  { %v732_v43 = vadd.f32 %v2911_v33, %v731_v45  ;;  %v755_v45 = vsel %vm752_vm5, %v754_v9, %v750_v44  ;;  %v2074_v51 = vsub.f32 %v3606_v10, %v2070_v14 }
 0x285   :  { %v972_v1 = vadd.f32 %v3721_v61, %v971_v34  ;;  %v757_v49 = vmul.f32 %v3555_v18, %v755_v45 }
 0x286   :  { %v736_v54 = vsel %vm735_vm13, %v2911_v33, %v732_v43  ;;  %v979_v43 = vand.u32 2147483648, %v3663_v16  ;;  %v2076_v14 = vmul.f32 1.442695, %v2074_v51  ;;  %v3779_v60 = vpop.eup %2918 }
 0x287   :  { %v741_v37 = vsel %vm738_vm15, %v740_v48, %v736_v54  ;;  %v2812_v48 = vpack.i.bf16 %v3731_v26, %v3761_v6  ;;  %v976_v10 = vsel %vm975_vm8, %v3721_v61, %v972_v1  ;;  %v3782_v35 = vpop.eup %2920  ;;  %v1843_v61 = vsel %vm469_vm2, %v3779_v60, 0.0 }
 0x288   :  { %1483 = vadd.xlane.f32.xlu0 %v1482_v28  ;;  %v756_v33 = vmul.f32 %v3592_v63, %v741_v37  ;;  %v980_v54 = vor.u32 1.1754944e-38, %v979_v43  ;;  %2922 = vpow2.f32 %v2076_v14  ;;  %v1485_v52 = vsel %vm469_vm2, %v3782_v35, 0.0 }
 0x289   :  { %1951 = vmax.xlane.f32.xlu2 %v1950_v42 }
 0x28a   :  { %2703 = vmatmul.msk.f32.vlgmr.msra.gmra.mxu1 %vm469_vm2, %v756_v33 }
 0x28b   :  { %1258 = vmatpush.msra.mxu1 %v3553_v17  ;;  %v2073_v63 = vpop.xlane.xlu0 %2072  ;;  %v1840_v17 = vsel %vm469_vm2, %v3758_v59, 0.0 }
 0x28c   :  { %v2075_v18 = vsub.f32 %v3610_v15, %v2073_v63 }
 0x28d   :  { %1259 = vmatpush.msra.mxu1 %v3542_v5  ;;  %v977_v5 = vand.u32 2147483647, %v3663_v16 }
 0x28e   :  { %v2078_v33 = vmul.f32 1.442695, %v2075_v18  ;;  %v3792_v3 = vpop.eup %2922 }
 0x28f   :  { %vm978_vm9 = vcmp.eq.f32.partialorder %v977_v5, 8.507059e+37 }
 0x290   :  { %1841 = vadd.xlane.f32.xlu0 %v1840_v17  ;;  %v981_v37 = vsel %vm978_vm9, %v980_v54, %v976_v10 }
 0x291   :  { %2194 = vmax.xlane.f32.xlu2 %v2193_v47  ;;  %2813 = vrot.lane.b32.xlu1 %v2812_v48, %s3022_s6  ;;  %v996_v42 = vmul.f32 %v3559_v21, %v981_v37  ;;  %v2080_v21 = vsel %vm469_vm2, %v3792_v3, 0.0 }
 0x292   :  { %2704 = vmatmul.msk.f32.gmra.mxu1 %vm469_vm2, %v757_v49 }
 0x293   :  { %v2310_v19 = vpop.xlane.xlu0 %2309 }
 0x294   :  { %v2314_v16 = vsub.f32 %v3616_v22, %v2310_v19  ;;  %v3810_v19 = vpop.f32.mrf.mxu3 }
 0x296   :  { %v2316_v28 = vmul.f32 1.442695, %v2314_v16 }
 0x298   :  { %2924 = vpow2.f32 %v2316_v28  ;;  %1844 = vadd.xlane.f32.xlu0 %v1843_v61  ;;  %v2800_v28 = vunpack.i.l.bf16 %v3523_v55  ;;  %v3815_v61 = vmul.f32 0.125, %v3723_v27 }
 0x299   :  { %1486 = vadd.xlane.f32.xlu2 %v1485_v52  ;;  %2926 = vpow2.f32 %v2078_v33  ;;  %v2801_v33 = vunpack.i.h.bf16 %v3523_v55 }
 0x29a   :  { %2715 = vmatmul.msk.f32.vlgmr.msrb.gmra.mxu1 %vm469_vm2, %v996_v42 }
 0x29b   :  { %1538 = vmatpush.msrb.mxu1 %v3421_v46  ;;  %v2313_v22 = vpop.xlane.xlu0 %2312 }
 0x29c   :  { %v2315_v15 = vsub.f32 %v3623_v41, %v2313_v22 }
 0x29d   :  { %1539 = vmatpush.msrb.mxu1 %v3401_v38 }
 0x29e   :  { %v3796_v34 = vpop.eup %2924  ;;  %v2318_v32 = vmul.f32 1.442695, %v2315_v15 }
 0x29f   :  { %v2320_v44 = vsel %vm469_vm2, %v3796_v34, 0.0  ;;  %v3802_v7 = vpop.eup %2926 }
 0x2a0   :  { %2928 = vpow2.f32 %v2318_v32  ;;  %2081 = vadd.xlane.f32.xlu0 %v2080_v21  ;;  %v2083_v38 = vsel %vm469_vm2, %v3802_v7, 0.0 }
 0x2a1   :  { %2321 = vadd.xlane.f32.xlu2 %v2320_v44 }
 0x2a3   :  { %v602_v46 = vpop.xlane.xlu0 %601 }
 0x2a4   :  { %2930 = vrcp.f32 %v602_v46  ;;  %v617_v43 = vand.u32 2147483648, %v602_v46  ;;  %v615_v47 = vand.u32 2147483647, %v602_v46  ;;  %vm611_vm11 = vweird.f32 %v602_v46 }
 0x2a6   :  { %v3804_v41 = vpop.eup %2928  ;;  %v618_v49 = vor.u32 1.1754944e-38, %v617_v43  ;;  %vm616_vm13 = vcmp.eq.f32.partialorder %v615_v47, 8.507059e+37 }
 0x2a7   :  { %v2323_v9 = vsel %vm469_vm2, %v3804_v41, 0.0 }
 0x2a8   :  { %2084 = vadd.xlane.f32.xlu0 %v2083_v38  ;;  %v2190_v38 = vsel %vm469_vm2, %v3815_v61, -inf }
 0x2a9   :  { %2324 = vadd.xlane.f32.xlu2 %v2323_v9 }
 0x2aa   :  { %v2931_v63 = vpop.eup %2930 }
 0x2ab   :  { %v607_v45 = vmul.f32 %v2931_v63, %v602_v46  ;;  %v605_v1 = vpop.xlane.xlu0 %604  ;;  %vm612_vm10 = vweird.f32 %v2931_v63 }
 0x2ac   :  { %2932 = vrcp.f32 %v605_v1  ;;  %vm613_vm12 = vmor %vm611_vm11, %vm612_vm10  ;;  %v631_v42 = vand.u32 2147483648, %v605_v1  ;;  %v629_v22 = vand.u32 2147483647, %v605_v1  ;;  %vm625_vm15 = vweird.f32 %v605_v1 }
 0x2ad   :  { %v608_v51 = vsub.f32 1.0, %v607_v45 }
 0x2ae   :  { %v632_v27 = vor.u32 1.1754944e-38, %v631_v42  ;;  %vm630_vm4 = vcmp.eq.f32.partialorder %v629_v22, 8.507059e+37 }
 0x2af   :  { %v609_v17 = vmul.f32 %v2931_v63, %v608_v51 }
 0x2b1   :  { %v610_v5 = vadd.f32 %v2931_v63, %v609_v17 }
 0x2b2   :  { %v2933_v48 = vpop.eup %2932 }
 0x2b3   :  { %v614_v10 = vsel %vm613_vm12, %v2931_v63, %v610_v5  ;;  %v621_v14 = vmul.f32 %v2933_v48, %v605_v1  ;;  %v842_v54 = vpop.xlane.xlu0 %841  ;;  %vm626_vm14 = vweird.f32 %v2933_v48  ;;  %v3829_v63 = vpop.xlane.xlu1 %1203 }
 0x2b4   :  { %v619_v16 = vsel %vm616_vm13, %v618_v49, %v614_v10  ;;  %2934 = vrcp.f32 %v842_v54  ;;  %vm3821_vm3 = vmor %vm625_vm15, %vm626_vm14  ;;  %v3833_v1 = vpop.f32.mrf.mxu3  ;;  %v857_v47 = vand.u32 2147483648, %v842_v54  ;;  %v855_v10 = vand.u32 2147483647, %v842_v54 }
 0x2b5   :  { %v622_v37 = vsub.f32 1.0, %v621_v14  ;;  %v634_v18 = vmul.f32 %v3628_v53, %v619_v16  ;;  %v2817_v53 = vpack.i.bf16 %v3504_v39, %v3507_v40  ;;  %v2822_v17 = vpack.i.bf16 %v3810_v19, %v3833_v1 }
 0x2b6   :  { %vm851_vm6 = vweird.f32 %v842_v54  ;;  %v858_v16 = vor.u32 1.1754944e-38, %v857_v47  ;;  %vm856_vm8 = vcmp.eq.f32.partialorder %v855_v10, 8.507059e+37 }
 0x2b7   :  { %v623_v52 = vmul.f32 %v2933_v48, %v622_v37  ;;  %2697 = vmatmul.msk.f32.vlgmr.msrb.gmra.mxu3 %vm469_vm2, %v634_v18 }
 0x2b8   :  { %1144 = vmatpush.msrb.mxu3 %v2800_v28 }
 0x2b9   :  { %v624_v15 = vadd.f32 %v2933_v48, %v623_v52 }
 0x2ba   :  { %v2935_v32 = vpop.eup %2934  ;;  %1145 = vmatpush.msrb.mxu3 %v2801_v33 }
 0x2bb   :  { %v847_v44 = vmul.f32 %v2935_v32, %v842_v54  ;;  %v845_v46 = vpop.xlane.xlu2 %844  ;;  %v1715_v55 = vpop.xlane.xlu0 %1714  ;;  %v628_v9 = vsel %vm3821_vm3, %v2933_v48, %v624_v15  ;;  %2191 = vmax.xlane.f32.xlu1 %v2190_v38  ;;  %vm852_vm5 = vweird.f32 %v2935_v32  ;;  %v2805_v54 = vunpack.i.l.bf16 %v3695_v24 }
 0x2bc   :  { %2936 = vrcp.f32 %v845_v46  ;;  %v1717_v45 = vsub.f32 %v3650_v13, %v1715_v55  ;;  %2818 = vrot.lane.b32.xlu0 %v2817_v53, %s3022_s6  ;;  %v633_v43 = vsel %vm630_vm4, %v632_v27, %v628_v9  ;;  %vm853_vm7 = vmor %vm851_vm6, %vm852_vm5  ;;  %v871_v53 = vand.u32 2147483648, %v845_v46 }
 0x2bd   :  { %v848_v51 = vsub.f32 1.0, %v847_v44  ;;  %v635_v48 = vmul.f32 %v3633_v2, %v633_v43  ;;  %2938 = vrcp.f32 %v3829_v63  ;;  %v2806_v27 = vunpack.i.h.bf16 %v3695_v24 }
 0x2be   :  { %v1720_v5 = vmul.f32 1.442695, %v1717_v45  ;;  %vm865_vm10 = vweird.f32 %v845_v46  ;;  %v872_v55 = vor.u32 1.1754944e-38, %v871_v53  ;;  %vm1213_vm3 = vweird.f32 %v3829_v63 }
 0x2bf   :  { %v849_v49 = vmul.f32 %v2935_v32, %v848_v51  ;;  %2698 = vmatmul.msk.f32.gmra.mxu3 %vm469_vm2, %v635_v48 }
 0x2c0   :  { %2940 = vpow2.f32 %v1720_v5  ;;  %v1716_v5 = vsub.f32 %v3544_v8, %v3652_v12 }
 0x2c1   :  { %v850_v13 = vadd.f32 %v2935_v32, %v849_v49  ;;  %2823 = vrot.lane.b32.xlu2 %v2822_v17, %s3022_s6 }
 0x2c2   :  { %v2937_v14 = vpop.eup %2936 }
 0x2c3   :  { %v854_v37 = vsel %vm853_vm7, %v2935_v32, %v850_v13  ;;  %v861_v18 = vmul.f32 %v2937_v14, %v845_v46  ;;  %v967_v28 = vpop.xlane.xlu0 %966  ;;  %v3841_v52 = vpop.eup %2938  ;;  %vm866_vm9 = vweird.f32 %v2937_v14  ;;  %v869_v32 = vand.u32 2147483647, %v845_v46 }
 0x2c4   :  { %v859_v2 = vsel %vm856_vm8, %v858_v16, %v854_v37  ;;  %2942 = vrcp.f32 %v967_v28  ;;  %v1209_v44 = vmul.f32 %v3841_v52, %v3829_v63  ;;  %vm867_vm11 = vmor %vm865_vm10, %vm866_vm9  ;;  %v993_v48 = vand.u32 2147483648, %v967_v28 }
 0x2c5   :  { %v862_v42 = vsub.f32 1.0, %v861_v18  ;;  %v874_v33 = vmul.f32 %v3641_v50, %v859_v2  ;;  %vm870_vm12 = vcmp.eq.f32.partialorder %v869_v32, 8.507059e+37  ;;  %vm987_vm14 = vweird.f32 %v967_v28 }
 0x2c6   :  { %v3844_v22 = vpop.eup %2940  ;;  %v1210_v43 = vsub.f32 1.0, %v1209_v44  ;;  %v991_v13 = vand.u32 2147483647, %v967_v28  ;;  %v1718_v37 = vmul.f32 1.442695, %v1716_v5  ;;  %vm1214_vm4 = vweird.f32 %v3841_v52 }
 0x2c7   :  { %v863_v15 = vmul.f32 %v2937_v14, %v862_v42  ;;  %v1725_v21 = vsel %vm469_vm2, %v3844_v22, 0.0  ;;  %2709 = vmatmul.msk.f32.vlgmr.msra.gmra.mxu3 %vm469_vm2, %v874_v33  ;;  %v994_v12 = vor.u32 1.1754944e-38, %v993_v48  ;;  %v1217_v33 = vand.u32 2147483647, %v3829_v63  ;;  %vm3880_vm7 = vmor %vm1213_vm3, %vm1214_vm4 }
 0x2c8   :  { %1726 = vadd.xlane.f32.xlu1 %v1725_v21  ;;  %1384 = vmatpush.msra.mxu3 %v2805_v54  ;;  %v1211_v49 = vmul.f32 %v3841_v52, %v1210_v43  ;;  %vm992_vm5 = vcmp.eq.f32.partialorder %v991_v13, 8.507059e+37  ;;  %v1219_v54 = vand.u32 2147483648, %v3829_v63 }
 0x2c9   :  { %v864_v50 = vadd.f32 %v2937_v14, %v863_v15  ;;  %vm1218_vm10 = vcmp.eq.f32.partialorder %v1217_v33, 8.507059e+37 }
 0x2ca   :  { %v2943_v38 = vpop.eup %2942  ;;  %1385 = vmatpush.msra.mxu3 %v2806_v27  ;;  %v1212_v2 = vadd.f32 %v3841_v52, %v1211_v49 }
 0x2cb   :  { %v983_v9 = vmul.f32 %v2943_v38, %v967_v28  ;;  %v1082_v45 = vpop.xlane.xlu0 %1081  ;;  %v868_v51 = vsel %vm867_vm11, %v2937_v14, %v864_v50  ;;  %vm988_vm13 = vweird.f32 %v2943_v38 }
 0x2cc   :  { %2944 = vrcp.f32 %v1082_v45  ;;  %v873_v47 = vsel %vm870_vm12, %v872_v55, %v868_v51  ;;  %vm3858_vm15 = vmor %vm987_vm14, %vm988_vm13  ;;  %v1097_v15 = vand.u32 2147483648, %v1082_v45  ;;  %v1095_v32 = vand.u32 2147483647, %v1082_v45 }
 0x2cd   :  { %v984_v17 = vsub.f32 1.0, %v983_v9  ;;  %v875_v24 = vmul.f32 %v3655_v11, %v873_v47  ;;  %v1216_v50 = vsel %vm3880_vm7, %v3841_v52, %v1212_v2  ;;  %vm1091_vm8 = vweird.f32 %v1082_v45  ;;  %v2809_v47 = vpop.permute.xlu2 %2808 }
 0x2ce   :  { %v1098_v9 = vor.u32 1.1754944e-38, %v1097_v15  ;;  %vm1096_vm11 = vcmp.eq.f32.partialorder %v1095_v32, 8.507059e+37  ;;  %v2810_v49 = vunpack.i.l.bf16 %v2809_v47 }
 0x2cf   :  { %v985_v46 = vmul.f32 %v2943_v38, %v984_v17  ;;  %2710 = vmatmul.msk.f32.gmra.mxu3 %vm469_vm2, %v875_v24 }
 0x2d1   :  { %v986_v10 = vadd.f32 %v2943_v38, %v985_v46 }
 0x2d2   :  { %v2945_v14 = vpop.eup %2944 }
 0x2d3   :  { %v1087_v11 = vmul.f32 %v2945_v14, %v1082_v45  ;;  %v3862_v18 = vpop.xlane.xlu0 %1321  ;;  %v990_v8 = vsel %vm3858_vm15, %v2943_v38, %v986_v10  ;;  %vm1092_vm6 = vweird.f32 %v2945_v14 }
 0x2d4   :  { %2946 = vrcp.f32 %v3862_v18  ;;  %v3869_v28 = vpop.xlane.xlu1 %1084  ;;  %v995_v53 = vsel %vm992_vm5, %v994_v12, %v990_v8  ;;  %vm1093_vm9 = vmor %vm1091_vm8, %vm1092_vm6  ;;  %vm1331_vm4 = vweird.f32 %v3862_v18 }
 0x2d5   :  { %v1088_v42 = vsub.f32 1.0, %v1087_v11  ;;  %2948 = vrcp.f32 %v3869_v28  ;;  %v997_v27 = vmul.f32 %v3667_v56, %v995_v53  ;;  %v1220_v56 = vor.u32 1.1754944e-38, %v1219_v54 }
 0x2d6   :  { %2950 = vpow2.f32 %v1718_v37  ;;  %v1111_v16 = vand.u32 2147483648, %v3869_v28  ;;  %v2811_v37 = vunpack.i.h.bf16 %v2809_v47  ;;  %v1109_v8 = vand.u32 2147483647, %v3869_v28 }
 0x2d7   :  { %v1089_v21 = vmul.f32 %v2945_v14, %v1088_v42  ;;  %2716 = vmatmul.msk.f32.gmra.mxu1 %vm469_vm2, %v997_v27  ;;  %v1221_v17 = vsel %vm1218_vm10, %v1220_v56, %v1216_v50  ;;  %vm1105_vm13 = vweird.f32 %v3869_v28 }
 0x2d8   :  { %v1236_v10 = vmul.f32 %v3600_v4, %v1221_v17  ;;  %v1112_v2 = vor.u32 1.1754944e-38, %v1111_v16  ;;  %vm1110_vm3 = vcmp.eq.f32.partialorder %v1109_v8, 8.507059e+37 }
 0x2d9   :  { %v1090_v38 = vadd.f32 %v2945_v14, %v1089_v21 }
 0x2da   :  { %v3888_v55 = vpop.eup %2946 }
 0x2db   :  { %v2949_v51 = vpop.eup %2948  ;;  %v1094_v63 = vsel %vm1093_vm9, %v2945_v14, %v1090_v38  ;;  %v1327_v43 = vmul.f32 %v3888_v55, %v3862_v18  ;;  %vm1332_vm15 = vweird.f32 %v3888_v55 }
 0x2dc   :  { %v1099_v52 = vsel %vm1096_vm11, %v1098_v9, %v1094_v63  ;;  %v1101_v45 = vmul.f32 %v2949_v51, %v3869_v28  ;;  %v3893_v24 = vpop.xlane.xlu1 %1324  ;;  %v3898_v13 = vpop.eup %2950  ;;  %vm1106_vm12 = vweird.f32 %v2949_v51  ;;  %v1337_v28 = vand.u32 2147483648, %v3862_v18  ;;  %vm1333_vm5 = vmor %vm1331_vm4, %vm1332_vm15 }
 0x2dd   :  { %v1328_v5 = vsub.f32 1.0, %v1327_v43  ;;  %2952 = vrcp.f32 %v3893_v24  ;;  %v1114_v48 = vmul.f32 %v3671_v31, %v1099_v52  ;;  %v1722_v33 = vsel %vm469_vm2, %v3898_v13, 0.0  ;;  %vm1107_vm14 = vmor %vm1105_vm13, %vm1106_vm12 }
 0x2de   :  { %v1102_v46 = vsub.f32 1.0, %v1101_v45  ;;  %v1338_v50 = vor.u32 1.1754944e-38, %v1337_v28  ;;  %vm1345_vm8 = vweird.f32 %v3893_v24  ;;  %v1349_v43 = vand.u32 2147483647, %v3893_v24 }
 0x2df   :  { %2721 = vmatmul.msk.f32.vlgmr.msrb.gmra.mxu3 %vm469_vm2, %v1114_v48  ;;  %v1329_v11 = vmul.f32 %v3888_v55, %v1328_v5  ;;  %2727 = vmatmul.msk.f32.vlgmr.msra.gmra.mxu1 %vm469_vm2, %v1236_v10 }
 0x2e0   :  { %v1103_v14 = vmul.f32 %v2949_v51, %v1102_v46  ;;  %1664 = vmatpush.msrb.mxu3 %v2810_v49  ;;  %1778 = vmatpush.msra.mxu1 %v3761_v6  ;;  %vm1350_vm10 = vcmp.eq.f32.partialorder %v1349_v43, 8.507059e+37 }
 0x2e1   :  { %v1330_v54 = vadd.f32 %v3888_v55, %v1329_v11 }
 0x2e2   :  { %v1104_v31 = vadd.f32 %v2949_v51, %v1103_v14  ;;  %1665 = vmatpush.msrb.mxu3 %v2811_v37  ;;  %1779 = vmatpush.msra.mxu1 %v3731_v26  ;;  %v1335_v26 = vand.u32 2147483647, %v3862_v18 }
 0x2e3   :  { %v2953_v4 = vpop.eup %2952  ;;  %v1602_v12 = vpop.xlane.xlu0 %1601  ;;  %v1334_v32 = vsel %vm1333_vm5, %v3888_v55, %v1330_v54 }
 0x2e4   :  { %v1341_v42 = vmul.f32 %v2953_v4, %v3893_v24  ;;  %2954 = vrcp.f32 %v1602_v12  ;;  %v1108_v6 = vsel %vm1107_vm14, %v2949_v51, %v1104_v31  ;;  %vm1336_vm6 = vcmp.eq.f32.partialorder %v1335_v26, 8.507059e+37 }
 0x2e5   :  { %v1113_v53 = vsel %vm1110_vm3, %v1112_v2, %v1108_v6  ;;  %v1339_v9 = vsel %vm1336_vm6, %v1338_v50, %v1334_v32  ;;  %vm1346_vm7 = vweird.f32 %v2953_v4  ;;  %v1617_v10 = vand.u32 2147483648, %v1602_v12 }
 0x2e6   :  { %v1342_v15 = vsub.f32 1.0, %v1341_v42  ;;  %1723 = vadd.xlane.f32.xlu0 %v1722_v33  ;;  %v1115_v21 = vmul.f32 %v3682_v29, %v1113_v53  ;;  %v1351_v29 = vand.u32 2147483648, %v3893_v24  ;;  %v1354_v55 = vmul.f32 %v3678_v58, %v1339_v9  ;;  %vm1347_vm9 = vmor %vm1345_vm8, %vm1346_vm7 }
 0x2e7   :  { %vm1611_vm12 = vweird.f32 %v1602_v12  ;;  %v1615_v58 = vand.u32 2147483647, %v1602_v12  ;;  %v1618_v8 = vor.u32 1.1754944e-38, %v1617_v10 }
 0x2e8   :  { %v1343_v27 = vmul.f32 %v2953_v4, %v1342_v15  ;;  %2722 = vmatmul.msk.f32.gmra.mxu3 %vm469_vm2, %v1115_v21  ;;  %v1352_v52 = vor.u32 1.1754944e-38, %v1351_v29 }
 0x2e9   :  { %vm1616_vm14 = vcmp.eq.f32.partialorder %v1615_v58, 8.507059e+37 }
 0x2ea   :  { %v2955_v44 = vpop.eup %2954  ;;  %v1344_v18 = vadd.f32 %v2953_v4, %v1343_v27 }
 0x2eb   :  { %v1607_v38 = vmul.f32 %v2955_v44, %v1602_v12  ;;  %v1955_v56 = vpop.xlane.xlu0 %1954  ;;  %v3919_v51 = vpop.xlane.xlu1 %1604  ;;  %vm1612_vm11 = vweird.f32 %v2955_v44 }
 0x2ec   :  { %2956 = vrcp.f32 %v3919_v51  ;;  %v1348_v47 = vsel %vm1347_vm9, %v2953_v4, %v1344_v18  ;;  %vm1613_vm13 = vmor %vm1611_vm12, %vm1612_vm11  ;;  %v1957_v42 = vsub.f32 %v3704_v25, %v1955_v56  ;;  %vm1625_vm3 = vweird.f32 %v3919_v51 }
 0x2ed   :  { %v1608_v63 = vsub.f32 1.0, %v1607_v38  ;;  %v1353_v48 = vsel %vm1350_vm10, %v1352_v52, %v1348_v47  ;;  %v1631_v6 = vand.u32 2147483648, %v3919_v51  ;;  %v1629_v15 = vand.u32 2147483647, %v3919_v51 }
 0x2ee   :  { %v1355_v24 = vmul.f32 %v3690_v0, %v1353_v48  ;;  %v1960_v25 = vmul.f32 1.442695, %v1957_v42 }
 0x2ef   :  { %v1609_v17 = vmul.f32 %v2955_v44, %v1608_v63  ;;  %v1632_v38 = vor.u32 1.1754944e-38, %v1631_v6  ;;  %vm1630_vm8 = vcmp.eq.f32.partialorder %v1629_v15, 8.507059e+37 }
 0x2f0   :  { %2733 = vmatmul.msk.f32.vlgmr.msra.gmra.mxu3 %vm469_vm2, %v1354_v55 }
 0x2f1   :  { %v1610_v49 = vadd.f32 %v2955_v44, %v1609_v17 }
 0x2f2   :  { %v2957_v45 = vpop.eup %2956 }
 0x2f3   :  { %v1207_v5 = vpop.xlane.xlu0 %1206  ;;  %v1621_v46 = vmul.f32 %v2957_v45, %v3919_v51  ;;  %v1614_v16 = vsel %vm1613_vm13, %v2955_v44, %v1610_v49  ;;  %vm1626_vm15 = vweird.f32 %v2957_v45 }
 0x2f4   :  { %2958 = vrcp.f32 %v1207_v5  ;;  %v1619_v2 = vsel %vm1616_vm14, %v1618_v8, %v1614_v16  ;;  %v1233_v28 = vand.u32 2147483648, %v1207_v5  ;;  %v1231_v32 = vand.u32 2147483647, %v1207_v5  ;;  %vm3939_vm5 = vmor %vm1625_vm3, %vm1626_vm15 }
 0x2f5   :  { %v1622_v14 = vsub.f32 1.0, %v1621_v46  ;;  %v1634_v21 = vmul.f32 %v3697_v23, %v1619_v2  ;;  %vm1227_vm6 = vweird.f32 %v1207_v5 }
 0x2f6   :  { %v1234_v56 = vor.u32 1.1754944e-38, %v1233_v28  ;;  %vm1232_vm9 = vcmp.eq.f32.partialorder %v1231_v32, 8.507059e+37 }
 0x2f7   :  { %v1623_v37 = vmul.f32 %v2957_v45, %v1622_v14 }
 0x2f8   :  { %2734 = vmatmul.msk.f32.gmra.mxu3 %vm469_vm2, %v1355_v24 }
 0x2f9   :  { %v1624_v54 = vadd.f32 %v2957_v45, %v1623_v37 }
 0x2fa   :  { %v2959_v11 = vpop.eup %2958 }
 0x2fb   :  { %v1223_v31 = vmul.f32 %v2959_v11, %v1207_v5  ;;  %v3930_v4 = vpop.xlane.xlu0 %1483  ;;  %vm1228_vm4 = vweird.f32 %v2959_v11  ;;  %v1628_v44 = vsel %vm3939_vm5, %v2957_v45, %v1624_v54 }
 0x2fc   :  { %2960 = vrcp.f32 %v3930_v4  ;;  %v1952_v33 = vpop.xlane.xlu2 %1951  ;;  %vm1229_vm7 = vmor %vm1227_vm6, %vm1228_vm4  ;;  %v1633_v18 = vsel %vm1630_vm8, %v1632_v38, %v1628_v44  ;;  %v1497_v17 = vand.u32 2147483647, %v3930_v4  ;;  %v1499_v47 = vand.u32 2147483648, %v3930_v4 }
 0x2fd   :  { %v1224_v12 = vsub.f32 1.0, %v1223_v31  ;;  %v1956_v0 = vsub.f32 %v3735_v30, %v1952_v33  ;;  %v1635_v49 = vmul.f32 %v3708_v36, %v1633_v18  ;;  %vm1493_vm11 = vweird.f32 %v3930_v4 }
 0x2fe   :  { %v1500_v24 = vor.u32 1.1754944e-38, %v1499_v47  ;;  %vm1498_vm13 = vcmp.eq.f32.partialorder %v1497_v17, 8.507059e+37 }
 0x2ff   :  { %v1225_v53 = vmul.f32 %v2959_v11, %v1224_v12  ;;  %v1958_v26 = vmul.f32 1.442695, %v1956_v0 }
 0x300   :  { %2745 = vmatmul.msk.f32.vlgmr.msrb.gmra.mxu3 %vm469_vm2, %v1634_v21 }
 0x301   :  { %2962 = vpow2.f32 %v1958_v26  ;;  %v1226_v30 = vadd.f32 %v2959_v11, %v1225_v53 }
 0x302   :  { %v2961_v50 = vpop.eup %2960 }
 0x303   :  { %v1489_v23 = vmul.f32 %v2961_v50, %v3930_v4  ;;  %v1842_v9 = vpop.xlane.xlu0 %1841  ;;  %v1230_v51 = vsel %vm1229_vm7, %v2959_v11, %v1226_v30  ;;  %v2814_v29 = vpop.permute.xlu1 %2813  ;;  %vm1494_vm10 = vweird.f32 %v2961_v50 }
 0x304   :  { %2964 = vrcp.f32 %v1842_v9  ;;  %v2195_v63 = vpop.xlane.xlu2 %2194  ;;  %v1235_v43 = vsel %vm1232_vm9, %v1234_v56, %v1230_v51  ;;  %v2815_v45 = vunpack.i.l.bf16 %v2814_v29  ;;  %v2816_v14 = vunpack.i.h.bf16 %v2814_v29  ;;  %vm1495_vm12 = vmor %vm1493_vm11, %vm1494_vm10 }
 0x305   :  { %2966 = vpow2.f32 %v1960_v25  ;;  %v1490_v55 = vsub.f32 1.0, %v1489_v23  ;;  %v1237_v52 = vmul.f32 %v3719_v57, %v1235_v43  ;;  %v2197_v48 = vsub.f32 %v3755_v20, %v2195_v63 }
 0x306   :  { %1904 = vmatpush.msra.mxu3 %v2815_v45  ;;  %v1857_v4 = vand.u32 2147483648, %v1842_v9  ;;  %v1855_v12 = vand.u32 2147483647, %v1842_v9  ;;  %vm1851_vm15 = vweird.f32 %v1842_v9 }
 0x307   :  { %v3950_v5 = vpop.eup %2962  ;;  %v1491_v46 = vmul.f32 %v2961_v50, %v1490_v55  ;;  %2728 = vmatmul.msk.f32.gmra.mxu1 %vm469_vm2, %v1237_v52  ;;  %v2200_v37 = vmul.f32 1.442695, %v2197_v48 }
 0x308   :  { %v1962_v10 = vsel %vm469_vm2, %v3950_v5, 0.0  ;;  %2746 = vmatmul.msk.f32.gmra.mxu3 %vm469_vm2, %v1635_v49  ;;  %v1858_v28 = vor.u32 1.1754944e-38, %v1857_v4  ;;  %vm1856_vm4 = vcmp.eq.f32.partialorder %v1855_v12, 8.507059e+37 }
 0x309   :  { %v1492_v58 = vadd.f32 %v2961_v50, %v1491_v46  ;;  %1963 = vadd.xlane.f32.xlu1 %v1962_v10  ;;  %1905 = vmatpush.msra.mxu3 %v2816_v14 }
 0x30a   :  { %v2965_v57 = vpop.eup %2964 }
 0x30b   :  { %v3959_v20 = vpop.eup %2966  ;;  %v1496_v36 = vsel %vm1495_vm12, %v2961_v50, %v1492_v58  ;;  %v1847_v16 = vmul.f32 %v2965_v57, %v1842_v9  ;;  %v1845_v11 = vpop.xlane.xlu0 %1844  ;;  %vm1852_vm14 = vweird.f32 %v2965_v57 }
 0x30c   :  { %v1501_v8 = vsel %vm1498_vm13, %v1500_v24, %v1496_v36  ;;  %2968 = vrcp.f32 %v1845_v11  ;;  %v1487_v31 = vpop.xlane.xlu2 %1486  ;;  %v1965_v0 = vsel %vm469_vm2, %v3959_v20, 0.0  ;;  %vm1853_vm3 = vmor %vm1851_vm15, %vm1852_vm14  ;;  %v1871_v38 = vand.u32 2147483648, %v1845_v11 }
 0x30d   :  { %v1848_v2 = vsub.f32 1.0, %v1847_v16  ;;  %2970 = vrcp.f32 %v1487_v31  ;;  %v1516_v42 = vmul.f32 %v3733_v62, %v1501_v8  ;;  %vm1865_vm6 = vweird.f32 %v1845_v11 }
 0x30e   :  { %2972 = vpow2.f32 %v2200_v37  ;;  %v1869_v9 = vand.u32 2147483647, %v1845_v11  ;;  %v1513_v63 = vand.u32 2147483648, %v1487_v31  ;;  %v1872_v55 = vor.u32 1.1754944e-38, %v1871_v38 }
 0x30f   :  { %v1849_v33 = vmul.f32 %v2965_v57, %v1848_v2  ;;  %2739 = vmatmul.msk.f32.vlgmr.msrb.gmra.mxu1 %vm469_vm2, %v1516_v42  ;;  %v1511_v17 = vand.u32 2147483647, %v1487_v31  ;;  %vm1507_vm10 = vweird.f32 %v1487_v31 }
 0x310   :  { %2018 = vmatpush.msrb.mxu1 %v3507_v40  ;;  %vm1870_vm9 = vcmp.eq.f32.partialorder %v1869_v9, 8.507059e+37  ;;  %v1514_v52 = vor.u32 1.1754944e-38, %v1513_v63 }
 0x311   :  { %v1850_v54 = vadd.f32 %v2965_v57, %v1849_v33  ;;  %1966 = vadd.xlane.f32.xlu1 %v1965_v0  ;;  %vm1512_vm12 = vcmp.eq.f32.partialorder %v1511_v17, 8.507059e+37 }
 0x312   :  { %v2969_v6 = vpop.eup %2968  ;;  %2019 = vmatpush.msrb.mxu1 %v3504_v39 }
 0x313   :  { %v2971_v15 = vpop.eup %2970  ;;  %v1854_v53 = vsel %vm1853_vm3, %v2965_v57, %v1850_v54  ;;  %v1861_v62 = vmul.f32 %v2969_v6, %v1845_v11  ;;  %v2082_v26 = vpop.xlane.xlu0 %2081  ;;  %vm1866_vm5 = vweird.f32 %v2969_v6 }
 0x314   :  { %v1859_v21 = vsel %vm1856_vm4, %v1858_v28, %v1854_v53  ;;  %v1503_v25 = vmul.f32 %v2971_v15, %v1487_v31  ;;  %2974 = vrcp.f32 %v2082_v26  ;;  %v3967_v32 = vpop.eup %2972  ;;  %vm1867_vm7 = vmor %vm1865_vm6, %vm1866_vm5  ;;  %v3975_v29 = vpop.xlane.xlu2 %2321  ;;  %vm1508_vm8 = vweird.f32 %v2971_v15 }
 0x315   :  { %v1862_v27 = vsub.f32 1.0, %v1861_v62  ;;  %v1874_v40 = vmul.f32 %v3758_v59, %v1859_v21  ;;  %v2205_v50 = vsel %vm469_vm2, %v3967_v32, 0.0  ;;  %vm1509_vm11 = vmor %vm1507_vm10, %vm1508_vm8  ;;  %v2097_v37 = vand.u32 2147483648, %v2082_v26 }
 0x316   :  { %v1504_v30 = vsub.f32 1.0, %v1503_v25  ;;  %vm2091_vm14 = vweird.f32 %v2082_v26  ;;  %v2095_v11 = vand.u32 2147483647, %v2082_v26  ;;  %v2335_v9 = vand.u32 2147483647, %v3975_v29 }
 0x317   :  { %v1863_v44 = vmul.f32 %v2969_v6, %v1862_v27  ;;  %2757 = vmatmul.msk.f32.vlgmr.msra.gmra.mxu3 %vm469_vm2, %v1874_v40  ;;  %v2098_v2 = vor.u32 1.1754944e-38, %v2097_v37 }
 0x318   :  { %v1505_v56 = vmul.f32 %v2971_v15, %v1504_v30  ;;  %vm2096_vm3 = vcmp.eq.f32.partialorder %v2095_v11, 8.507059e+37 }
 0x319   :  { %2206 = vadd.xlane.f32.xlu1 %v2205_v50  ;;  %v1864_v39 = vadd.f32 %v2969_v6, %v1863_v44 }
 0x31a   :  { %v2975_v23 = vpop.eup %2974  ;;  %v1506_v43 = vadd.f32 %v2971_v15, %v1505_v56 }
 0x31b   :  { %v3973_v51 = vpop.xlane.xlu0 %2084  ;;  %v2087_v18 = vmul.f32 %v2975_v23, %v2082_v26  ;;  %v1868_v59 = vsel %vm1867_vm7, %v2969_v6, %v1864_v39  ;;  %vm2092_vm13 = vweird.f32 %v2975_v23  ;;  %v2337_v39 = vand.u32 2147483648, %v3975_v29 }
 0x31c   :  { %2976 = vrcp.f32 %v3973_v51  ;;  %v1873_v47 = vsel %vm1870_vm9, %v1872_v55, %v1868_v59  ;;  %v1510_v48 = vsel %vm1509_vm11, %v2971_v15, %v1506_v43  ;;  %v3984_v24 = vpop.xlane.xlu2 %2324  ;;  %vm2093_vm15 = vmor %vm2091_vm14, %vm2092_vm13  ;;  %v2111_v53 = vand.u32 2147483648, %v3973_v51 }
 0x31d   :  { %v2088_v45 = vsub.f32 1.0, %v2087_v18  ;;  %v1875_v46 = vmul.f32 %v3779_v60, %v1873_v47  ;;  %v1515_v10 = vsel %vm1512_vm12, %v1514_v52, %v1510_v48  ;;  %2978 = vrcp.f32 %v3975_v29 }
 0x31e   :  { %v1517_v14 = vmul.f32 %v3782_v35, %v1515_v10  ;;  %2980 = vrcp.f32 %v3984_v24  ;;  %vm2105_vm5 = vweird.f32 %v3973_v51  ;;  %v2109_v25 = vand.u32 2147483647, %v3973_v51 }
 0x31f   :  { %2758 = vmatmul.msk.f32.gmra.mxu3 %vm469_vm2, %v1875_v46  ;;  %v2089_v58 = vmul.f32 %v2975_v23, %v2088_v45  ;;  %v2112_v50 = vor.u32 1.1754944e-38, %v2111_v53  ;;  %vm2331_vm9 = vweird.f32 %v3975_v29  ;;  %v2338_v55 = vor.u32 1.1754944e-38, %v2337_v39 }
 0x320   :  { %2740 = vmatmul.msk.f32.gmra.mxu1 %vm469_vm2, %v1517_v14  ;;  %vm2110_vm7 = vcmp.eq.f32.partialorder %v2109_v25, 8.507059e+37  ;;  %vm2336_vm11 = vcmp.eq.f32.partialorder %v2335_v9, 8.507059e+37  ;;  %v2351_v52 = vand.u32 2147483648, %v3984_v24  ;;  %vm2345_vm13 = vweird.f32 %v3984_v24 }
 0x321   :  { %v2090_v36 = vadd.f32 %v2975_v23, %v2089_v58 }
 0x322   :  { %v2977_v49 = vpop.eup %2976  ;;  %v2352_v46 = vor.u32 1.1754944e-38, %v2351_v52 }
 0x323   :  { %v2101_v57 = vmul.f32 %v2977_v49, %v3973_v51  ;;  %v2979_v16 = vpop.eup %2978  ;;  %v2094_v8 = vsel %vm2093_vm15, %v2975_v23, %v2090_v36  ;;  %vm2106_vm4 = vweird.f32 %v2977_v49 }
 0x324   :  { %v2327_v35 = vmul.f32 %v2979_v16, %v3975_v29  ;;  %v2824_v42 = vpop.permute.xlu2 %2823  ;;  %v2099_v33 = vsel %vm2096_vm3, %v2098_v2, %v2094_v8  ;;  %v2981_v15 = vpop.eup %2980  ;;  %vm2107_vm6 = vmor %vm2105_vm5, %vm2106_vm4  ;;  %vm2332_vm8 = vweird.f32 %v2979_v16 }
 0x325   :  { %v2102_v60 = vsub.f32 1.0, %v2101_v57  ;;  %v2825_v26 = vunpack.i.l.bf16 %v2824_v42  ;;  %v2114_v21 = vmul.f32 %v3792_v3, %v2099_v33  ;;  %v2826_v30 = vunpack.i.h.bf16 %v2824_v42  ;;  %vm2333_vm10 = vmor %vm2331_vm9, %vm2332_vm8 }
 0x326   :  { %v2328_v54 = vsub.f32 1.0, %v2327_v35  ;;  %v2341_v40 = vmul.f32 %v2981_v15, %v3984_v24  ;;  %vm2346_vm12 = vweird.f32 %v2981_v15 }
 0x327   :  { %v2103_v31 = vmul.f32 %v2977_v49, %v2102_v60  ;;  %vm2347_vm14 = vmor %vm2345_vm13, %vm2346_vm12 }
 0x328   :  { %v2329_v44 = vmul.f32 %v2979_v16, %v2328_v54  ;;  %v2342_v56 = vsub.f32 1.0, %v2341_v40 }
 0x329   :  { %v2104_v6 = vadd.f32 %v2977_v49, %v2103_v31 }
 0x32a   :  { %v2330_v3 = vadd.f32 %v2979_v16, %v2329_v44  ;;  %v2343_v59 = vmul.f32 %v2981_v15, %v2342_v56 }
 0x32c   :  { %v2334_v18 = vsel %vm2333_vm10, %v2979_v16, %v2330_v3  ;;  %v2344_v47 = vadd.f32 %v2981_v15, %v2343_v59 }
 0x32d   :  { %v2339_v17 = vsel %vm2336_vm11, %v2338_v55, %v2334_v18 }
 0x32e   :  { %v2819_v4 = vpop.permute.xlu0 %2818  ;;  %v2192_v0 = vpop.xlane.xlu1 %2191  ;;  %v2354_v29 = vmul.f32 %v3796_v34, %v2339_v17  ;;  %v2348_v45 = vsel %vm2347_vm14, %v2981_v15, %v2344_v47 }
 0x32f   :  { %v2820_v12 = vunpack.i.l.bf16 %v2819_v4  ;;  %v2196_v28 = vsub.f32 %v3815_v61, %v2192_v0  ;;  %v2821_v62 = vunpack.i.h.bf16 %v2819_v4  ;;  %v2108_v61 = vsel %vm2107_vm6, %v2977_v49, %v2104_v6 }
 0x330   :  { %v2113_v38 = vsel %vm2110_vm7, %v2112_v50, %v2108_v61 }
 0x331   :  { %2144 = vmatpush.msrb.mxu3 %v2820_v12  ;;  %v2198_v27 = vmul.f32 1.442695, %v2196_v28  ;;  %v2115_v51 = vmul.f32 %v3802_v7, %v2113_v38  ;;  %v2349_v7 = vand.u32 2147483647, %v3984_v24 }
 0x333   :  { %2145 = vmatpush.msrb.mxu3 %v2821_v62  ;;  %2982 = vpow2.f32 %v2198_v27  ;;  %vm2350_vm15 = vcmp.eq.f32.partialorder %v2349_v7, 8.507059e+37 }
 0x334   :  { %2769 = vmatmul.msk.f32.vlgmr.msrb.gmra.mxu3 %vm469_vm2, %v2114_v21  ;;  %v2353_v49 = vsel %vm2350_vm15, %v2352_v46, %v2348_v45 }
 0x335   :  { %2384 = vmatpush.msra.mxu3 %v2825_v26  ;;  %v2355_v10 = vmul.f32 %v3804_v41, %v2353_v49 }
 0x337   :  { %2385 = vmatpush.msra.mxu3 %v2826_v30 }
 0x339   :  { %v3996_v23 = vpop.eup %2982 }
 0x33a   :  { %v2202_v63 = vsel %vm469_vm2, %v3996_v23, 0.0  ;;  %v667_v43 = vpop.f32.mrf.mxu3 }
 0x33b   :  { %2203 = vadd.xlane.f32.xlu2 %v2202_v63  ;;  %v1727_v14 = vpop.xlane.xlu1 %1726 }
 0x33c   :  { %2770 = vmatmul.msk.f32.gmra.mxu3 %vm469_vm2, %v2115_v51  ;;  %2984 = vrcp.f32 %v1727_v14  ;;  %v1753_v54 = vand.u32 2147483648, %v1727_v14  ;;  %vm1747_vm8 = vweird.f32 %v1727_v14  ;;  %v1751_v15 = vand.u32 2147483647, %v1727_v14 }
 0x33e   :  { %v1754_v21 = vor.u32 1.1754944e-38, %v1753_v54  ;;  %vm1752_vm10 = vcmp.eq.f32.partialorder %v1751_v15, 8.507059e+37  ;;  %v2472_v54 = vld [vmem:[%s4301_s2 + $0x138] sm:$0xff] }
 0x342   :  { %v670_v48 = vpop.f32.mrf.mxu3  ;;  %v2985_v57 = vpop.eup %2984 }
 0x343   :  { %v1743_v24 = vmul.f32 %v2985_v57, %v1727_v14  ;;  %vm1748_vm7 = vweird.f32 %v2985_v57  ;;  %v2480_v14 = vld [vmem:[%s4301_s2 + $0x178] sm:$0xff] }
 0x344   :  { %2781 = vmatmul.msk.f32.vlgmr.msra.gmra.mxu3 %vm469_vm2, %v2354_v29  ;;  %vm1749_vm9 = vmor %vm1747_vm8, %vm1748_vm7  ;;  %2559 = vmatpush.msrb.mxu2 %v2480_v14  ;;  %v2489_v14 = vld [vmem:[%s4301_s2 + $0x1c0] sm:$0xff] }
 0x345   :  { %v1744_v16 = vsub.f32 1.0, %v1743_v24  ;;  %v2477_v24 = vld [vmem:[%s4301_s2 + $0x160] sm:$0xff] }
 0x347   :  { %v1745_v2 = vmul.f32 %v2985_v57, %v1744_v16  ;;  %v2444_v16 = vld [vmem:[%s4301_s2 + $0x58] sm:$0xff] }
 0x349   :  { %v1746_v0 = vadd.f32 %v2985_v57, %v1745_v2  ;;  %v2474_v2 = vld [vmem:[%s4301_s2 + $0x148] sm:$0xff] }
 0x34a   :  { %v907_v58 = vpop.f32.mrf.mxu3 }
 0x34b   :  { %v1750_v26 = vsel %vm1749_vm9, %v2985_v57, %v1746_v0  ;;  %v2478_v57 = vld [vmem:[%s4301_s2 + $0x168] sm:$0xff]  ;;  %v2440_v0 = vld [vmem:[%s4301_s2 + $0x38] sm:$0xff] }
 0x34c   :  { %2782 = vmatmul.msk.f32.gmra.mxu3 %vm469_vm2, %v2355_v10  ;;  %v1755_v25 = vsel %vm1752_vm10, %v1754_v21, %v1750_v26  ;;  %v2448_v10 = vld [vmem:[%s4301_s2 + $0x78] sm:$0xff]  ;;  %v2471_v26 = vld [vmem:[%s4301_s2 + $0x130] sm:$0xff]  ;;  %v2462_v21 = vld [vmem:[%s4301_s2 + $0xe8] sm:$0xff] }
 0x34d   :  { %v1757_v27 = vmul.f32 %v3844_v22, %v1755_v25  ;;  %2501 = vmatpush.msrb.mxu0 %v2448_v10  ;;  %v2494_v25 = vld [vmem:[%s4301_s2 + $0x1e8] sm:$0xff] }
 0x352   :  { %v910_v36 = vpop.f32.mrf.mxu3 }
 0x359   :  { %v1724_v34 = vpop.xlane.xlu0 %1723 }
 0x35a   :  { %2986 = vrcp.f32 %v1724_v34  ;;  %v1739_v35 = vand.u32 2147483648, %v1724_v34  ;;  %v1737_v41 = vand.u32 2147483647, %v1724_v34  ;;  %vm1733_vm4 = vweird.f32 %v1724_v34 }
 0x35c   :  { %v1740_v33 = vor.u32 1.1754944e-38, %v1739_v35  ;;  %vm1738_vm6 = vcmp.eq.f32.partialorder %v1737_v41, 8.507059e+37  ;;  %v2475_v35 = vld [vmem:[%s4301_s2 + $0x150] sm:$0xff]  ;;  %v2473_v41 = vld [vmem:[%s4301_s2 + $0x140] sm:$0xff] }
 0x360   :  { %v2987_v60 = vpop.eup %2986 }
 0x361   :  { %v1729_v37 = vmul.f32 %v2987_v60, %v1724_v34  ;;  %vm1734_vm3 = vweird.f32 %v2987_v60  ;;  %v2446_v34 = vld [vmem:[%s4301_s2 + $0x68] sm:$0xff] }
 0x362   :  { %v1147_v8 = vpop.f32.mrf.mxu3  ;;  %vm1735_vm5 = vmor %vm1733_vm4, %vm1734_vm3 }
 0x363   :  { %v1730_v11 = vsub.f32 1.0, %v1729_v37  ;;  %v2827_v31 = vpack.i.bf16 %v667_v43, %v1147_v8  ;;  %v2476_v37 = vld [vmem:[%s4301_s2 + $0x158] sm:$0xff]  ;;  %v2443_v8 = vld [vmem:[%s4301_s2 + $0x50] sm:$0xff] }
 0x365   :  { %v1731_v4 = vmul.f32 %v2987_v60, %v1730_v11  ;;  %2828 = vrot.lane.b32.xlu0 %v2827_v31, %s3022_s6  ;;  %v2442_v31 = vld [vmem:[%s4301_s2 + $0x48] sm:$0xff] }
 0x367   :  { %v1732_v42 = vadd.f32 %v2987_v60, %v1731_v4  ;;  %v2441_v4 = vld [vmem:[%s4301_s2 + $0x40] sm:$0xff] }
 0x369   :  { %v1736_v12 = vsel %vm1735_vm5, %v2987_v60, %v1732_v42  ;;  %v2464_v42 = vld [vmem:[%s4301_s2 + $0xf8] sm:$0xff] }
 0x36a   :  { %v1741_v6 = vsel %vm1738_vm6, %v1740_v33, %v1736_v12  ;;  %v2496_v33 = vld [vmem:[%s4301_s2 + $0x1f8] sm:$0xff]  ;;  %v2463_v12 = vld [vmem:[%s4301_s2 + $0xf0] sm:$0xff] }
 0x36b   :  { %v1756_v28 = vmul.f32 %v3898_v13, %v1741_v6  ;;  %v1150_v53 = vpop.f32.mrf.mxu3  ;;  %2588 = vmatpush.msrb.mxu3 %v2496_v33  ;;  %v2495_v6 = vld [vmem:[%s4301_s2 + $0x1f0] sm:$0xff] }
 0x36c   :  { %v2837_v62 = vpack.i.bf16 %v670_v48, %v1150_v53 }
 0x36d   :  { %2751 = vmatmul.msk.f32.vlgmr.msra.gmra.mxu1 %vm469_vm2, %v1756_v28  ;;  %2589 = vmatpush.msrb.mxu3 %v2495_v6  ;;  %v2485_v6 = vld [vmem:[%s4301_s2 + $0x1a0] sm:$0xff] }
 0x36e   :  { %2258 = vmatpush.msra.mxu1 %v3833_v1  ;;  %2838 = vrot.lane.b32.xlu0 %v2837_v62, %s3022_s6  ;;  %v2439_v62 = vld [vmem:[%s4301_s2 + $0x30] sm:$0xff] }
 0x36f   :  { %2590 = vmatpush.msrb.mxu3 %v2494_v25 }
 0x370   :  { %2259 = vmatpush.msra.mxu1 %v3810_v19 }
 0x373   :  { %v1387_v30 = vpop.f32.mrf.mxu3 }
 0x374   :  { %v2832_v13 = vpack.i.bf16 %v907_v58, %v1387_v30  ;;  %v2447_v58 = vld [vmem:[%s4301_s2 + $0x70] sm:$0xff]  ;;  %v2438_v30 = vld [vmem:[%s4301_s2 + $0x28] sm:$0xff] }
 0x375   :  { %2752 = vmatmul.msk.f32.gmra.mxu1 %vm469_vm2, %v1757_v27  ;;  %2502 = vmatpush.msrb.mxu0 %v2447_v58  ;;  %v2461_v27 = vld [vmem:[%s4301_s2 + $0xe0] sm:$0xff] }
 0x376   :  { %2833 = vrot.lane.b32.xlu1 %v2832_v13, %s3022_s6  ;;  %v2470_v13 = vld [vmem:[%s4301_s2 + $0x128] sm:$0xff]  ;;  %v2433_v58 = vld [vmem:[%s4301_s2] sm:$0xff] }
 0x377   :  { %2503 = vmatpush.msrb.mxu0 %v2446_v34  ;;  %v2456_v34 = vld [vmem:[%s4301_s2 + $0xb8] sm:$0xff] }
 0x37b   :  { %v1390_v44 = vpop.f32.mrf.mxu3 }
 0x37c   :  { %v1964_v40 = vpop.xlane.xlu1 %1963  ;;  %v2842_v61 = vpack.i.bf16 %v910_v36, %v1390_v44  ;;  %v2445_v36 = vld [vmem:[%s4301_s2 + $0x60] sm:$0xff] }
 0x37d   :  { %2988 = vrcp.f32 %v1964_v40  ;;  %v1979_v3 = vand.u32 2147483648, %v1964_v40  ;;  %v1977_v22 = vand.u32 2147483647, %v1964_v40  ;;  %vm1973_vm12 = vweird.f32 %v1964_v40  ;;  %2504 = vmatpush.msrb.mxu0 %v2445_v36  ;;  %v2493_v44 = vld [vmem:[%s4301_s2 + $0x1e0] sm:$0xff] }
 0x37e   :  { %2843 = vrot.lane.b32.xlu0 %v2842_v61, %s3022_s6  ;;  %2591 = vmatpush.msrb.mxu3 %v2493_v44 }
 0x37f   :  { %v1980_v51 = vor.u32 1.1754944e-38, %v1979_v3  ;;  %vm1978_vm14 = vcmp.eq.f32.partialorder %v1977_v22, 8.507059e+37  ;;  %2505 = vmatpush.msrb.mxu0 %v2444_v16  ;;  %v2459_v3 = vld [vmem:[%s4301_s2 + $0xd0] sm:$0xff] }
 0x380   :  { %v2455_v16 = vld [vmem:[%s4301_s2 + $0xb0] sm:$0xff] }
 0x381   :  { %2506 = vmatpush.msrb.mxu0 %v2443_v8 }
 0x383   :  { %v2989_v1 = vpop.eup %2988  ;;  %v4023_v7 = vpop.f32.mrf.mxu3  ;;  %2507 = vmatpush.msrb.mxu0 %v2442_v31 }
 0x384   :  { %v1969_v50 = vmul.f32 %v2989_v1, %v1964_v40  ;;  %v1967_v38 = vpop.xlane.xlu1 %1966  ;;  %vm1974_vm11 = vweird.f32 %v2989_v1  ;;  %v4131_v40 = vpop.f32.mrf.mxu1 }
 0x385   :  { %2990 = vrcp.f32 %v1967_v38  ;;  %vm1975_vm13 = vmor %vm1973_vm12, %vm1974_vm11  ;;  %v1993_v17 = vand.u32 2147483648, %v1967_v38  ;;  %v1991_v52 = vand.u32 2147483647, %v1967_v38  ;;  %vm1987_vm3 = vweird.f32 %v1967_v38  ;;  %2508 = vmatpush.msrb.mxu0 %v2441_v4 }
 0x386   :  { %v1970_v19 = vsub.f32 1.0, %v1969_v50  ;;  %v2492_v50 = vld [vmem:[%s4301_s2 + $0x1d8] sm:$0xff] }
 0x387   :  { %v1994_v45 = vor.u32 1.1754944e-38, %v1993_v17  ;;  %vm1992_vm5 = vcmp.eq.f32.partialorder %v1991_v52, 8.507059e+37  ;;  %2509 = vmatpush.msrb.mxu0 %v2440_v0  ;;  %2592 = vmatpush.msrb.mxu3 %v2492_v50  ;;  %v2458_v52 = vld [vmem:[%s4301_s2 + $0xc8] sm:$0xff] }
 0x388   :  { %v1971_v56 = vmul.f32 %v2989_v1, %v1970_v19  ;;  %v2469_v19 = vld [vmem:[%s4301_s2 + $0x120] sm:$0xff] }
 0x389   :  { %2510 = vmatpush.msrb.mxu0 %v2439_v62 }
 0x38a   :  { %v1972_v39 = vadd.f32 %v2989_v1, %v1971_v56  ;;  %v2491_v56 = vld [vmem:[%s4301_s2 + $0x1d0] sm:$0xff] }
 0x38b   :  { %v2991_v9 = vpop.eup %2990  ;;  %2511 = vmatpush.msrb.mxu0 %v2438_v30  ;;  %2593 = vmatpush.msrb.mxu3 %v2491_v56 }
 0x38c   :  { %v1976_v63 = vsel %vm1975_vm13, %v2989_v1, %v1972_v39  ;;  %v1983_v18 = vmul.f32 %v2991_v9, %v1967_v38  ;;  %vm1988_vm15 = vweird.f32 %v2991_v9  ;;  %v4061_v11 = vpop.xlane.xlu1 %2206  ;;  %v2460_v1 = vld [vmem:[%s4301_s2 + $0xd8] sm:$0xff]  ;;  %v2437_v38 = vld [vmem:[%s4301_s2 + $0x20] sm:$0xff] }
 0x38d   :  { %v1981_v59 = vsel %vm1978_vm14, %v1980_v51, %v1976_v63  ;;  %vm1989_vm4 = vmor %vm1987_vm3, %vm1988_vm15  ;;  %2992 = vrcp.f32 %v4061_v11  ;;  %v2436_v39 = vld [vmem:[%s4301_s2 + $0x18] sm:$0xff]  ;;  %2512 = vmatpush.msrb.mxu0 %v2437_v38  ;;  %v2233_v4 = vand.u32 2147483648, %v4061_v11  ;;  %vm2227_vm11 = vweird.f32 %v4061_v11 }
 0x38e   :  { %v1996_v55 = vmul.f32 %v3950_v5, %v1981_v59  ;;  %v1984_v43 = vsub.f32 1.0, %v1983_v18  ;;  %v4027_v5 = vpop.f32.mrf.mxu3  ;;  %v2231_v33 = vand.u32 2147483647, %v4061_v11 }
 0x38f   :  { %2513 = vmatpush.msrb.mxu0 %v2436_v39 }
 0x390   :  { %v1985_v47 = vmul.f32 %v2991_v9, %v1984_v43  ;;  %2763 = vmatmul.msk.f32.vlgmr.msrb.gmra.mxu1 %vm469_vm2, %v1996_v55  ;;  %v2435_v55 = vld [vmem:[%s4301_s2 + $0x10] sm:$0xff]  ;;  %vm2232_vm13 = vcmp.eq.f32.partialorder %v2231_v33, 8.507059e+37 }
 0x391   :  { %2530 = vmatpush.msrb.mxu1 %v2464_v42  ;;  %v2467_v43 = vld [vmem:[%s4301_s2 + $0x110] sm:$0xff]  ;;  %2514 = vmatpush.msrb.mxu0 %v2435_v55 }
 0x392   :  { %v1986_v29 = vadd.f32 %v2991_v9, %v1985_v47  ;;  %v2434_v47 = vld [vmem:[%s4301_s2 + $0x8] sm:$0xff] }
 0x393   :  { %v4104_v53 = vpop.eup %2992  ;;  %2531 = vmatpush.msrb.mxu1 %v2463_v12  ;;  %2515 = vmatpush.msrb.mxu0 %v2434_v47 }
 0x394   :  { %v1990_v46 = vsel %vm1989_vm4, %v2991_v9, %v1986_v29  ;;  %v2223_v61 = vmul.f32 %v4104_v53, %v4061_v11  ;;  %v2468_v9 = vld [vmem:[%s4301_s2 + $0x118] sm:$0xff]  ;;  %vm2228_vm9 = vweird.f32 %v4104_v53  ;;  %v2453_v11 = vld [vmem:[%s4301_s2 + $0xa0] sm:$0xff] }
 0x395   :  { %v1995_v48 = vsel %vm1992_vm5, %v1994_v45, %v1990_v46  ;;  %2532 = vmatpush.msrb.mxu1 %v2462_v21  ;;  %v2490_v45 = vld [vmem:[%s4301_s2 + $0x1c8] sm:$0xff]  ;;  %v2457_v46 = vld [vmem:[%s4301_s2 + $0xc0] sm:$0xff]  ;;  %2516 = vmatpush.msrb.mxu0 %v2433_v58  ;;  %vm4220_vm12 = vmor %vm2227_vm11, %vm2228_vm9 }
 0x396   :  { %v1997_v49 = vmul.f32 %v3959_v20, %v1995_v48  ;;  %v2479_v20 = vld [vmem:[%s4301_s2 + $0x170] sm:$0xff]  ;;  %v2224_v51 = vsub.f32 1.0, %v2223_v61  ;;  %2594 = vmatpush.msrb.mxu3 %v2490_v45  ;;  %v2450_v61 = vld [vmem:[%s4301_s2 + $0x88] sm:$0xff] }
 0x397   :  { %2560 = vmatpush.msrb.mxu2 %v2479_v20  ;;  %2533 = vmatpush.msrb.mxu1 %v2461_v27  ;;  %v2465_v20 = vld [vmem:[%s4301_s2 + $0x100] sm:$0xff]  ;;  %v2451_v27 = vld [vmem:[%s4301_s2 + $0x90] sm:$0xff] }
 0x398   :  { %2764 = vmatmul.msk.f32.gmra.mxu1 %vm469_vm2, %v1997_v49  ;;  %v2225_v48 = vmul.f32 %v4104_v53, %v2224_v51  ;;  %2595 = vmatpush.msrb.mxu3 %v2489_v14 }
 0x399   :  { %2561 = vmatpush.msrb.mxu2 %v2478_v57  ;;  %2534 = vmatpush.msrb.mxu1 %v2460_v1  ;;  %v4198_v57 = vpop.f32.mrf.mxu1  ;;  %v2482_v1 = vld [vmem:[%s4301_s2 + $0x188] sm:$0xff] }
 0x39a   :  { %v4053_v60 = vpop.f32.mrf.mxu3  ;;  %v2226_v8 = vadd.f32 %v4104_v53, %v2225_v48 }
 0x39b   :  { %2562 = vmatpush.msrb.mxu2 %v2477_v24  ;;  %2535 = vmatpush.msrb.mxu1 %v2459_v3  ;;  %v2488_v24 = vld [vmem:[%s4301_s2 + $0x1b8] sm:$0xff] }
 0x39c   :  { %2596 = vmatpush.msrb.mxu3 %v2488_v24 }
 0x39d   :  { %2563 = vmatpush.msrb.mxu2 %v2476_v37  ;;  %2536 = vmatpush.msrb.mxu1 %v2458_v52 }
 0x39f   :  { %2564 = vmatpush.msrb.mxu2 %v2475_v35  ;;  %2537 = vmatpush.msrb.mxu1 %v2457_v46 }
 0x3a1   :  { %2565 = vmatpush.msrb.mxu2 %v2474_v2  ;;  %2538 = vmatpush.msrb.mxu1 %v2456_v34  ;;  %v2487_v2 = vld [vmem:[%s4301_s2 + $0x1b0] sm:$0xff]  ;;  %v781_v62 = vpop.f32.mrf.mxu1 }
 0x3a2   :  { %v4100_v28 = vpop.f32.mrf.mxu3  ;;  %2597 = vmatpush.msrb.mxu3 %v2487_v2 }
 0x3a3   :  { %2566 = vmatpush.msrb.mxu2 %v2473_v41  ;;  %2539 = vmatpush.msrb.mxu1 %v2455_v16 }
 0x3a5   :  { %2567 = vmatpush.msrb.mxu2 %v2472_v54  ;;  %v2486_v54 = vld [vmem:[%s4301_s2 + $0x1a8] sm:$0xff] }
 0x3a6   :  { %2598 = vmatpush.msrb.mxu3 %v2486_v54 }
 0x3a7   :  { %2568 = vmatpush.msrb.mxu2 %v2471_v26  ;;  %v2452_v26 = vld [vmem:[%s4301_s2 + $0x98] sm:$0xff] }
 0x3a8   :  { %2599 = vmatpush.msrb.mxu3 %v2485_v6 }
 0x3a9   :  { %2569 = vmatpush.msrb.mxu2 %v2470_v13  ;;  %v2483_v13 = vld [vmem:[%s4301_s2 + $0x190] sm:$0xff]  ;;  %v784_v50 = vpop.f32.mrf.mxu1 }
 0x3ab   :  { %2570 = vmatpush.msrb.mxu2 %v2469_v19 }
 0x3ad   :  { %2571 = vmatpush.msrb.mxu2 %v2468_v9 }
 0x3ae   :  { %v4102_v15 = vpop.xlane.xlu2 %2203 }
 0x3af   :  { %2994 = vrcp.f32 %v4102_v15  ;;  %v2219_v29 = vand.u32 2147483648, %v4102_v15  ;;  %v2217_v10 = vand.u32 2147483647, %v4102_v15  ;;  %2572 = vmatpush.msrb.mxu2 %v2467_v43  ;;  %vm2213_vm7 = vweird.f32 %v4102_v15 }
 0x3b1   :  { %v2220_v37 = vor.u32 1.1754944e-38, %v2219_v29  ;;  %vm2218_vm10 = vcmp.eq.f32.partialorder %v2217_v10, 8.507059e+37  ;;  %v1021_v56 = vpop.f32.mrf.mxu1 }
 0x3b5   :  { %v2995_v22 = vpop.eup %2994 }
 0x3b6   :  { %v2209_v63 = vmul.f32 %v2995_v22, %v4102_v15  ;;  %vm2214_vm6 = vweird.f32 %v2995_v22  ;;  %v2234_v15 = vor.u32 1.1754944e-38, %v2233_v4 }
 0x3b7   :  { %v2147_v18 = vpop.f32.mrf.mxu3  ;;  %vm2215_vm8 = vmor %vm2213_vm7, %vm2214_vm6 }
 0x3b8   :  { %v2847_v59 = vpack.i.bf16 %v4023_v7, %v2147_v18  ;;  %v2210_v17 = vsub.f32 1.0, %v2209_v63  ;;  %v2466_v7 = vld [vmem:[%s4301_s2 + $0x108] sm:$0xff] }
 0x3b9   :  { %2573 = vmatpush.msrb.mxu2 %v2466_v7  ;;  %v1024_v63 = vpop.f32.mrf.mxu1 }
 0x3ba   :  { %2848 = vrot.lane.b32.xlu1 %v2847_v59, %s3022_s6  ;;  %v2211_v49 = vmul.f32 %v2995_v22, %v2210_v17 }
 0x3bb   :  { %2574 = vmatpush.msrb.mxu2 %v2465_v20 }
 0x3bc   :  { %v2212_v36 = vadd.f32 %v2995_v22, %v2211_v49 }
 0x3be   :  { %v2216_v35 = vsel %vm2215_vm8, %v2995_v22, %v2212_v36 }
 0x3bf   :  { %v2150_v31 = vpop.f32.mrf.mxu3  ;;  %v2221_v41 = vsel %vm2218_vm10, %v2220_v37, %v2216_v35 }
 0x3c0   :  { %v2857_v42 = vpack.i.bf16 %v4027_v5, %v2150_v31  ;;  %v2236_v12 = vmul.f32 %v3996_v23, %v2221_v41  ;;  %v2454_v5 = vld [vmem:[%s4301_s2 + $0xa8] sm:$0xff]  ;;  %v2230_v23 = vsel %vm4220_vm12, %v4104_v53, %v2226_v8  ;;  %v2484_v53 = vld [vmem:[%s4301_s2 + $0x198] sm:$0xff] }
 0x3c1   :  { %2540 = vmatpush.msrb.mxu1 %v2454_v5  ;;  %v2235_v21 = vsel %vm2232_vm13, %v2234_v15, %v2230_v23  ;;  %2600 = vmatpush.msrb.mxu3 %v2484_v53  ;;  %v1261_v29 = vpop.f32.mrf.mxu1 }
 0x3c2   :  { %2858 = vrot.lane.b32.xlu0 %v2857_v42, %s3022_s6  ;;  %2775 = vmatmul.msk.f32.vlgmr.msra.gmra.mxu1 %vm469_vm2, %v2236_v12  ;;  %v2237_v44 = vmul.f32 %v3967_v32, %v2235_v21  ;;  %v2481_v32 = vld [vmem:[%s4301_s2 + $0x180] sm:$0xff] }
 0x3c3   :  { %2541 = vmatpush.msrb.mxu1 %v2453_v11  ;;  %2601 = vmatpush.msrb.mxu3 %v2483_v13 }
 0x3c5   :  { %2542 = vmatpush.msrb.mxu1 %v2452_v26  ;;  %2602 = vmatpush.msrb.mxu3 %v2482_v1 }
 0x3c7   :  { %v2387_v25 = vpop.f32.mrf.mxu3  ;;  %2543 = vmatpush.msrb.mxu1 %v2451_v27  ;;  %2603 = vmatpush.msrb.mxu3 %v2481_v32  ;;  %v2867_v27 = vld [vmem:[%s4302_s3] ss:$0 sm:$0xff]  ;;  %s3023_s3 = smov [#allocation2]  }
 0x3c8   :  { %v2852_v30 = vpack.i.bf16 %v4053_v60, %v2387_v25  ;;  %v2449_v60 = vld [vmem:[%s4301_s2 + $0x80] sm:$0xff]  ;;  %s2625_s8 = sshll.u32 %s3023_s3, 4  ;;  %s2626_s8 = int_to_ptr.vmem [resolvable:$true] %s2625_s8 }
 0x3c9   :  { %2544 = vmatpush.msrb.mxu1 %v2450_v61  ;;  %v1264_v49 = vpop.f32.mrf.mxu1 }
 0x3ca   :  { %2853 = vrot.lane.b32.xlu2 %v2852_v30, %s3022_s6  ;;  %2776 = vmatmul.msk.f32.gmra.mxu1 %vm469_vm2, %v2237_v44 }
 0x3cb   :  { %2545 = vmatpush.msrb.mxu1 %v2449_v60 }
 0x3cf   :  { %v2390_v38 = vpop.f32.mrf.mxu3 }
 0x3d0   :  { %v2862_v19 = vpack.i.bf16 %v4100_v28, %v2390_v38 }
 0x3d1   :  { %v1541_v58 = vpop.f32.mrf.mxu1 }
 0x3d2   :  { %2863 = vrot.lane.b32.xlu1 %v2862_v19, %s3022_s6 }
 0x3d7   :  { %v2829_v3 = vpop.permute.xlu0 %2828 }
 0x3d8   :  { %v2831_v22 = vunpack.i.h.bf16 %v2829_v3  ;;  %v2830_v39 = vunpack.i.l.bf16 %v2829_v3 }
 0x3d9   :  { %v1544_v20 = vpop.f32.mrf.mxu1 }
 0x3da   :  { %v1425_v9 = vsel %vm431_vm1, %v4131_v40, %v2831_v22  ;;  %v1429_v51 = vsel %vm431_vm1, %v1021_v56, %v2830_v39 }
 0x3db   :  { %2517 = vmatmul.f32.vlgmr.msrb.gmra.mxu0 %v1425_v9  ;;  %2575 = vmatmul.f32.vlgmr.msrb.gmra.mxu2 %v1429_v51 }
 0x3e0   :  { %v2839_v18 = vpop.permute.xlu0 %2838 }
 0x3e1   :  { %v2841_v59 = vunpack.i.h.bf16 %v2839_v18  ;;  %v2840_v55 = vunpack.i.l.bf16 %v2839_v18 }
 0x3e3   :  { %v1426_v28 = vsel %vm431_vm1, %v4198_v57, %v2841_v59  ;;  %v1430_v43 = vsel %vm431_vm1, %v1024_v63, %v2840_v55 }
 0x3e4   :  { %2520 = vmatmul.f32.gmra.mxu0 %v1426_v28  ;;  %2578 = vmatmul.f32.gmra.mxu2 %v1430_v43 }
 0x3e8   :  { %v2834_v17 = vpop.permute.xlu1 %2833 }
 0x3e9   :  { %v2836_v47 = vunpack.i.h.bf16 %v2834_v17  ;;  %v2835_v52 = vunpack.i.l.bf16 %v2834_v17 }
 0x3ea   :  { %v1781_v34 = vpop.f32.mrf.mxu1 }
 0x3eb   :  { %v1427_v40 = vsel %vm431_vm1, %v781_v62, %v2836_v47  ;;  %v1431_v7 = vsel %vm431_vm1, %v1261_v29, %v2835_v52 }
 0x3ec   :  { %2546 = vmatmul.f32.vlgmr.msrb.gmra.mxu1 %v1427_v40  ;;  %2604 = vmatmul.f32.vlgmr.msrb.gmra.mxu3 %v1431_v7 }
 0x3f0   :  { %v2844_v45 = vpop.permute.xlu0 %2843 }
 0x3f1   :  { %v2846_v46 = vunpack.i.h.bf16 %v2844_v45  ;;  %v2845_v48 = vunpack.i.l.bf16 %v2844_v45 }
 0x3f2   :  { %v1784_v57 = vpop.f32.mrf.mxu1 }
 0x3f3   :  { %v1428_v10 = vsel %vm431_vm1, %v784_v50, %v2846_v46  ;;  %v1432_v14 = vsel %vm431_vm1, %v1264_v49, %v2845_v48 }
 0x3f4   :  { %2549 = vmatmul.f32.gmra.mxu1 %v1428_v10  ;;  %2607 = vmatmul.f32.gmra.mxu3 %v1432_v14 }
 0x40d   :  { %v2021_v37 = vpop.f32.mrf.mxu1 }
 0x415   :  { %v2024_v12 = vpop.f32.mrf.mxu1 }
 0x424   :  { %v2854_v36 = vpop.permute.xlu2 %2853 }
 0x425   :  { %v2856_v24 = vunpack.i.h.bf16 %v2854_v36  ;;  %v2855_v54 = vunpack.i.l.bf16 %v2854_v36 }
 0x427   :  { %v2427_v16 = vsel %vm431_vm1, %v1781_v34, %v2856_v24 }
 0x428   :  { %2552 = vmatmul.f32.gmra.mxu1 %v2427_v16 }
 0x42c   :  { %v2849_v8 = vpop.permute.xlu1 %2848 }
 0x42d   :  { %v2851_v35 = vunpack.i.h.bf16 %v2849_v8  ;;  %v2850_v31 = vunpack.i.l.bf16 %v2849_v8 }
 0x42f   :  { %v2425_v2 = vsel %vm431_vm1, %v1541_v58, %v2851_v35  ;;  %v2429_v4 = vsel %vm431_vm1, %v2021_v37, %v2850_v31 }
 0x430   :  { %2523 = vmatmul.f32.gmra.mxu0 %v2425_v2  ;;  %2581 = vmatmul.f32.gmra.mxu2 %v2429_v4 }
 0x434   :  { %v2859_v41 = vpop.permute.xlu0 %2858 }
 0x435   :  { %v2861_v42 = vunpack.i.h.bf16 %v2859_v41  ;;  %v2860_v33 = vunpack.i.l.bf16 %v2859_v41 }
 0x437   :  { %v2426_v0 = vsel %vm431_vm1, %v1544_v20, %v2861_v42  ;;  %v2430_v5 = vsel %vm431_vm1, %v2024_v12, %v2860_v33 }
 0x438   :  { %2526 = vmatmul.f32.gmra.mxu0 %v2426_v0  ;;  %2584 = vmatmul.f32.gmra.mxu2 %v2430_v5 }
 0x43f   :  { %v2261_v23 = vpop.f32.mrf.mxu1 }
 0x440   :  { %v2431_v11 = vsel %vm431_vm1, %v2261_v23, %v2855_v54 }
 0x441   :  { %2610 = vmatmul.f32.gmra.mxu3 %v2431_v11 }
 0x444   :  { %v2864_v6 = vpop.permute.xlu1 %2863 }
 0x445   :  { %v2866_v15 = vunpack.i.h.bf16 %v2864_v6  ;;  %v2865_v62 = vunpack.i.l.bf16 %v2864_v6 }
 0x447   :  { %v2428_v26 = vsel %vm431_vm1, %v1784_v57, %v2866_v15  ;;  %v2264_v53 = vpop.f32.mrf.mxu1 }
 0x448   :  { %2555 = vmatmul.f32.gmra.mxu1 %v2428_v26  ;;  %v2432_v21 = vsel %vm431_vm1, %v2264_v53, %v2865_v62 }
 0x449   :  { %2613 = vmatmul.f32.gmra.mxu3 %v2432_v21 }
 0x458   :  { %v2518_v25 = vpop.f32.mrf.mxu0 }
 0x459   :  { %v2519_v30 = vadd.f32 %v2867_v27, %v2518_v25 }
 0x45e   :  { %v2576_v61 = vpop.f32.mrf.mxu2 }
 0x461   :  { %v2521_v1 = vpop.f32.mrf.mxu0 }
 0x462   :  { %v2522_v50 = vadd.f32 %v2867_v27, %v2521_v1 }
 0x467   :  { %v2579_v56 = vpop.f32.mrf.mxu2 }
 0x469   :  { %v2547_v13 = vpop.f32.mrf.mxu1 }
 0x46a   :  { %v2548_v44 = vadd.f32 %v2547_v13, %v2519_v30 }
 0x46c   :  { %v2577_v60 = vadd.f32 %v2576_v61, %v2548_v44 }
 0x46f   :  { %v2605_v32 = vpop.f32.mrf.mxu3 }
 0x470   :  { %v2606_v38 = vadd.f32 %v2605_v32, %v2577_v60 }
 0x471   :  { %v2550_v19 = vpop.f32.mrf.mxu1 }
 0x472   :  { %2617 = vst.msk [vmem:[#allocation2] sm:$0xff] %vm70_vm0, %v2606_v38  ;;  %v2551_v3 = vadd.f32 %v2550_v19, %v2522_v50 }
 0x474   :  { %v2580_v22 = vadd.f32 %v2579_v56, %v2551_v3 }
 0x477   :  { %v2608_v39 = vpop.f32.mrf.mxu3 }
 0x478   :  { %v2609_v9 = vadd.f32 %v2608_v39, %v2580_v22 }
 0x47a   :  { %2618 = vst.msk [vmem:[#allocation2 + $0x8] sm:$0xff] %vm70_vm0, %v2609_v9 }
 0x4a5   :  { %v2553_v63 = vpop.f32.mrf.mxu1 }
 0x4ad   :  { %v2524_v51 = vpop.f32.mrf.mxu0 }
 0x4ae   :  { %v2525_v18 = vadd.f32 %v2867_v27, %v2524_v51 }
 0x4b0   :  { %v2554_v55 = vadd.f32 %v2553_v63, %v2525_v18 }
 0x4b3   :  { %v2582_v59 = vpop.f32.mrf.mxu2 }
 0x4b4   :  { %v2583_v43 = vadd.f32 %v2582_v59, %v2554_v55 }
 0x4b5   :  { %v2527_v28 = vpop.f32.mrf.mxu0 }
 0x4b6   :  { %v2528_v52 = vadd.f32 %v2867_v27, %v2527_v28 }
 0x4bb   :  { %v2585_v7 = vpop.f32.mrf.mxu2 }
 0x4c4   :  { %v2611_v17 = vpop.f32.mrf.mxu3 }
 0x4c5   :  { %v2556_v47 = vpop.f32.mrf.mxu1  ;;  %v2612_v29 = vadd.f32 %v2611_v17, %v2583_v43 }
 0x4c6   :  { %v2557_v40 = vadd.f32 %v2556_v47, %v2528_v52 }
 0x4c7   :  { %2619 = vst.msk [vmem:[#allocation2 + $0x10] sm:$0xff] %vm70_vm0, %v2612_v29 }
 0x4c8   :  { %v2586_v45 = vadd.f32 %v2585_v7, %v2557_v40 }
 0x4cc   :  { %v2614_v46 = vpop.f32.mrf.mxu3 }
 0x4cd   :  { %v2615_v48 = vadd.f32 %v2614_v46, %v2586_v45 }
 0x4cf   :  { %2620 = vst.msk [vmem:[#allocation2 + $0x18] sm:$0xff] %vm70_vm0, %v2615_v48 }
 0x4d0   :  { %2633 = dma.vmem_to_hbm [thread:$0]  %s2626_s8, 512, %s2628_s11, [#allocation3], %s3024_s12, %s3024_s12, %s3025_s0  }
 0x4d1   :  { %3020 = dma.done.wait [#allocation3], 512  }
 0x4d2   :  { %3021 = vsyncadd [#allocation3], 4294966784 }
 0x4d3   :  { %2638 = vsyncpa [#allocation3], 1 }

</bundles_post_ra>
